<compile_context>
chip_gen: v7x
topology: tpu7x:2x2x1
jax: 0.10.0
libtpu: 0.0.40
codegen_flags: <defaults>
</compile_context>

<pallas_src>
import functools

import jax
import jax.numpy as jnp
from jax.experimental import pallas as pl
from jax.experimental.pallas import tpu as pltpu

NEG_SLOPE = 0.01  # torch.nn.LeakyReLU default negative_slope


def _downsample_kernel(x_ref, halo_ref, w_ref, shift_ref, o_ref,
                       *, nb, th, wo, cin, cpad, fuse_taps):
    """One (image block, output-row block) per grid step.

    x_ref:     (nb, 4, th, Wp, cin)  parity planes (q = (kh%2)*2 + kw%2), main rows, bf16
    halo_ref:  (nb, 4, 1,  Wp, cin)  one extra plane row (bottom halo), bf16
    w_ref:     (9*cin, cpad)         BN-scale-folded conv weights, row = (kh*3+kw)*cin + ci
    shift_ref: (1, cpad)             folded BN shift (beta - mean*gamma/sqrt(var+eps)), f32
    o_ref:     (nb, th, wo, cpad)    output tile (lane-dense: cpad % 128 == 0)
    """
    x = x_ref[...]                                        # (nb, 4, th, Wp, cin)
    halo = halo_ref[...]                                  # (nb, 4, 1,  Wp, cin)
    # Only the kh=2 taps (which read the ph=0 planes, q in {0,1}) need the halo row, so only
    # those two planes get a shifted-down copy -- no full main+halo block concat.
    x_dn = jnp.concatenate([x[:, 0:2, 1:, :, :], halo[:, 0:2, :, :, :]], axis=2)

    def tap(kh, kw):
        b, pw = kw // 2, kw % 2
        if kh == 0:
            return x[:, pw, :, b:b + wo, :]               # plane q=pw,   row t
        if kh == 1:
            return x[:, 2 + pw, :, b:b + wo, :]           # plane q=2+pw, row t
        return x_dn[:, pw, :, b:b + wo, :]                # plane q=pw,   row t+1 (kh == 2)

    m = nb * th * wo
    if fuse_taps:
        # cin % 128 == 0: tap chunks land on 128-lane boundaries, so the fused K=9*cin im2col
        # matmul is cheap to assemble and maximally MXU-efficient.
        patches = jnp.concatenate([tap(kh, kw) for kh in range(3) for kw in range(3)], axis=-1)
        acc = jnp.dot(patches.reshape(m, 9 * cin), w_ref[...],
                      preferred_element_type=jnp.float32)
    else:
        # Misaligned cin: 9 per-tap dots with f32 accumulation avoid the lane-misaligned
        # concat and the 9x-input-block patches buffer (also the preferred form on v7x/MRB).
        w = w_ref[...]
        acc = None
        for kh in range(3):
            for kw in range(3):
                k0 = (kh * 3 + kw) * cin
                d = jnp.dot(tap(kh, kw).reshape(m, cin), w[k0:k0 + cin, :],
                            preferred_element_type=jnp.float32)
                acc = d if acc is None else acc + d

    y = acc + shift_ref[...]                              # BatchNorm (inference; scale in weights)
    y = jnp.maximum(y, NEG_SLOPE * y)                     # LeakyReLU(0.01): mul+max, no select
    o_ref[...] = y.reshape(nb, th, wo, cpad).astype(o_ref.dtype)


def _vmem_footprint(nb, th, *, wo, wp, cin, cpad, c_size, o_size, fuse, w_buffers=1):
    """Approximate per-step VMEM bytes: pipelined buffers + in-kernel intermediates."""
    m = nb * th * wo
    in_blk = nb * 4 * th * wp * cin * c_size              # main parity-plane block
    halo_blk = nb * 4 * 1 * wp * cin * c_size             # halo row block
    out_blk = m * cpad * o_size                           # output block
    w_bytes = 9 * cin * cpad * c_size * w_buffers         # weights
    inter = nb * 2 * th * wp * cin * c_size               # shifted ph=0 planes (x_dn)
    inter += m * cpad * 4                                 # f32 accumulator / activation
    if fuse:
        inter += m * 9 * cin * c_size                     # fused im2col patches
    return 2 * (in_blk + halo_blk + out_blk) + w_bytes + cpad * 4 + inter


def _choose_tiling(N, Ho, Wo, Wp, cin, cpad, c_size, o_size, fuse, budget,
                   block_rows=None, images_per_step=None):
    foot = functools.partial(_vmem_footprint, wo=Wo, wp=Wp, cin=cin, cpad=cpad,
                             c_size=c_size, o_size=o_size, fuse=fuse)
    # valid row blocks: divide Ho and are either Ho itself or a multiple of 8
    th_cands = sorted({t for t in range(8, Ho, 8) if Ho % t == 0} | {Ho}, reverse=True)

    if block_rows is not None:
        th = block_rows
    else:
        # largest valid th whose real footprint fits the budget
        # TODO(synk): ragged/padded row-block fallback when no candidate fits.
        th = th_cands[-1]
        for t in th_cands:
            if foot(1, t) <= budget:
                th = t
                break

    if images_per_step is not None:
        nb = images_per_step
    else:
        nb = 1
        for d in sorted((d for d in range(1, N + 1) if N % d == 0), reverse=True):
            if foot(d, th) <= budget:
                nb = d
                break
        # keep the grid >= 2 steps along a "parallel" axis so both v7x TensorCores get work
        if N // nb == 1 and Ho // th == 1:
            if N > 1:
                nb = max(d for d in range(1, N) if N % d == 0)
            elif block_rows is None and len(th_cands) > 1:
                th = th_cands[1]
    return th, nb


def downsample_pallas(x_nchw, w_oihw, gamma, beta, running_mean, running_var,
                      eps=1e-5, *, block_rows=None, images_per_step=None,
                      compute_dtype=jnp.bfloat16, out_dtype=None,
                      fuse_taps=None, input_buffers=None, output_nchw=True):
    N, Cin, H, W = x_nchw.shape
    Cout = w_oihw.shape[0]
    Ho, Wo = (H + 1) // 2, (W + 1) // 2            # conv: k=3, s=2, p=1
    Hp, Wp = Ho + 1, Wo + 1                        # parity-plane extents (include halo row/col)
    cpad = -(-Cout // 128) * 128                   # lane-dense output store
    out_dtype = compute_dtype if out_dtype is None else out_dtype
    if fuse_taps is None:
        fuse_taps = (Cin % 128 == 0)               # fused im2col only when taps are lane-aligned

    # ---- glue (plain JAX): early bf16 cast, NCHW->NHWC, conv/parity pad, space-to-depth ----
    x = jnp.transpose(x_nchw, (0, 2, 3, 1)).astype(compute_dtype)
    x = jnp.pad(x, ((0, 0), (1, 2 * Hp - H - 1), (1, 2 * Wp - W - 1), (0, 0)))
    # parity planes: planes[n, 2*ph+pw, i, j, c] == x_pad[n, 2i+ph, 2j+pw, c]
    planes = x.reshape(N, Hp, 2, Wp, 2, Cin).transpose(0, 2, 4, 1, 3, 5).reshape(N, 4, Hp, Wp, Cin)

    # ---- fold BatchNorm (inference) into the conv weights + a per-channel shift (f32) ----
    inv_std = 1.0 / jnp.sqrt(running_var.astype(jnp.float32) + eps)
    scale = gamma.astype(jnp.float32) * inv_std
    shift = beta.astype(jnp.float32) - running_mean.astype(jnp.float32) * scale
    w = jnp.transpose(w_oihw, (2, 3, 1, 0)).reshape(9 * Cin, Cout)       # row=(kh*3+kw)*Cin+ci
    w = w.astype(jnp.float32) * scale[None, :]                           # fold scale before cast
    w = jnp.pad(w, ((0, 0), (0, cpad - Cout))).astype(compute_dtype)
    shift = jnp.pad(shift, (0, cpad - Cout)).reshape(1, cpad)

    # ---- generation-aware tiling: real per-step footprint vs. this chip's VMEM capacity ----
    c_size = jnp.dtype(compute_dtype).itemsize
    o_size = jnp.dtype(out_dtype).itemsize
    try:
        vmem_cap = int(pltpu.get_tpu_info().vmem_capacity_bytes)   # 128 MiB v5e/v6e, 64 MiB v7x
    except Exception:
        vmem_cap = 64 << 20
    budget = vmem_cap // 2
    th, nb = _choose_tiling(N, Ho, Wo, Wp, Cin, cpad, c_size, o_size, fuse_taps, budget,
                            block_rows=block_rows, images_per_step=images_per_step)
    assert Ho % th == 0 and (th == Ho or th % 8 == 0), (Ho, th)
    assert N % nb == 0, (N, nb)
    n_rb = Ho // th
    foot = _vmem_footprint(nb, th, wo=Wo, wp=Wp, cin=Cin, cpad=cpad,
                           c_size=c_size, o_size=o_size, fuse=fuse_taps)
    vmem_limit = int(min(vmem_cap * 9 // 10, max(32 << 20, 2 * foot)))

    kernel = functools.partial(_downsample_kernel, nb=nb, th=th, wo=Wo, cin=Cin,
                               cpad=cpad, fuse_taps=fuse_taps)

    def _call(single_buffer_consts):
        # weights/shift have a constant index map -> single-buffer them (saves a full second
        # weight copy, ~9 MB for Cin=512/Cout=1024); fall back to default double buffering if
        # pipeline_mode=pl.Buffered(1) is not accepted by this jax/libtpu.
        const_pm = {"pipeline_mode": pl.Buffered(1)} if single_buffer_consts else {}
        main_pm = {"pipeline_mode": pl.Buffered(input_buffers)} if input_buffers else {}
        in_specs = [
            # main rows of the 4 parity planes for this (image block, row block)
            pl.BlockSpec((nb, 4, th, Wp, Cin), lambda b, r: (b, 0, r, 0, 0), **main_pm),
            # +1 plane-row halo (same array; 1-row block => block index == element row)
            pl.BlockSpec((nb, 4, 1, Wp, Cin), lambda b, r: (b, 0, (r + 1) * th, 0, 0)),
            pl.BlockSpec((9 * Cin, cpad), lambda b, r: (0, 0), **const_pm),
            pl.BlockSpec((1, cpad), lambda b, r: (0, 0), **const_pm),
        ]
        return pl.pallas_call(
            kernel,
            out_shape=jax.ShapeDtypeStruct((N, Ho, Wo, cpad), out_dtype),
            grid_spec=pltpu.PrefetchScalarGridSpec(
                num_scalar_prefetch=0,
                grid=(N // nb, n_rb),
                in_specs=in_specs,
                out_specs=pl.BlockSpec((nb, th, Wo, cpad), lambda b, r: (b, r, 0, 0)),
            ),
            compiler_params=pltpu.CompilerParams(
                dimension_semantics=("parallel", "parallel"),
                vmem_limit_bytes=vmem_limit),
        )(planes, planes, w, shift)

    try:
        out = _call(True)
    except Exception:            # pipeline_mode=Buffered(1) unsupported -> default buffering
        out = _call(False)

    out = out[..., :Cout] if cpad != Cout else out
    return jnp.transpose(out, (0, 3, 1, 2)) if output_nchw else out     # NHWC -> NCHW


if __name__ == "__main__":
    N, Cin, Cout, H, W = 2, 4, 8, 32, 32
    key = jax.random.PRNGKey(0)
    k1, k2, k3, k4, k5, k6 = jax.random.split(key, 6)

    # deterministic synthetic parameters (shapes follow the module __init__)
    x = jax.random.normal(k1, (N, Cin, H, W), jnp.float32)
    w = jax.random.normal(k2, (Cout, Cin, 3, 3), jnp.float32) * 0.1        # conv weight, bias=False
    gamma = 1.0 + 0.1 * jax.random.normal(k3, (Cout,), jnp.float32)        # bn.weight
    beta = 0.1 * jax.random.normal(k4, (Cout,), jnp.float32)               # bn.bias
    rmean = 0.1 * jax.random.normal(k5, (Cout,), jnp.float32)              # bn.running_mean
    rvar = 1.0 + 0.1 * jnp.abs(jax.random.normal(k6, (Cout,), jnp.float32))  # bn.running_var

    # block_rows=8 -> 2 output-row blocks; the images_per_step picker chooses 2, so the grid is
    # (1, 2) and both the image batching and the halo row-tiling paths are exercised.
    out = downsample_pallas(x, w, gamma, beta, rmean, rvar, block_rows=8)
    out = jax.block_until_ready(out)

    # pure-JAX f32 reference for correctness
    eps = 1e-5
    ref = jax.lax.conv_general_dilated(
        x, w, window_strides=(2, 2), padding=((1, 1), (1, 1)),
        dimension_numbers=("NCHW", "OIHW", "NCHW"),
    )
    inv_std = 1.0 / jnp.sqrt(rvar + eps)
    ref = ref * (gamma * inv_std).reshape(1, Cout, 1, 1) + (
        beta - rmean * gamma * inv_std
    ).reshape(1, Cout, 1, 1)
    ref = jnp.maximum(ref, NEG_SLOPE * ref)

    assert out.shape == (N, Cout, H // 2, W // 2), out.shape
    # bf16 matmul operands + bf16 output (f32 accumulation) -> bf16-level tolerance.
    # Pass compute_dtype=out_dtype=jnp.float32 to downsample_pallas for ~1e-5 agreement.
    out_f32 = out.astype(jnp.float32)
    err = float(jnp.max(jnp.abs(out_f32 - ref)))
    assert jnp.allclose(out_f32, ref, atol=5e-2, rtol=5e-2), err
    print("KERNEL_OK")
</pallas_src>

<mosaic_0001>
module attributes {stable_mosaic.version = 11 : i64} {
  func.func @_downsample_kernel(%arg0: i32, %arg1: i32, %arg2: memref<2x4x8x17x4xbf16, #tpu.memory_space<vmem>>, %arg3: memref<2x4x1x17x4xbf16, #tpu.memory_space<vmem>>, %arg4: memref<36x128xbf16, #tpu.memory_space<vmem>>, %arg5: memref<1x128xf32, #tpu.memory_space<vmem>>, %arg6: memref<2x8x16x128xbf16, #tpu.memory_space<vmem>>) attributes {dimension_semantics = [#tpu.dimension_semantics<parallel>, #tpu.dimension_semantics<parallel>], iteration_bounds = array<i64: 1, 2>, scalar_prefetch = 0 : i64, scratch_operands = 0 : i64, tpu.core_type = #tpu.core_type<tc>, window_params = [{transform_indices = @transform_0, window_bounds = array<i64: 2, 4, 8, 17, 4>}, {transform_indices = @transform_1, window_bounds = array<i64: 2, 4, 1, 17, 4>}, {pipeline_mode = #tpu.pipeline_mode<synchronous>, transform_indices = @transform_2, window_bounds = array<i64: 36, 128>}, {pipeline_mode = #tpu.pipeline_mode<synchronous>, transform_indices = @transform_3, window_bounds = array<i64: 1, 128>}, {transform_indices = @transform_4, window_bounds = array<i64: 2, 8, 16, 128>}]} {
    %c0 = arith.constant 0 : index
    %c0_0 = arith.constant 0 : index
    %c0_1 = arith.constant 0 : index
    %c0_2 = arith.constant 0 : index
    %c0_3 = arith.constant 0 : index
    %0 = vector.load %arg2[%c0, %c0_0, %c0_1, %c0_2, %c0_3] : memref<2x4x8x17x4xbf16, #tpu.memory_space<vmem>>, vector<2x4x8x17x4xbf16>
    %c0_4 = arith.constant 0 : index
    %c0_5 = arith.constant 0 : index
    %c0_6 = arith.constant 0 : index
    %c0_7 = arith.constant 0 : index
    %c0_8 = arith.constant 0 : index
    %1 = vector.load %arg3[%c0_4, %c0_5, %c0_6, %c0_7, %c0_8] : memref<2x4x1x17x4xbf16, #tpu.memory_space<vmem>>, vector<2x4x1x17x4xbf16>
    %2 = vector.extract_strided_slice %0 {offsets = [0, 0, 1, 0, 0], sizes = [2, 2, 7, 17, 4], strides = [1, 1, 1, 1, 1]} : vector<2x4x8x17x4xbf16> to vector<2x2x7x17x4xbf16>
    %3 = vector.extract_strided_slice %1 {offsets = [0, 0, 0, 0, 0], sizes = [2, 2, 1, 17, 4], strides = [1, 1, 1, 1, 1]} : vector<2x4x1x17x4xbf16> to vector<2x2x1x17x4xbf16>
    %4 = tpu.concatenate %2, %3 in 2 : vector<2x2x7x17x4xbf16>, vector<2x2x1x17x4xbf16> -> vector<2x2x8x17x4xbf16>
    %c0_9 = arith.constant 0 : index
    %c0_10 = arith.constant 0 : index
    %5 = vector.load %arg4[%c0_9, %c0_10] : memref<36x128xbf16, #tpu.memory_space<vmem>>, vector<36x128xbf16>
    %6 = vector.extract_strided_slice %0 {offsets = [0, 0, 0, 0, 0], sizes = [2, 1, 8, 16, 4], strides = [1, 1, 1, 1, 1]} : vector<2x4x8x17x4xbf16> to vector<2x1x8x16x4xbf16>
    %7 = vector.shape_cast %6 : vector<2x1x8x16x4xbf16> to vector<2x8x16x4xbf16>
    %8 = vector.shape_cast %7 : vector<2x8x16x4xbf16> to vector<256x4xbf16>
    %9 = vector.extract_strided_slice %5 {offsets = [0, 0], sizes = [4, 128], strides = [1, 1]} : vector<36x128xbf16> to vector<4x128xbf16>
    %cst = arith.constant dense<0.000000e+00> : vector<256x128xf32>
    %10 = tpu.matmul %8, %9, %cst {dimension_numbers = #tpu.dot_dimension_numbers<[1], [0], [0], [1], [0, 0, 1, 1], [], []>} : vector<256x4xbf16>, vector<4x128xbf16>, vector<256x128xf32> -> vector<256x128xf32>
    %11 = vector.extract_strided_slice %0 {offsets = [0, 1, 0, 0, 0], sizes = [2, 1, 8, 16, 4], strides = [1, 1, 1, 1, 1]} : vector<2x4x8x17x4xbf16> to vector<2x1x8x16x4xbf16>
    %12 = vector.shape_cast %11 : vector<2x1x8x16x4xbf16> to vector<2x8x16x4xbf16>
    %13 = vector.shape_cast %12 : vector<2x8x16x4xbf16> to vector<256x4xbf16>
    %14 = vector.extract_strided_slice %5 {offsets = [4, 0], sizes = [4, 128], strides = [1, 1]} : vector<36x128xbf16> to vector<4x128xbf16>
    %cst_11 = arith.constant dense<0.000000e+00> : vector<256x128xf32>
    %15 = tpu.matmul %13, %14, %cst_11 {dimension_numbers = #tpu.dot_dimension_numbers<[1], [0], [0], [1], [0, 0, 1, 1], [], []>} : vector<256x4xbf16>, vector<4x128xbf16>, vector<256x128xf32> -> vector<256x128xf32>
    %16 = arith.addf %10, %15 : vector<256x128xf32>
    %17 = vector.extract_strided_slice %0 {offsets = [0, 0, 0, 1, 0], sizes = [2, 1, 8, 16, 4], strides = [1, 1, 1, 1, 1]} : vector<2x4x8x17x4xbf16> to vector<2x1x8x16x4xbf16>
    %18 = vector.shape_cast %17 : vector<2x1x8x16x4xbf16> to vector<2x8x16x4xbf16>
    %19 = vector.shape_cast %18 : vector<2x8x16x4xbf16> to vector<256x4xbf16>
    %20 = vector.extract_strided_slice %5 {offsets = [8, 0], sizes = [4, 128], strides = [1, 1]} : vector<36x128xbf16> to vector<4x128xbf16>
    %cst_12 = arith.constant dense<0.000000e+00> : vector<256x128xf32>
    %21 = tpu.matmul %19, %20, %cst_12 {dimension_numbers = #tpu.dot_dimension_numbers<[1], [0], [0], [1], [0, 0, 1, 1], [], []>} : vector<256x4xbf16>, vector<4x128xbf16>, vector<256x128xf32> -> vector<256x128xf32>
    %22 = arith.addf %16, %21 : vector<256x128xf32>
    %23 = vector.extract_strided_slice %0 {offsets = [0, 2, 0, 0, 0], sizes = [2, 1, 8, 16, 4], strides = [1, 1, 1, 1, 1]} : vector<2x4x8x17x4xbf16> to vector<2x1x8x16x4xbf16>
    %24 = vector.shape_cast %23 : vector<2x1x8x16x4xbf16> to vector<2x8x16x4xbf16>
    %25 = vector.shape_cast %24 : vector<2x8x16x4xbf16> to vector<256x4xbf16>
    %26 = vector.extract_strided_slice %5 {offsets = [12, 0], sizes = [4, 128], strides = [1, 1]} : vector<36x128xbf16> to vector<4x128xbf16>
    %cst_13 = arith.constant dense<0.000000e+00> : vector<256x128xf32>
    %27 = tpu.matmul %25, %26, %cst_13 {dimension_numbers = #tpu.dot_dimension_numbers<[1], [0], [0], [1], [0, 0, 1, 1], [], []>} : vector<256x4xbf16>, vector<4x128xbf16>, vector<256x128xf32> -> vector<256x128xf32>
    %28 = arith.addf %22, %27 : vector<256x128xf32>
    %29 = vector.extract_strided_slice %0 {offsets = [0, 3, 0, 0, 0], sizes = [2, 1, 8, 16, 4], strides = [1, 1, 1, 1, 1]} : vector<2x4x8x17x4xbf16> to vector<2x1x8x16x4xbf16>
    %30 = vector.shape_cast %29 : vector<2x1x8x16x4xbf16> to vector<2x8x16x4xbf16>
    %31 = vector.shape_cast %30 : vector<2x8x16x4xbf16> to vector<256x4xbf16>
    %32 = vector.extract_strided_slice %5 {offsets = [16, 0], sizes = [4, 128], strides = [1, 1]} : vector<36x128xbf16> to vector<4x128xbf16>
    %cst_14 = arith.constant dense<0.000000e+00> : vector<256x128xf32>
    %33 = tpu.matmul %31, %32, %cst_14 {dimension_numbers = #tpu.dot_dimension_numbers<[1], [0], [0], [1], [0, 0, 1, 1], [], []>} : vector<256x4xbf16>, vector<4x128xbf16>, vector<256x128xf32> -> vector<256x128xf32>
    %34 = arith.addf %28, %33 : vector<256x128xf32>
    %35 = vector.extract_strided_slice %0 {offsets = [0, 2, 0, 1, 0], sizes = [2, 1, 8, 16, 4], strides = [1, 1, 1, 1, 1]} : vector<2x4x8x17x4xbf16> to vector<2x1x8x16x4xbf16>
    %36 = vector.shape_cast %35 : vector<2x1x8x16x4xbf16> to vector<2x8x16x4xbf16>
    %37 = vector.shape_cast %36 : vector<2x8x16x4xbf16> to vector<256x4xbf16>
    %38 = vector.extract_strided_slice %5 {offsets = [20, 0], sizes = [4, 128], strides = [1, 1]} : vector<36x128xbf16> to vector<4x128xbf16>
    %cst_15 = arith.constant dense<0.000000e+00> : vector<256x128xf32>
    %39 = tpu.matmul %37, %38, %cst_15 {dimension_numbers = #tpu.dot_dimension_numbers<[1], [0], [0], [1], [0, 0, 1, 1], [], []>} : vector<256x4xbf16>, vector<4x128xbf16>, vector<256x128xf32> -> vector<256x128xf32>
    %40 = arith.addf %34, %39 : vector<256x128xf32>
    %41 = vector.extract_strided_slice %4 {offsets = [0, 0, 0, 0, 0], sizes = [2, 1, 8, 16, 4], strides = [1, 1, 1, 1, 1]} : vector<2x2x8x17x4xbf16> to vector<2x1x8x16x4xbf16>
    %42 = vector.shape_cast %41 : vector<2x1x8x16x4xbf16> to vector<2x8x16x4xbf16>
    %43 = vector.shape_cast %42 : vector<2x8x16x4xbf16> to vector<256x4xbf16>
    %44 = vector.extract_strided_slice %5 {offsets = [24, 0], sizes = [4, 128], strides = [1, 1]} : vector<36x128xbf16> to vector<4x128xbf16>
    %cst_16 = arith.constant dense<0.000000e+00> : vector<256x128xf32>
    %45 = tpu.matmul %43, %44, %cst_16 {dimension_numbers = #tpu.dot_dimension_numbers<[1], [0], [0], [1], [0, 0, 1, 1], [], []>} : vector<256x4xbf16>, vector<4x128xbf16>, vector<256x128xf32> -> vector<256x128xf32>
    %46 = arith.addf %40, %45 : vector<256x128xf32>
    %47 = vector.extract_strided_slice %4 {offsets = [0, 1, 0, 0, 0], sizes = [2, 1, 8, 16, 4], strides = [1, 1, 1, 1, 1]} : vector<2x2x8x17x4xbf16> to vector<2x1x8x16x4xbf16>
    %48 = vector.shape_cast %47 : vector<2x1x8x16x4xbf16> to vector<2x8x16x4xbf16>
    %49 = vector.shape_cast %48 : vector<2x8x16x4xbf16> to vector<256x4xbf16>
    %50 = vector.extract_strided_slice %5 {offsets = [28, 0], sizes = [4, 128], strides = [1, 1]} : vector<36x128xbf16> to vector<4x128xbf16>
    %cst_17 = arith.constant dense<0.000000e+00> : vector<256x128xf32>
    %51 = tpu.matmul %49, %50, %cst_17 {dimension_numbers = #tpu.dot_dimension_numbers<[1], [0], [0], [1], [0, 0, 1, 1], [], []>} : vector<256x4xbf16>, vector<4x128xbf16>, vector<256x128xf32> -> vector<256x128xf32>
    %52 = arith.addf %46, %51 : vector<256x128xf32>
    %53 = vector.extract_strided_slice %4 {offsets = [0, 0, 0, 1, 0], sizes = [2, 1, 8, 16, 4], strides = [1, 1, 1, 1, 1]} : vector<2x2x8x17x4xbf16> to vector<2x1x8x16x4xbf16>
    %54 = vector.shape_cast %53 : vector<2x1x8x16x4xbf16> to vector<2x8x16x4xbf16>
    %55 = vector.shape_cast %54 : vector<2x8x16x4xbf16> to vector<256x4xbf16>
    %56 = vector.extract_strided_slice %5 {offsets = [32, 0], sizes = [4, 128], strides = [1, 1]} : vector<36x128xbf16> to vector<4x128xbf16>
    %cst_18 = arith.constant dense<0.000000e+00> : vector<256x128xf32>
    %57 = tpu.matmul %55, %56, %cst_18 {dimension_numbers = #tpu.dot_dimension_numbers<[1], [0], [0], [1], [0, 0, 1, 1], [], []>} : vector<256x4xbf16>, vector<4x128xbf16>, vector<256x128xf32> -> vector<256x128xf32>
    %58 = arith.addf %52, %57 : vector<256x128xf32>
    %c0_19 = arith.constant 0 : index
    %c0_20 = arith.constant 0 : index
    %59 = vector.load %arg5[%c0_19, %c0_20] : memref<1x128xf32, #tpu.memory_space<vmem>>, vector<1x128xf32>
    %60 = vector.broadcast %59 : vector<1x128xf32> to vector<256x128xf32>
    %61 = arith.addf %58, %60 : vector<256x128xf32>
    %cst_21 = arith.constant 0.00999999977 : f32
    %62 = vector.broadcast %cst_21 : f32 to vector<256x128xf32>
    %63 = arith.mulf %62, %61 : vector<256x128xf32>
    %64 = arith.maximumf %61, %63 : vector<256x128xf32>
    %65 = vector.shape_cast %64 : vector<256x128xf32> to vector<2x8x16x128xf32>
    %66 = arith.truncf %65 : vector<2x8x16x128xf32> to vector<2x8x16x128xbf16>
    %c0_22 = arith.constant 0 : index
    %c0_23 = arith.constant 0 : index
    %c0_24 = arith.constant 0 : index
    %c0_25 = arith.constant 0 : index
    %67 = vector.load %arg6[%c0_22, %c0_23, %c0_24, %c0_25] : memref<2x8x16x128xbf16, #tpu.memory_space<vmem>>, vector<2x8x16x128xbf16>
    tpu.vector_store %arg6[%c0_22, %c0_23, %c0_24, %c0_25], %66 {strides = array<i32>} : memref<2x8x16x128xbf16, #tpu.memory_space<vmem>>, vector<2x8x16x128xbf16>,
    return
  }
  func.func @transform_0(%arg0: i32, %arg1: i32) -> (i32, i32, i32, i32, i32) {
    %c0_i32 = arith.constant 0 : i32
    %c0_i32_0 = arith.constant 0 : i32
    %c0_i32_1 = arith.constant 0 : i32
    %c0_i32_2 = arith.constant 0 : i32
    return %arg0, %c0_i32, %arg1, %c0_i32_0, %c0_i32_1 : i32, i32, i32, i32, i32
  }
  func.func @transform_1(%arg0: i32, %arg1: i32) -> (i32, i32, i32, i32, i32) {
    %c1_i32 = arith.constant 1 : i32
    %0 = arith.addi %arg1, %c1_i32 : i32
    %c8_i32 = arith.constant 8 : i32
    %1 = arith.muli %0, %c8_i32 : i32
    %c0_i32 = arith.constant 0 : i32
    %c0_i32_0 = arith.constant 0 : i32
    %c0_i32_1 = arith.constant 0 : i32
    %c0_i32_2 = arith.constant 0 : i32
    return %arg0, %c0_i32, %1, %c0_i32_0, %c0_i32_1 : i32, i32, i32, i32, i32
  }
  func.func @transform_2(%arg0: i32, %arg1: i32) -> (i32, i32) {
    %c0_i32 = arith.constant 0 : i32
    %c0_i32_0 = arith.constant 0 : i32
    %c0_i32_1 = arith.constant 0 : i32
    return %c0_i32, %c0_i32_0 : i32, i32
  }
  func.func @transform_3(%arg0: i32, %arg1: i32) -> (i32, i32) {
    %c0_i32 = arith.constant 0 : i32
    %c0_i32_0 = arith.constant 0 : i32
    %c0_i32_1 = arith.constant 0 : i32
    return %c0_i32, %c0_i32_0 : i32, i32
  }
  func.func @transform_4(%arg0: i32, %arg1: i32) -> (i32, i32, i32, i32) {
    %c0_i32 = arith.constant 0 : i32
    %c0_i32_0 = arith.constant 0 : i32
    %c0_i32_1 = arith.constant 0 : i32
    return %arg0, %arg1, %c0_i32, %c0_i32_0 : i32, i32, i32, i32
  }
}

module attributes {stable_mosaic.version = 11 : i64} {
  func.func @_downsample_kernel(%arg0: i32, %arg1: i32, %arg2: memref<2x4x8x17x4xbf16, #tpu.memory_space<vmem>>, %arg3: memref<2x4x1x17x4xbf16, #tpu.memory_space<vmem>>, %arg4: memref<36x128xbf16, #tpu.memory_space<vmem>>, %arg5: memref<1x128xf32, #tpu.memory_space<vmem>>, %arg6: memref<2x8x16x128xbf16, #tpu.memory_space<vmem>>) attributes {dimension_semantics = [#tpu.dimension_semantics<parallel>, #tpu.dimension_semantics<parallel>], iteration_bounds = array<i64: 1, 2>, scalar_prefetch = 0 : i64, scratch_operands = 0 : i64, tpu.core_type = #tpu.core_type<tc>, window_params = [{transform_indices = @transform_0, window_bounds = array<i64: 2, 4, 8, 17, 4>}, {transform_indices = @transform_1, window_bounds = array<i64: 2, 4, 1, 17, 4>}, {pipeline_mode = #tpu.pipeline_mode<synchronous>, transform_indices = @transform_2, window_bounds = array<i64: 36, 128>}, {pipeline_mode = #tpu.pipeline_mode<synchronous>, transform_indices = @transform_3, window_bounds = array<i64: 1, 128>}, {transform_indices = @transform_4, window_bounds = array<i64: 2, 8, 16, 128>}]} {
    %c0 = arith.constant 0 : index
    %c0_0 = arith.constant 0 : index
    %c0_1 = arith.constant 0 : index
    %c0_2 = arith.constant 0 : index
    %c0_3 = arith.constant 0 : index
    %0 = vector.load %arg2[%c0, %c0_0, %c0_1, %c0_2, %c0_3] : memref<2x4x8x17x4xbf16, #tpu.memory_space<vmem>>, vector<2x4x8x17x4xbf16>
    %c0_4 = arith.constant 0 : index
    %c0_5 = arith.constant 0 : index
    %c0_6 = arith.constant 0 : index
    %c0_7 = arith.constant 0 : index
    %c0_8 = arith.constant 0 : index
    %1 = vector.load %arg3[%c0_4, %c0_5, %c0_6, %c0_7, %c0_8] : memref<2x4x1x17x4xbf16, #tpu.memory_space<vmem>>, vector<2x4x1x17x4xbf16>
    %2 = vector.extract_strided_slice %0 {offsets = [0, 0, 1, 0, 0], sizes = [2, 2, 7, 17, 4], strides = [1, 1, 1, 1, 1]} : vector<2x4x8x17x4xbf16> to vector<2x2x7x17x4xbf16>
    %3 = vector.extract_strided_slice %1 {offsets = [0, 0, 0, 0, 0], sizes = [2, 2, 1, 17, 4], strides = [1, 1, 1, 1, 1]} : vector<2x4x1x17x4xbf16> to vector<2x2x1x17x4xbf16>
    %4 = tpu.concatenate %2, %3 in 2 : vector<2x2x7x17x4xbf16>, vector<2x2x1x17x4xbf16> -> vector<2x2x8x17x4xbf16>
    %c0_9 = arith.constant 0 : index
    %c0_10 = arith.constant 0 : index
    %5 = vector.load %arg4[%c0_9, %c0_10] : memref<36x128xbf16, #tpu.memory_space<vmem>>, vector<36x128xbf16>
    %6 = vector.extract_strided_slice %0 {offsets = [0, 0, 0, 0, 0], sizes = [2, 1, 8, 16, 4], strides = [1, 1, 1, 1, 1]} : vector<2x4x8x17x4xbf16> to vector<2x1x8x16x4xbf16>
    %7 = vector.shape_cast %6 : vector<2x1x8x16x4xbf16> to vector<2x8x16x4xbf16>
    %8 = vector.shape_cast %7 : vector<2x8x16x4xbf16> to vector<256x4xbf16>
    %9 = vector.extract_strided_slice %5 {offsets = [0, 0], sizes = [4, 128], strides = [1, 1]} : vector<36x128xbf16> to vector<4x128xbf16>
    %cst = arith.constant dense<0.000000e+00> : vector<256x128xf32>
    %10 = tpu.matmul %8, %9, %cst {dimension_numbers = #tpu.dot_dimension_numbers<[1], [0], [0], [1], [0, 0, 1, 1], [], []>} : vector<256x4xbf16>, vector<4x128xbf16>, vector<256x128xf32> -> vector<256x128xf32>
    %11 = vector.extract_strided_slice %0 {offsets = [0, 1, 0, 0, 0], sizes = [2, 1, 8, 16, 4], strides = [1, 1, 1, 1, 1]} : vector<2x4x8x17x4xbf16> to vector<2x1x8x16x4xbf16>
    %12 = vector.shape_cast %11 : vector<2x1x8x16x4xbf16> to vector<2x8x16x4xbf16>
    %13 = vector.shape_cast %12 : vector<2x8x16x4xbf16> to vector<256x4xbf16>
    %14 = vector.extract_strided_slice %5 {offsets = [4, 0], sizes = [4, 128], strides = [1, 1]} : vector<36x128xbf16> to vector<4x128xbf16>
    %cst_11 = arith.constant dense<0.000000e+00> : vector<256x128xf32>
    %15 = tpu.matmul %13, %14, %cst_11 {dimension_numbers = #tpu.dot_dimension_numbers<[1], [0], [0], [1], [0, 0, 1, 1], [], []>} : vector<256x4xbf16>, vector<4x128xbf16>, vector<256x128xf32> -> vector<256x128xf32>
    %16 = arith.addf %10, %15 : vector<256x128xf32>
    %17 = vector.extract_strided_slice %0 {offsets = [0, 0, 0, 1, 0], sizes = [2, 1, 8, 16, 4], strides = [1, 1, 1, 1, 1]} : vector<2x4x8x17x4xbf16> to vector<2x1x8x16x4xbf16>
    %18 = vector.shape_cast %17 : vector<2x1x8x16x4xbf16> to vector<2x8x16x4xbf16>
    %19 = vector.shape_cast %18 : vector<2x8x16x4xbf16> to vector<256x4xbf16>
    %20 = vector.extract_strided_slice %5 {offsets = [8, 0], sizes = [4, 128], strides = [1, 1]} : vector<36x128xbf16> to vector<4x128xbf16>
    %cst_12 = arith.constant dense<0.000000e+00> : vector<256x128xf32>
    %21 = tpu.matmul %19, %20, %cst_12 {dimension_numbers = #tpu.dot_dimension_numbers<[1], [0], [0], [1], [0, 0, 1, 1], [], []>} : vector<256x4xbf16>, vector<4x128xbf16>, vector<256x128xf32> -> vector<256x128xf32>
    %22 = arith.addf %16, %21 : vector<256x128xf32>
    %23 = vector.extract_strided_slice %0 {offsets = [0, 2, 0, 0, 0], sizes = [2, 1, 8, 16, 4], strides = [1, 1, 1, 1, 1]} : vector<2x4x8x17x4xbf16> to vector<2x1x8x16x4xbf16>
    %24 = vector.shape_cast %23 : vector<2x1x8x16x4xbf16> to vector<2x8x16x4xbf16>
    %25 = vector.shape_cast %24 : vector<2x8x16x4xbf16> to vector<256x4xbf16>
    %26 = vector.extract_strided_slice %5 {offsets = [12, 0], sizes = [4, 128], strides = [1, 1]} : vector<36x128xbf16> to vector<4x128xbf16>
    %cst_13 = arith.constant dense<0.000000e+00> : vector<256x128xf32>
    %27 = tpu.matmul %25, %26, %cst_13 {dimension_numbers = #tpu.dot_dimension_numbers<[1], [0], [0], [1], [0, 0, 1, 1], [], []>} : vector<256x4xbf16>, vector<4x128xbf16>, vector<256x128xf32> -> vector<256x128xf32>
    %28 = arith.addf %22, %27 : vector<256x128xf32>
    %29 = vector.extract_strided_slice %0 {offsets = [0, 3, 0, 0, 0], sizes = [2, 1, 8, 16, 4], strides = [1, 1, 1, 1, 1]} : vector<2x4x8x17x4xbf16> to vector<2x1x8x16x4xbf16>
    %30 = vector.shape_cast %29 : vector<2x1x8x16x4xbf16> to vector<2x8x16x4xbf16>
    %31 = vector.shape_cast %30 : vector<2x8x16x4xbf16> to vector<256x4xbf16>
    %32 = vector.extract_strided_slice %5 {offsets = [16, 0], sizes = [4, 128], strides = [1, 1]} : vector<36x128xbf16> to vector<4x128xbf16>
    %cst_14 = arith.constant dense<0.000000e+00> : vector<256x128xf32>
    %33 = tpu.matmul %31, %32, %cst_14 {dimension_numbers = #tpu.dot_dimension_numbers<[1], [0], [0], [1], [0, 0, 1, 1], [], []>} : vector<256x4xbf16>, vector<4x128xbf16>, vector<256x128xf32> -> vector<256x128xf32>
    %34 = arith.addf %28, %33 : vector<256x128xf32>
    %35 = vector.extract_strided_slice %0 {offsets = [0, 2, 0, 1, 0], sizes = [2, 1, 8, 16, 4], strides = [1, 1, 1, 1, 1]} : vector<2x4x8x17x4xbf16> to vector<2x1x8x16x4xbf16>
    %36 = vector.shape_cast %35 : vector<2x1x8x16x4xbf16> to vector<2x8x16x4xbf16>
    %37 = vector.shape_cast %36 : vector<2x8x16x4xbf16> to vector<256x4xbf16>
    %38 = vector.extract_strided_slice %5 {offsets = [20, 0], sizes = [4, 128], strides = [1, 1]} : vector<36x128xbf16> to vector<4x128xbf16>
    %cst_15 = arith.constant dense<0.000000e+00> : vector<256x128xf32>
    %39 = tpu.matmul %37, %38, %cst_15 {dimension_numbers = #tpu.dot_dimension_numbers<[1], [0], [0], [1], [0, 0, 1, 1], [], []>} : vector<256x4xbf16>, vector<4x128xbf16>, vector<256x128xf32> -> vector<256x128xf32>
    %40 = arith.addf %34, %39 : vector<256x128xf32>
    %41 = vector.extract_strided_slice %4 {offsets = [0, 0, 0, 0, 0], sizes = [2, 1, 8, 16, 4], strides = [1, 1, 1, 1, 1]} : vector<2x2x8x17x4xbf16> to vector<2x1x8x16x4xbf16>
    %42 = vector.shape_cast %41 : vector<2x1x8x16x4xbf16> to vector<2x8x16x4xbf16>
    %43 = vector.shape_cast %42 : vector<2x8x16x4xbf16> to vector<256x4xbf16>
    %44 = vector.extract_strided_slice %5 {offsets = [24, 0], sizes = [4, 128], strides = [1, 1]} : vector<36x128xbf16> to vector<4x128xbf16>
    %cst_16 = arith.constant dense<0.000000e+00> : vector<256x128xf32>
    %45 = tpu.matmul %43, %44, %cst_16 {dimension_numbers = #tpu.dot_dimension_numbers<[1], [0], [0], [1], [0, 0, 1, 1], [], []>} : vector<256x4xbf16>, vector<4x128xbf16>, vector<256x128xf32> -> vector<256x128xf32>
    %46 = arith.addf %40, %45 : vector<256x128xf32>
    %47 = vector.extract_strided_slice %4 {offsets = [0, 1, 0, 0, 0], sizes = [2, 1, 8, 16, 4], strides = [1, 1, 1, 1, 1]} : vector<2x2x8x17x4xbf16> to vector<2x1x8x16x4xbf16>
    %48 = vector.shape_cast %47 : vector<2x1x8x16x4xbf16> to vector<2x8x16x4xbf16>
    %49 = vector.shape_cast %48 : vector<2x8x16x4xbf16> to vector<256x4xbf16>
    %50 = vector.extract_strided_slice %5 {offsets = [28, 0], sizes = [4, 128], strides = [1, 1]} : vector<36x128xbf16> to vector<4x128xbf16>
    %cst_17 = arith.constant dense<0.000000e+00> : vector<256x128xf32>
    %51 = tpu.matmul %49, %50, %cst_17 {dimension_numbers = #tpu.dot_dimension_numbers<[1], [0], [0], [1], [0, 0, 1, 1], [], []>} : vector<256x4xbf16>, vector<4x128xbf16>, vector<256x128xf32> -> vector<256x128xf32>
    %52 = arith.addf %46, %51 : vector<256x128xf32>
    %53 = vector.extract_strided_slice %4 {offsets = [0, 0, 0, 1, 0], sizes = [2, 1, 8, 16, 4], strides = [1, 1, 1, 1, 1]} : vector<2x2x8x17x4xbf16> to vector<2x1x8x16x4xbf16>
    %54 = vector.shape_cast %53 : vector<2x1x8x16x4xbf16> to vector<2x8x16x4xbf16>
    %55 = vector.shape_cast %54 : vector<2x8x16x4xbf16> to vector<256x4xbf16>
    %56 = vector.extract_strided_slice %5 {offsets = [32, 0], sizes = [4, 128], strides = [1, 1]} : vector<36x128xbf16> to vector<4x128xbf16>
    %cst_18 = arith.constant dense<0.000000e+00> : vector<256x128xf32>
    %57 = tpu.matmul %55, %56, %cst_18 {dimension_numbers = #tpu.dot_dimension_numbers<[1], [0], [0], [1], [0, 0, 1, 1], [], []>} : vector<256x4xbf16>, vector<4x128xbf16>, vector<256x128xf32> -> vector<256x128xf32>
    %58 = arith.addf %52, %57 : vector<256x128xf32>
    %c0_19 = arith.constant 0 : index
    %c0_20 = arith.constant 0 : index
    %59 = vector.load %arg5[%c0_19, %c0_20] : memref<1x128xf32, #tpu.memory_space<vmem>>, vector<1x128xf32>
    %60 = vector.broadcast %59 : vector<1x128xf32> to vector<256x128xf32>
    %61 = arith.addf %58, %60 : vector<256x128xf32>
    %cst_21 = arith.constant 0.00999999977 : f32
    %62 = vector.broadcast %cst_21 : f32 to vector<256x128xf32>
    %63 = arith.mulf %62, %61 : vector<256x128xf32>
    %64 = arith.maximumf %61, %63 : vector<256x128xf32>
    %65 = vector.shape_cast %64 : vector<256x128xf32> to vector<2x8x16x128xf32>
    %66 = arith.truncf %65 : vector<2x8x16x128xf32> to vector<2x8x16x128xbf16>
    %c0_22 = arith.constant 0 : index
    %c0_23 = arith.constant 0 : index
    %c0_24 = arith.constant 0 : index
    %c0_25 = arith.constant 0 : index
    %67 = vector.load %arg6[%c0_22, %c0_23, %c0_24, %c0_25] : memref<2x8x16x128xbf16, #tpu.memory_space<vmem>>, vector<2x8x16x128xbf16>
    tpu.vector_store %arg6[%c0_22, %c0_23, %c0_24, %c0_25], %66 {strides = array<i32>} : memref<2x8x16x128xbf16, #tpu.memory_space<vmem>>, vector<2x8x16x128xbf16>,
    return
  }
  func.func @transform_0(%arg0: i32, %arg1: i32) -> (i32, i32, i32, i32, i32) {
    %c0_i32 = arith.constant 0 : i32
    %c0_i32_0 = arith.constant 0 : i32
    %c0_i32_1 = arith.constant 0 : i32
    %c0_i32_2 = arith.constant 0 : i32
    return %arg0, %c0_i32, %arg1, %c0_i32_0, %c0_i32_1 : i32, i32, i32, i32, i32
  }
  func.func @transform_1(%arg0: i32, %arg1: i32) -> (i32, i32, i32, i32, i32) {
    %c1_i32 = arith.constant 1 : i32
    %0 = arith.addi %arg1, %c1_i32 : i32
    %c8_i32 = arith.constant 8 : i32
    %1 = arith.muli %0, %c8_i32 : i32
    %c0_i32 = arith.constant 0 : i32
    %c0_i32_0 = arith.constant 0 : i32
    %c0_i32_1 = arith.constant 0 : i32
    %c0_i32_2 = arith.constant 0 : i32
    return %arg0, %c0_i32, %1, %c0_i32_0, %c0_i32_1 : i32, i32, i32, i32, i32
  }
  func.func @transform_2(%arg0: i32, %arg1: i32) -> (i32, i32) {
    %c0_i32 = arith.constant 0 : i32
    %c0_i32_0 = arith.constant 0 : i32
    %c0_i32_1 = arith.constant 0 : i32
    return %c0_i32, %c0_i32_0 : i32, i32
  }
  func.func @transform_3(%arg0: i32, %arg1: i32) -> (i32, i32) {
    %c0_i32 = arith.constant 0 : i32
    %c0_i32_0 = arith.constant 0 : i32
    %c0_i32_1 = arith.constant 0 : i32
    return %c0_i32, %c0_i32_0 : i32, i32
  }
  func.func @transform_4(%arg0: i32, %arg1: i32) -> (i32, i32, i32, i32) {
    %c0_i32 = arith.constant 0 : i32
    %c0_i32_0 = arith.constant 0 : i32
    %c0_i32_1 = arith.constant 0 : i32
    return %arg0, %arg1, %c0_i32, %c0_i32_0 : i32, i32, i32, i32
  }
}

</mosaic_0001>

<bundles_post_ra>
// kernel: tpu_custom_call.1
= control target key start
LH: loop header
LB: loop body
LE: loop exit
PB: predicated region body
PF: predicated region fallthrough
CT: control target
= control target key end

     0   :  { %s7847_s0 = inlined_call_operand.vmem [shape: bf16[2,4,17,17,4], index: 0, kind: input, shape index: {}]   ;;  %s7848_s1 = inlined_call_operand.vmem [shape: bf16[2,4,17,17,4], index: 1, kind: input, shape index: {}]   ;;  %s7849_s2 = inlined_call_operand.vmem [shape: bf16[36,128], index: 2, kind: input, shape index: {}]   ;;  %s7850_s3 = inlined_call_operand.vmem [shape: f32[1,128], index: 3, kind: input, shape index: {}]   ;;  %s7851_s4 = inlined_call_operand.hbm [shape: bf16[2,16,16,128], index: 4, kind: output, shape index: {}]  }
   0x1   :  { %7863 = sst [smem:[#allocation22_spill]] %s7847_s0 }
   0x2   :  { %9 = vsyncpa [#allocation5], 0 }
   0x3   :  { %11 = vsyncpa [#allocation5 + $0x1], 0  ;;  %s6383_s15 = smov 0   ;;  %s6385_s16 = smov 0  }
   0x4   :  { %s6387_s17 = smov 0   ;;  %s6389_s18 = smov 0  }
   0x5   :  { %s6391_s19 = smov 0   ;;  %s6393_s20 = smov 0  }
   0x6   :  { %s6395_s21 = smov 0   ;;  %s6397_s22 = smov 0  }
   0x7 LB: > { %s4758_s23 = sadd.s32 4294967295, %s6333_s22   ;;  %s4759_s24 = sadd.s32 4294967294, %s6333_s22   ;;  %s6333_s22 = sphi %s6397_s22, %s17_s22   ;;  %s6329_s21 = sphi %s6395_s21, %s7906_s21   ;;  %s6325_s20 = sphi %s6393_s20, %s7905_s20   ;;  %s6321_s19 = sphi %s6391_s19, %s7904_s19   ;;  %s6317_s18 = sphi %s6389_s18, %s7903_s18   ;;  %s6313_s17 = sphi %s6387_s17, %s7902_s17   ;;  %s6309_s16 = sphi %s6385_s16, %s7901_s16   ;;  %s6305_s15 = sphi %s6383_s15, %s7900_s15  }
   0x8   : > { %s26_s25 = sadd.s32 1, %s6329_s21  ;;  %s38_s26 = sadd.s32 1, %s6321_s19 }
   0x9   : > { %p27_p0 = scmp.ge.s32.totalorder %s26_s25, 2  ;;  %p45_p1 = scmp.ne.s32.totalorder %s6321_s19, %s6317_s18 }
   0xa   : > { %p46_p2 = scmp.eq.s32.totalorder %s6333_s22, 0  ;;  %s5096_s27 = sshll.u32 %s6329_s21, 3 }
   0xb   : > { %s7908_s25 = smov (%p27_p0, %s26_s25), 0  ;;  %s5097_s29 = sadd.s32 8, %s5096_s27 }
   0xc   : > { %7864 = sst [smem:[#allocation9_spill]] %s7908_s25  ;;  %p6438_p3 = por %p46_p2, %p45_p1 }
   0xd   : > { %s34_s30 = ssub.s32 %s6329_s21, %s7908_s25  ;;  %s5098_s5 = sshll.u32 %s7908_s25, 3 }
   0xe   : > { %p36_p4 = scmp.eq.s32.totalorder %s34_s30, 0  ;;  %s5099_s6 = sadd.s32 8, %s5098_s5 }
   0xf   : > { %s66_s7 = ssub.s32 %s5097_s29, %s5099_s6  ;;  %s70_s8 = sadd.s32 1, %s6313_s17 }
  0x10   : > { %s6447_s9 = scalar_select %p36_p4, %s6321_s19, %s38_s26  }
  0x11   : > { %p68_p5 = scmp.eq.s32.totalorder %s66_s7, 0  ;;  %p77_p6 = scmp.ne.s32.totalorder %s6313_s17, %s6309_s16 }
  0x12   : > { %p151_p7 = scmp.eq.s32.totalorder %s4758_s23, 1  ;;  %p156_p8 = scmp.ne.s32.totalorder %s6317_s18, %s6305_s15 }
  0x13   : > { %s6454_s10 = scalar_select %p68_p5, %s6313_s17, %s70_s8  }
  0x14   : > { %p6458_p9 = por %p77_p6, %p46_p2  ;;  %p6465_p10 = por %p151_p7, %p45_p1 }
  0x15   : > { %p157_p11 = scmp.eq.s32.totalorder %s4759_s24, 1  ;;  %p4763_p13 = scmp.ge.s32.totalorder %s6333_s22, 2 }
  0x17   : > { %p6469_p12 = por %p157_p11, %p156_p8  ;;  %179 = sbr.rel (%p4763_p13) target bundleno = 106 (0x6a), region = 24 }
  0x1e   : > { %182 = sbr.rel (!%p6438_p3) target bundleno = 93 (0x5d), region = 28  ;;  %s184_s14 = sand.u32 (%p6438_p3), 1, %s6321_s19  }
  0x1f   : > { %s6479_s23 = smul.u32 (%p6438_p3), 768, %s184_s14  ;;  %s7869_s0 = sld [smem:[#allocation22_spill]] (%p6438_p3) }
  0x20   : > { %s5959_s26 = smul.u32 (%p6438_p3), 96, %s6329_s21  ;;  %s6495_s6 = smov (%p6438_p3), 0  }
  0x21   : > { %s186_s30 = scalar_lea.vmem (%p6438_p3), [#allocation2], %s6479_s23   ;;  %s6497_s7 = smov (%p6438_p3), 0  }
  0x22   : > { %s7870_s5 = smov (%p6438_p3), %s186_s30 }
  0x25   : > { %s6485_s29 = scalar_lea.vmem %s7869_s0, %s5959_s26  }
  0x26   : > { %s7871_s28 = smov %s6485_s29 }
  0x27 LB: >> { %v219_v0 = vld [vmem:[%s6341_s28] sm:$0xf]  ;;  %v221_v1 = vld [vmem:[%s6341_s28 + $0x4] sm:$0xf]  ;;  %v223_v2 = vld [vmem:[%s6341_s28 + $0x8] sm:$0xf]  ;;  %s6349_s7 = sphi %s6497_s7, %s213_s7   ;;  %s6345_s6 = sphi %s6495_s6, %s7872_s6   ;;  %s6341_s28 = sphi %s7871_s28, %s352_s28   ;;  %s6337_s5 = sphi %s7870_s5, %s353_s5  }
  0x28   : >> { %220 = vst [vmem:[%s6337_s5] sm:$0xf] %v219_v0  ;;  %222 = vst [vmem:[%s6337_s5 + $0x4] sm:$0xf] %v221_v1  ;;  %v225_v3 = vld [vmem:[%s6341_s28 + $0xc] sm:$0xf]  ;;  %s347_s8 = sadd.s32 1, %s6345_s6 }
  0x29   : >> { %224 = vst [vmem:[%s6337_s5 + $0x8] sm:$0xf] %v223_v2  ;;  %v227_v4 = vld [vmem:[%s6341_s28 + $0x10] sm:$0xf]  ;;  %v229_v5 = vld [vmem:[%s6341_s28 + $0x14] sm:$0xf] }
  0x2a   : >> { %226 = vst [vmem:[%s6337_s5 + $0xc] sm:$0xf] %v225_v3  ;;  %228 = vst [vmem:[%s6337_s5 + $0x10] sm:$0xf] %v227_v4  ;;  %v231_v6 = vld [vmem:[%s6341_s28 + $0x18] sm:$0xf] }
  0x2b   : >> { %230 = vst [vmem:[%s6337_s5 + $0x14] sm:$0xf] %v229_v5  ;;  %v233_v7 = vld [vmem:[%s6341_s28 + $0x1c] sm:$0xf]  ;;  %v235_v8 = vld [vmem:[%s6341_s28 + $0xcc] sm:$0xf] }
  0x2c   : >> { %232 = vst [vmem:[%s6337_s5 + $0x18] sm:$0xf] %v231_v6  ;;  %234 = vst [vmem:[%s6337_s5 + $0x1c] sm:$0xf] %v233_v7  ;;  %v237_v9 = vld [vmem:[%s6341_s28 + $0xd0] sm:$0xf] }
  0x2d   : >> { %236 = vst [vmem:[%s6337_s5 + $0x60] sm:$0xf] %v235_v8  ;;  %v239_v10 = vld [vmem:[%s6341_s28 + $0xd4] sm:$0xf]  ;;  %v241_v11 = vld [vmem:[%s6341_s28 + $0xd8] sm:$0xf] }
  0x2e   : >> { %238 = vst [vmem:[%s6337_s5 + $0x64] sm:$0xf] %v237_v9  ;;  %240 = vst [vmem:[%s6337_s5 + $0x68] sm:$0xf] %v239_v10  ;;  %v243_v12 = vld [vmem:[%s6341_s28 + $0xdc] sm:$0xf] }
  0x2f   : >> { %242 = vst [vmem:[%s6337_s5 + $0x6c] sm:$0xf] %v241_v11  ;;  %v245_v13 = vld [vmem:[%s6341_s28 + $0xe0] sm:$0xf]  ;;  %v247_v14 = vld [vmem:[%s6341_s28 + $0xe4] sm:$0xf] }
  0x30   : >> { %244 = vst [vmem:[%s6337_s5 + $0x70] sm:$0xf] %v243_v12  ;;  %246 = vst [vmem:[%s6337_s5 + $0x74] sm:$0xf] %v245_v13  ;;  %v249_v15 = vld [vmem:[%s6341_s28 + $0xe8] sm:$0xf] }
  0x31   : >> { %248 = vst [vmem:[%s6337_s5 + $0x78] sm:$0xf] %v247_v14  ;;  %v251_v16 = vld [vmem:[%s6341_s28 + $0x198] sm:$0xf]  ;;  %v253_v17 = vld [vmem:[%s6341_s28 + $0x19c] sm:$0xf] }
  0x32   : >> { %250 = vst [vmem:[%s6337_s5 + $0x7c] sm:$0xf] %v249_v15  ;;  %252 = vst [vmem:[%s6337_s5 + $0xc0] sm:$0xf] %v251_v16  ;;  %v255_v18 = vld [vmem:[%s6341_s28 + $0x1a0] sm:$0xf] }
  0x33   : >> { %254 = vst [vmem:[%s6337_s5 + $0xc4] sm:$0xf] %v253_v17  ;;  %v257_v19 = vld [vmem:[%s6341_s28 + $0x1a4] sm:$0xf]  ;;  %v259_v20 = vld [vmem:[%s6341_s28 + $0x1a8] sm:$0xf] }
  0x34   : >> { %256 = vst [vmem:[%s6337_s5 + $0xc8] sm:$0xf] %v255_v18  ;;  %258 = vst [vmem:[%s6337_s5 + $0xcc] sm:$0xf] %v257_v19  ;;  %v261_v21 = vld [vmem:[%s6341_s28 + $0x1ac] sm:$0xf] }
  0x35   : >> { %260 = vst [vmem:[%s6337_s5 + $0xd0] sm:$0xf] %v259_v20  ;;  %v263_v22 = vld [vmem:[%s6341_s28 + $0x1b0] sm:$0xf]  ;;  %v265_v23 = vld [vmem:[%s6341_s28 + $0x1b4] sm:$0xf] }
  0x36   : >> { %262 = vst [vmem:[%s6337_s5 + $0xd4] sm:$0xf] %v261_v21  ;;  %264 = vst [vmem:[%s6337_s5 + $0xd8] sm:$0xf] %v263_v22  ;;  %v267_v24 = vld [vmem:[%s6341_s28 + $0x264] sm:$0xf] }
  0x37   : >> { %266 = vst [vmem:[%s6337_s5 + $0xdc] sm:$0xf] %v265_v23  ;;  %v269_v25 = vld [vmem:[%s6341_s28 + $0x268] sm:$0xf]  ;;  %v271_v26 = vld [vmem:[%s6341_s28 + $0x26c] sm:$0xf] }
  0x38   : >> { %268 = vst [vmem:[%s6337_s5 + $0x120] sm:$0xf] %v267_v24  ;;  %270 = vst [vmem:[%s6337_s5 + $0x124] sm:$0xf] %v269_v25  ;;  %v273_v27 = vld [vmem:[%s6341_s28 + $0x270] sm:$0xf] }
  0x39   : >> { %272 = vst [vmem:[%s6337_s5 + $0x128] sm:$0xf] %v271_v26  ;;  %v275_v28 = vld [vmem:[%s6341_s28 + $0x274] sm:$0xf]  ;;  %v277_v29 = vld [vmem:[%s6341_s28 + $0x278] sm:$0xf] }
  0x3a   : >> { %274 = vst [vmem:[%s6337_s5 + $0x12c] sm:$0xf] %v273_v27  ;;  %276 = vst [vmem:[%s6337_s5 + $0x130] sm:$0xf] %v275_v28  ;;  %v279_v30 = vld [vmem:[%s6341_s28 + $0x27c] sm:$0xf] }
  0x3b   : >> { %278 = vst [vmem:[%s6337_s5 + $0x134] sm:$0xf] %v277_v29  ;;  %v281_v31 = vld [vmem:[%s6341_s28 + $0x280] sm:$0xf]  ;;  %v283_v32 = vld [vmem:[%s6341_s28 + $0x330] sm:$0xf] }
  0x3c   : >> { %280 = vst [vmem:[%s6337_s5 + $0x138] sm:$0xf] %v279_v30  ;;  %282 = vst [vmem:[%s6337_s5 + $0x13c] sm:$0xf] %v281_v31  ;;  %v285_v33 = vld [vmem:[%s6341_s28 + $0x334] sm:$0xf] }
  0x3d   : >> { %284 = vst [vmem:[%s6337_s5 + $0x180] sm:$0xf] %v283_v32  ;;  %v287_v34 = vld [vmem:[%s6341_s28 + $0x338] sm:$0xf]  ;;  %v289_v35 = vld [vmem:[%s6341_s28 + $0x33c] sm:$0xf] }
  0x3e   : >> { %286 = vst [vmem:[%s6337_s5 + $0x184] sm:$0xf] %v285_v33  ;;  %288 = vst [vmem:[%s6337_s5 + $0x188] sm:$0xf] %v287_v34  ;;  %v291_v36 = vld [vmem:[%s6341_s28 + $0x340] sm:$0xf] }
  0x3f   : >> { %290 = vst [vmem:[%s6337_s5 + $0x18c] sm:$0xf] %v289_v35  ;;  %v293_v37 = vld [vmem:[%s6341_s28 + $0x344] sm:$0xf]  ;;  %v295_v38 = vld [vmem:[%s6341_s28 + $0x348] sm:$0xf] }
  0x40   : >> { %292 = vst [vmem:[%s6337_s5 + $0x190] sm:$0xf] %v291_v36  ;;  %294 = vst [vmem:[%s6337_s5 + $0x194] sm:$0xf] %v293_v37  ;;  %v297_v39 = vld [vmem:[%s6341_s28 + $0x34c] sm:$0xf] }
  0x41   : >> { %296 = vst [vmem:[%s6337_s5 + $0x198] sm:$0xf] %v295_v38  ;;  %v299_v40 = vld [vmem:[%s6341_s28 + $0x3fc] sm:$0xf]  ;;  %v301_v41 = vld [vmem:[%s6341_s28 + $0x400] sm:$0xf] }
  0x42   : >> { %298 = vst [vmem:[%s6337_s5 + $0x19c] sm:$0xf] %v297_v39  ;;  %300 = vst [vmem:[%s6337_s5 + $0x1e0] sm:$0xf] %v299_v40  ;;  %v303_v42 = vld [vmem:[%s6341_s28 + $0x404] sm:$0xf] }
  0x43   : >> { %302 = vst [vmem:[%s6337_s5 + $0x1e4] sm:$0xf] %v301_v41  ;;  %v305_v43 = vld [vmem:[%s6341_s28 + $0x408] sm:$0xf]  ;;  %v307_v44 = vld [vmem:[%s6341_s28 + $0x40c] sm:$0xf] }
  0x44   : >> { %304 = vst [vmem:[%s6337_s5 + $0x1e8] sm:$0xf] %v303_v42  ;;  %306 = vst [vmem:[%s6337_s5 + $0x1ec] sm:$0xf] %v305_v43  ;;  %v309_v45 = vld [vmem:[%s6341_s28 + $0x410] sm:$0xf] }
  0x45   : >> { %308 = vst [vmem:[%s6337_s5 + $0x1f0] sm:$0xf] %v307_v44  ;;  %v311_v46 = vld [vmem:[%s6341_s28 + $0x414] sm:$0xf]  ;;  %v313_v47 = vld [vmem:[%s6341_s28 + $0x418] sm:$0xf] }
  0x46   : >> { %310 = vst [vmem:[%s6337_s5 + $0x1f4] sm:$0xf] %v309_v45  ;;  %312 = vst [vmem:[%s6337_s5 + $0x1f8] sm:$0xf] %v311_v46  ;;  %v315_v48 = vld [vmem:[%s6341_s28 + $0x4c8] sm:$0xf] }
  0x47   : >> { %314 = vst [vmem:[%s6337_s5 + $0x1fc] sm:$0xf] %v313_v47  ;;  %v317_v49 = vld [vmem:[%s6341_s28 + $0x4cc] sm:$0xf]  ;;  %v319_v50 = vld [vmem:[%s6341_s28 + $0x4d0] sm:$0xf] }
  0x48   : >> { %316 = vst [vmem:[%s6337_s5 + $0x240] sm:$0xf] %v315_v48  ;;  %318 = vst [vmem:[%s6337_s5 + $0x244] sm:$0xf] %v317_v49  ;;  %v321_v51 = vld [vmem:[%s6341_s28 + $0x4d4] sm:$0xf] }
  0x49   : >> { %320 = vst [vmem:[%s6337_s5 + $0x248] sm:$0xf] %v319_v50  ;;  %v323_v52 = vld [vmem:[%s6341_s28 + $0x4d8] sm:$0xf]  ;;  %v325_v53 = vld [vmem:[%s6341_s28 + $0x4dc] sm:$0xf] }
  0x4a   : >> { %322 = vst [vmem:[%s6337_s5 + $0x24c] sm:$0xf] %v321_v51  ;;  %324 = vst [vmem:[%s6337_s5 + $0x250] sm:$0xf] %v323_v52  ;;  %v327_v54 = vld [vmem:[%s6341_s28 + $0x4e0] sm:$0xf] }
  0x4b   : >> { %326 = vst [vmem:[%s6337_s5 + $0x254] sm:$0xf] %v325_v53  ;;  %v329_v55 = vld [vmem:[%s6341_s28 + $0x4e4] sm:$0xf]  ;;  %v331_v56 = vld [vmem:[%s6341_s28 + $0x594] sm:$0xf] }
  0x4c   : >> { %328 = vst [vmem:[%s6337_s5 + $0x258] sm:$0xf] %v327_v54  ;;  %330 = vst [vmem:[%s6337_s5 + $0x25c] sm:$0xf] %v329_v55  ;;  %v333_v57 = vld [vmem:[%s6341_s28 + $0x598] sm:$0xf] }
  0x4d   : >> { %332 = vst [vmem:[%s6337_s5 + $0x2a0] sm:$0xf] %v331_v56  ;;  %v335_v58 = vld [vmem:[%s6341_s28 + $0x59c] sm:$0xf]  ;;  %v337_v59 = vld [vmem:[%s6341_s28 + $0x5a0] sm:$0xf] }
  0x4e   : >> { %334 = vst [vmem:[%s6337_s5 + $0x2a4] sm:$0xf] %v333_v57  ;;  %336 = vst [vmem:[%s6337_s5 + $0x2a8] sm:$0xf] %v335_v58  ;;  %v339_v60 = vld [vmem:[%s6341_s28 + $0x5a4] sm:$0xf] }
  0x4f   : >> { %338 = vst [vmem:[%s6337_s5 + $0x2ac] sm:$0xf] %v337_v59  ;;  %v341_v61 = vld [vmem:[%s6341_s28 + $0x5a8] sm:$0xf]  ;;  %v343_v62 = vld [vmem:[%s6341_s28 + $0x5ac] sm:$0xf] }
  0x50   : >> { %340 = vst [vmem:[%s6337_s5 + $0x2b0] sm:$0xf] %v339_v60  ;;  %342 = vst [vmem:[%s6337_s5 + $0x2b4] sm:$0xf] %v341_v61  ;;  %v345_v63 = vld [vmem:[%s6341_s28 + $0x5b0] sm:$0xf] }
  0x51   : >> { %344 = vst [vmem:[%s6337_s5 + $0x2b8] sm:$0xf] %v343_v62  ;;  %346 = vst [vmem:[%s6337_s5 + $0x2bc] sm:$0xf] %v345_v63  ;;  %p348_p0 = scmp.ge.s32.totalorder %s347_s8, 3  ;;  %s213_s7 = sadd.s32 1, %s6349_s7  }
  0x52   : >> { %p212_p1 = scmp.ge.s32.totalorder %s213_s7, 3 }
  0x53   : >> { %s7910_s8 = smov (%p348_p0, %s347_s8), 0 }
  0x54   : >> { %s4772_s14 = sshll.u32 %s7910_s8, 5  ;;  %s7872_s6 = smov %s7910_s8 }
  0x55   : >> { %s352_s28 = scalar_lea.vmem %s6485_s29, %s4772_s14   ;;  %s353_s5 = scalar_lea.vmem %s186_s30, %s4772_s14 [#allocation2]  }
  0x56   : > { %215 = sbr.rel (!%p212_p1) target bundleno = 39 (0x27), region = 206 }
  0x5d PF: > { %623 = sbr.rel (!%p6458_p9) target bundleno = 106 (0x6a), region = 90  ;;  %s625_s26 = sand.u32 (%p6458_p9), 1, %s6313_s17  }
  0x5e   : > { %s4780_s24 = smul.u32 (%p6458_p9), 96, %s6329_s21 }
  0x5f   : > { %s5960_s27 = smul.u32 (%p6458_p9), 96, %s625_s26 }
  0x60   : > { %s6659_s25 = scalar_lea.vmem (%p6458_p9), %s7848_s1, %s4780_s24 }
  0x61   : > { %v4781_v0 = vld [vmem:[%s6659_s25 + $0x60] sm:$0xff] (%p6458_p9)   ;;  %v4783_v1 = vld [vmem:[%s6659_s25 + $0x68] sm:$0xf] (%p6458_p9)  ;;  %v4784_v2 = vld [vmem:[%s6659_s25 + $0x12c] sm:$0xff] (%p6458_p9)   ;;  %s627_s11 = scalar_lea.vmem (%p6458_p9), [#allocation3], %s5960_s27 }
  0x62   : > { %652 = vst [vmem:[%s627_s11] sm:$0xff] (%p6458_p9), %v4781_v0   ;;  %656 = vst [vmem:[%s627_s11 + $0x8] sm:$0xf] (%p6458_p9), %v4783_v1  ;;  %v4786_v3 = vld [vmem:[%s6659_s25 + $0x134] sm:$0xf] (%p6458_p9)  ;;  %v4787_v4 = vld [vmem:[%s6659_s25 + $0x1f8] sm:$0xff] (%p6458_p9)  }
  0x63   : > { %658 = vst [vmem:[%s627_s11 + $0xc] sm:$0xff] (%p6458_p9), %v4784_v2   ;;  %v4789_v5 = vld [vmem:[%s6659_s25 + $0x200] sm:$0xf] (%p6458_p9)  ;;  %662 = vst [vmem:[%s627_s11 + $0x14] sm:$0xf] (%p6458_p9), %v4786_v3  ;;  %v4790_v6 = vld [vmem:[%s6659_s25 + $0x2c4] sm:$0xff] (%p6458_p9)  }
  0x64   : > { %664 = vst [vmem:[%s627_s11 + $0x18] sm:$0xff] %v4787_v4   ;;  %668 = vst [vmem:[%s627_s11 + $0x20] sm:$0xf] %v4789_v5  ;;  %v4792_v7 = vld [vmem:[%s6659_s25 + $0x2cc] sm:$0xf]  ;;  %v4793_v8 = vld [vmem:[%s6659_s25 + $0x390] sm:$0xff]  }
  0x65   : > { %670 = vst [vmem:[%s627_s11 + $0x24] sm:$0xff] %v4790_v6   ;;  %674 = vst [vmem:[%s627_s11 + $0x2c] sm:$0xf] %v4792_v7  ;;  %v4795_v9 = vld [vmem:[%s6659_s25 + $0x398] sm:$0xf]  ;;  %v4796_v10 = vld [vmem:[%s6659_s25 + $0x45c] sm:$0xff]  }
  0x66   : > { %676 = vst [vmem:[%s627_s11 + $0x30] sm:$0xff] %v4793_v8   ;;  %v4798_v11 = vld [vmem:[%s6659_s25 + $0x464] sm:$0xf]  ;;  %680 = vst [vmem:[%s627_s11 + $0x38] sm:$0xf] %v4795_v9  ;;  %v4799_v12 = vld [vmem:[%s6659_s25 + $0x528] sm:$0xff]  }
  0x67   : > { %682 = vst [vmem:[%s627_s11 + $0x3c] sm:$0xff] %v4796_v10   ;;  %686 = vst [vmem:[%s627_s11 + $0x44] sm:$0xf] %v4798_v11  ;;  %v4801_v13 = vld [vmem:[%s6659_s25 + $0x530] sm:$0xf]  ;;  %v4802_v14 = vld [vmem:[%s6659_s25 + $0x5f4] sm:$0xff]  }
  0x68   : > { %688 = vst [vmem:[%s627_s11 + $0x48] sm:$0xff] %v4799_v12   ;;  %692 = vst [vmem:[%s627_s11 + $0x50] sm:$0xf] %v4801_v13  ;;  %v4804_v15 = vld [vmem:[%s6659_s25 + $0x5fc] sm:$0xf] }
  0x69   : > { %694 = vst [vmem:[%s627_s11 + $0x54] sm:$0xff] %v4802_v14   ;;  %698 = vst [vmem:[%s627_s11 + $0x5c] sm:$0xf] %v4804_v15 }
  0x6a PF: > { %p4805_p2 = scmp.ge.s32.totalorder %s6333_s22, 1  ;;  %p768_p3 = scmp.lt.s32.totalorder %s6333_s22, 3 }
  0x6c   : > { %p769_p4 = pnand %p4805_p2, %p768_p3 }
  0x6e   : > { %772 = sbr.rel (%p769_p4) target bundleno = 641 (0x281), region = 131 }
  0x75   : > { %v996_v16 = vld [vmem:[%s7849_s2 + $0x8] sm:$0xf]  ;;  %vm1132_vm0 = vcmask 1041408   ;;  %v994_v17 = vld [vmem:[%s7849_s2] sm:$0xf]  ;;  %s6686_s25 = sand.u32 1, %s6317_s18  }
  0x76   : > { %5952 = vmatprep.subr.msk.bf16.mxu0 %vm1132_vm0, %v996_v16  ;;  %v4985_v18 = vcombine.low %v996_v16, %v996_v16  ;;  %v4823_v19 = vcombine.low %v994_v17, %v994_v17  ;;  %v6690_v20 = vsel %vm1132_vm0, %v996_v16, 0  ;;  %s5961_s5 = smul.u32 768, %s6686_s25  ;;  %vm1083_vm1 = vcmask 31744   ;;  %v6707_v28 = vld [vmem:[%s7849_s2 + $0xc] sm:$0xf]  ;;  %s782_s24 = sand.u32 1, %s6309_s16  }
  0x77   : > { %7873 = vst [vmem:[#allocation10_spill] sm:$0xff] %v6690_v20  ;;  %5521 = vmatpush3.bf16.msra.mxu0 %v6690_v20  ;;  %v1426_v30 = vsel %vm1132_vm0, %v994_v17, 0  ;;  %v6716_v31 = vld [vmem:[%s7849_s2 + $0x4] sm:$0xf]  ;;  %vm1589_vm2 = vsmask.f32 3328  ;;  %v5022_v52 = vcombine.low %v6707_v28, %v6707_v28 }
  0x78   : > { %v1082_v21 = vrot.slane %v4823_v19, 2  ;;  %v3355_v22 = vrot.slane %v4985_v18, 2  ;;  %s6694_s28 = scalar_lea.vmem [#allocation2], %s5961_s5  ;;  %vm1590_vm3 = vsmask.f32 7440  ;;  %v6741_v41 = vsel %vm1132_vm0, %v6707_v28, 0 }
  0x79   : > { %v6113_v23 = vld [vmem:[%s6694_s28 + $0x120] sm:$0xff]   ;;  %v6115_v26 = vld [vmem:[%s6694_s28 + $0x12c] sm:$0xff]   ;;  %v6117_v32 = vld [vmem:[%s6694_s28 + $0x138] sm:$0xff]   ;;  %v6762_v7 = vrot.slane %v5022_v52, 2  ;;  %s6996_s16 = smul.u32 96, %s782_s24  ;;  %s4806_s5 = sshll.u32 %s6686_s25, 7 }
  0x7a   : > { %5948 = vmatprep.subr.msk.bf16.mxu1 %vm1132_vm0, %v1082_v21  ;;  %v1134_v24 = vsel %vm1132_vm0, %v1082_v21, 0  ;;  %v6114_v25 = vld [vmem:[%s6694_s28 + $0x60] sm:$0xff]   ;;  %5954 = vmatprep.subr.msk.bf16.mxu0 %vm1132_vm0, %v3355_v22  ;;  %v3405_v27 = vsel %vm1132_vm0, %v3355_v22, 0  ;;  %v6116_v29 = vld [vmem:[%s6694_s28 + $0x6c] sm:$0xff]   ;;  %v6118_v33 = vld [vmem:[%s6694_s28 + $0x78] sm:$0xff]   ;;  %s4548_s6 = scalar_lea.sflag [#allocation5], %s6686_s25 }
  0x7b   : > { %5385 = vmatpush3.bf16.msra.mxu1 %v1134_v24  ;;  %5522 = vmatprep.mubr.msk.bf16.mxu0 %vm1083_vm1, %v6113_v23  ;;  %v6119_v34 = vld [vmem:[%s6694_s28 + $0x144] sm:$0xff]   ;;  %v6121_v36 = vld [vmem:[%s6694_s28 + $0x150] sm:$0xff]   ;;  %v6123_v38 = vld [vmem:[%s6694_s28 + $0x15c] sm:$0xff]   ;;  %s7041_s27 = scalar_lea.vmem [#allocation3], %s6996_s16 }
  0x7c   : > { %5386 = vmatprep.mubr.msk.bf16.mxu1 %vm1083_vm1, %v6114_v25  ;;  %5949 = vmatprep.subr.msk.bf16.mxu1 %vm1132_vm0, %v994_v17  ;;  %v6120_v35 = vld [vmem:[%s6694_s28 + $0x84] sm:$0xff]   ;;  %v6122_v37 = vld [vmem:[%s6694_s28 + $0x90] sm:$0xff]   ;;  %v6124_v39 = vld [vmem:[%s6694_s28 + $0x9c] sm:$0xff]  }
  0x7d   : > { %5523 = vmatmul.mubr.msk.bf16.vlgmr.msra.gmra.mrb[0].mxu0 %vm1083_vm1, %v6115_v26  ;;  %v6125_v40 = vld [vmem:[%s6694_s28 + $0x168] sm:$0xff]   ;;  %v864_v42 = vld [vmem:[%s6694_s28 + $0xc0] sm:$0xf]  ;;  %v865_v43 = vld [vmem:[%s6694_s28 + $0xc4] sm:$0xf] }
  0x7e   : > { %5387 = vmatmul.mubr.msk.bf16.vlgmr.msra.gmra.mrb[0].mxu1 %vm1083_vm1, %v6116_v29  ;;  %5555 = vmatpush3.bf16.msra.mxu0 %v3405_v27  ;;  %v866_v44 = vld [vmem:[%s6694_s28 + $0xc8] sm:$0x1]  ;;  %v2921_v45 = vshrl.u32 %v864_v42, 16  ;;  %v2924_v46 = vshll.u32 %v864_v42, 16  ;;  %v2930_v47 = vshll.u32 %v865_v43, 16  ;;  %v2934_v48 = vshrl.u32 %v865_v43, 16  ;;  %vm6758_vm4 = vmor %vm1589_vm2, %vm1590_vm3 }
  0x7f   : > { %5419 = vmatpush3.bf16.msra.mxu1 %v1426_v30  ;;  %5526 = vmatprep.mubr.msk.bf16.mxu0 %vm1083_vm1, %v6117_v32  ;;  %v6126_v49 = vld [vmem:[%s6694_s28 + $0xa8] sm:$0xff]   ;;  %v2940_v50 = vshll.u32 %v866_v44, 16  ;;  %v868_v57 = vld [vmem:[%s6694_s28 + $0xd0] sm:$0xf]  ;;  %v869_v59 = vld [vmem:[%s6694_s28 + $0xd4] sm:$0x1] }
  0x80   : > { %5390 = vmatprep.mubr.msk.bf16.mxu1 %vm1083_vm1, %v6118_v33  ;;  %5955 = vmatprep.subr.msk.bf16.mxu0 %vm1132_vm0, %v6707_v28  ;;  %v867_v51 = vld [vmem:[%s6694_s28 + $0xcc] sm:$0xf]  ;;  %v2923_v53 = vrot.slane %v2921_v45, 4  ;;  %v2926_v54 = vrot.slane %v2924_v46, 5  ;;  %v2932_v55 = vrot.slane %v2930_v47, 5  ;;  %v2936_v56 = vrot.slane %v2934_v48, 4 }
  0x81   : > { %5950 = vmatprep.subr.msk.bf16.mxu1 %vm1132_vm0, %v6716_v31  ;;  %v2942_v58 = vrot.slane %v2940_v50, 5  ;;  %v2945_v60 = vshrl.u32 %v867_v51, 16  ;;  %v2948_v61 = vshll.u32 %v867_v51, 16  ;;  %v2954_v62 = vshll.u32 %v868_v57, 16  ;;  %v870_v8 = vld [vmem:[%s6694_s28 + $0xd8] sm:$0xf] }
  0x82   : > { %v2927_v63 = vor.u32 %v2926_v54, %v2923_v53  ;;  %v2937_v0 = vor.u32 %v2936_v56, %v2932_v55  ;;  %v2958_v1 = vshrl.u32 %v868_v57, 16  ;;  %v2964_v2 = vshll.u32 %v869_v59, 16  ;;  %v871_v13 = vld [vmem:[%s6694_s28 + $0xdc] sm:$0xf]  ;;  %v6127_v14 = vld [vmem:[%s6694_s28 + $0x174] sm:$0xff]   ;;  %v6129_v27 = vld [vmem:[%s6694_s28 + $0x1e0] sm:$0xff]  }
  0x83   : > { %v2947_v4 = vrot.slane %v2945_v60, 4  ;;  %v2950_v5 = vrot.slane %v2948_v61, 5  ;;  %v2956_v6 = vrot.slane %v2954_v62, 5  ;;  %v872_v16 = vld [vmem:[%s6694_s28 + $0xe0] sm:$0x1]  ;;  %v2969_v17 = vshrl.u32 %v870_v8, 16 }
  0x84   : > { %v2928_v9 = vrot.slane %v2927_v63, 4  ;;  %v2938_v10 = vrot.slane %v2937_v0, 4  ;;  %v2960_v11 = vrot.slane %v2958_v1, 4  ;;  %v2966_v12 = vrot.slane %v2964_v2, 5  ;;  %v6128_v21 = vld [vmem:[%s6694_s28 + $0xb4] sm:$0xff]   ;;  %v6130_v63 = vld [vmem:[%s6694_s28 + $0x1ec] sm:$0xff]  }
  0x85   : > { %5527 = vmatmul.mubr.msk.bf16.gmra.mrb[4].mxu0 %vm1083_vm1, %v6119_v34  ;;  %v2951_v15 = vor.u32 %v2950_v5, %v2947_v4  ;;  %v2972_v18 = vshll.u32 %v870_v8, 16  ;;  %v2978_v19 = vshll.u32 %v871_v13, 16  ;;  %v2982_v25 = vshrl.u32 %v871_v13, 16  ;;  %v873_v32 = vld [vmem:[%s6694_s28 + $0xe4] sm:$0xf]  ;;  %v6132_v8 = vld [vmem:[%s6694_s28 + $0x1f8] sm:$0xff]  }
  0x86   : > { %5391 = vmatmul.mubr.msk.bf16.gmra.mrb[4].mxu1 %vm1083_vm1, %v6120_v35  ;;  %5530 = vmatprep.mubr.msk.bf16.mxu0 %vm1083_vm1, %v6121_v36  ;;  %v2933_v22 = vsel %vm6758_vm4, %v2928_v9, %v2932_v55  ;;  %v2943_v23 = vsel %vm6758_vm4, %v2938_v10, %v2942_v58  ;;  %v2961_v24 = vor.u32 %v2960_v11, %v2956_v6  ;;  %v2971_v29 = vrot.slane %v2969_v17, 4  ;;  %v876_v48 = vld [vmem:[%s6694_s28 + $0xf0] sm:$0xf]  ;;  %v877_v53 = vld [vmem:[%s6694_s28 + $0xf4] sm:$0xf] }
  0x87   : > { %5394 = vmatprep.mubr.msk.bf16.mxu1 %vm1083_vm1, %v6122_v37  ;;  %v4969_v26 = vcombine.low %v2933_v22, %v2943_v23  ;;  %v2952_v28 = vrot.slane %v2951_v15, 4  ;;  %v2974_v30 = vrot.slane %v2972_v18, 5  ;;  %v2980_v34 = vrot.slane %v2978_v19, 5  ;;  %v874_v37 = vld [vmem:[%s6694_s28 + $0xe8] sm:$0xf]  ;;  %v6157_v3 = vld [vmem:[%s7041_s27 + $0xc] sm:$0xff]  }
  0x88   : > { %v2962_v33 = vrot.slane %v2961_v24, 4  ;;  %v2984_v35 = vrot.slane %v2982_v25, 4  ;;  %v2988_v36 = vshll.u32 %v872_v16, 16  ;;  %v2993_v42 = vshrl.u32 %v873_v32, 16  ;;  %v878_v58 = vld [vmem:[%s6694_s28 + $0xf8] sm:$0x1] }
  0x89   : > { %v2996_v43 = vshll.u32 %v873_v32, 16  ;;  %v3002_v47 = vshll.u32 %v874_v37, 16  ;;  %v3006_v56 = vshrl.u32 %v874_v37, 16  ;;  %v3017_v61 = vshrl.u32 %v876_v48, 16  ;;  %v879_v5 = vld [vmem:[%s6694_s28 + $0xfc] sm:$0xf] }
  0x8a   : > { %v2967_v44 = vsel %vm6758_vm4, %v2962_v33, %v2966_v12  ;;  %v2985_v45 = vor.u32 %v2984_v35, %v2980_v34  ;;  %v2990_v46 = vrot.slane %v2988_v36, 5  ;;  %v2995_v51 = vrot.slane %v2993_v42, 4  ;;  %v880_v12 = vld [vmem:[%s6694_s28 + $0x100] sm:$0xf]  ;;  %v881_v17 = vld [vmem:[%s6694_s28 + $0x104] sm:$0x1] }
  0x8b   : > { %v2998_v52 = vrot.slane %v2996_v43, 5  ;;  %v3004_v55 = vrot.slane %v3002_v47, 5  ;;  %v3020_v62 = vshll.u32 %v876_v48, 16  ;;  %v3008_v1 = vrot.slane %v3006_v56, 4  ;;  %v882_v32 = vld [vmem:[%s6694_s28 + $0x108] sm:$0xf] }
  0x8c   : > { %v2986_v54 = vrot.slane %v2985_v45, 4  ;;  %v3026_v4 = vshll.u32 %v877_v53, 16  ;;  %v3019_v10 = vrot.slane %v3017_v61, 4  ;;  %v3030_v15 = vshrl.u32 %v877_v53, 16  ;;  %v883_v36 = vld [vmem:[%s6694_s28 + $0x10c] sm:$0xf] }
  0x8d   : > { %5531 = vmatmul.mubr.msk.bf16.gmra.mrb[8].mxu0 %vm1083_vm1, %v6123_v38  ;;  %v2957_v38 = vsel %vm6758_vm4, %v2952_v28, %v2956_v6  ;;  %v2999_v60 = vor.u32 %v2998_v52, %v2995_v51  ;;  %v3022_v11 = vrot.slane %v3020_v62, 5  ;;  %v3009_v13 = vor.u32 %v3008_v1, %v3004_v55  ;;  %v884_v43 = vld [vmem:[%s6694_s28 + $0x110] sm:$0x1]  ;;  %v885_v48 = vld [vmem:[%s6694_s28 + $0x114] sm:$0xf] }
  0x8e   : > { %5395 = vmatmul.mubr.msk.bf16.gmra.mrb[8].mxu1 %vm1083_vm1, %v6124_v39  ;;  %5534 = vmatprep.mubr.msk.bf16.mxu0 %vm1083_vm1, %v6125_v40  ;;  %v2975_v39 = vor.u32 %v2974_v30, %v2971_v29  ;;  %v875_v40 = vld [vmem:[%s6694_s28 + $0xec] sm:$0x1]  ;;  %v2991_v0 = vsel %vm6758_vm4, %v2986_v54, %v2990_v46  ;;  %v3036_v16 = vshll.u32 %v878_v58, 16  ;;  %v3044_v22 = vshll.u32 %v879_v5, 16  ;;  %v886_v54 = vld [vmem:[%s6694_s28 + $0x118] sm:$0xf] }
  0x8f   : > { %5398 = vmatprep.mubr.msk.bf16.mxu1 %vm1083_vm1, %v6126_v49  ;;  %v4970_v49 = vcombine.low %v2957_v38, %v2967_v44  ;;  %v3012_v57 = vshll.u32 %v875_v40, 16  ;;  %v3000_v9 = vrot.slane %v2999_v60, 4  ;;  %v3023_v19 = vor.u32 %v3022_v11, %v3019_v10  ;;  %v6133_v38 = vld [vmem:[%s6694_s28 + $0x204] sm:$0xff]   ;;  %v944_v10 = vld [vmem:[%s6694_s28 + $0x240] sm:$0xf] }
  0x90   : > { %v2976_v50 = vrot.slane %v2975_v39, 4  ;;  %v3010_v23 = vrot.slane %v3009_v13, 4  ;;  %v3032_v24 = vrot.slane %v3030_v15, 4  ;;  %v3038_v25 = vrot.slane %v3036_v16, 5  ;;  %v945_v15 = vld [vmem:[%s6694_s28 + $0x244] sm:$0xf] }
  0x91   : > { %v3014_v2 = vrot.slane %v3012_v57, 5  ;;  %v3005_v18 = vsel %vm6758_vm4, %v3000_v9, %v3004_v55  ;;  %v3046_v29 = vrot.slane %v3044_v22, 5  ;;  %v3054_v30 = vshrl.u32 %v880_v12, 16 }
  0x92   : > { %v2981_v59 = vsel %vm6758_vm4, %v2976_v50, %v2980_v34  ;;  %v3060_v35 = vshll.u32 %v881_v17, 16  ;;  %v3065_v46 = vshrl.u32 %v882_v32, 16  ;;  %v3068_v47 = vshll.u32 %v882_v32, 16 }
  0x93   : > { %v4971_v6 = vcombine.low %v2981_v59, %v2991_v0  ;;  %v3015_v33 = vsel %vm6758_vm4, %v3010_v23, %v3014_v2  ;;  %v3056_v42 = vrot.slane %v3054_v30, 4  ;;  %v3074_v52 = vshll.u32 %v883_v36, 16  ;;  %v887_v2 = vld [vmem:[%s6694_s28 + $0x11c] sm:$0x1]  ;;  %v946_v30 = vld [vmem:[%s6694_s28 + $0x248] sm:$0x1] }
  0x94   : > { %v4972_v37 = vcombine.low %v3005_v18, %v3015_v33  ;;  %v3062_v45 = vrot.slane %v3060_v35, 5  ;;  %v3078_v53 = vshrl.u32 %v883_v36, 16  ;;  %v3067_v56 = vrot.slane %v3065_v46, 4  ;;  %v6846_v46 = vld [vmem:[%s6694_s28] sm:$0xf] }
  0x95   : > { %5535 = vmatmul.mubr.msk.bf16.gmra.mrb[12].mxu0 %vm1083_vm1, %v6127_v14  ;;  %v3028_v14 = vrot.slane %v3026_v4, 5  ;;  %v3070_v57 = vrot.slane %v3068_v47, 5  ;;  %v3084_v58 = vshll.u32 %v884_v43, 16  ;;  %v3076_v62 = vrot.slane %v3074_v52, 5  ;;  %v947_v47 = vld [vmem:[%s6694_s28 + $0x24c] sm:$0xf] }
  0x96   : > { %5399 = vmatmul.mubr.msk.bf16.gmra.mrb[12].mxu1 %vm1083_vm1, %v6128_v21  ;;  %5556 = vmatprep.mubr.msk.bf16.mxu0 %vm1083_vm1, %v4969_v26  ;;  %v3041_v21 = vshrl.u32 %v879_v5, 16  ;;  %v3050_v26 = vshll.u32 %v880_v12, 16  ;;  %v3080_v0 = vrot.slane %v3078_v53, 4  ;;  %v3089_v4 = vshrl.u32 %v885_v48, 16  ;;  %v948_v52 = vld [vmem:[%s6694_s28 + $0x250] sm:$0xf] }
  0x97   : > { %5402 = vmatprep.mubr.msk.bf16.mxu1 %vm1083_vm1, %v6129_v27  ;;  %v3024_v27 = vrot.slane %v3023_v19, 4  ;;  %v3086_v1 = vrot.slane %v3084_v58, 5  ;;  %v3102_v9 = vshrl.u32 %v886_v54, 16  ;;  %v3108_v19 = vshll.u32 %v887_v2, 16 }
  0x98   : > { %v3043_v28 = vrot.slane %v3041_v21, 4  ;;  %v3052_v34 = vrot.slane %v3050_v26, 5  ;;  %v3081_v13 = vor.u32 %v3080_v0, %v3076_v62  ;;  %v6135_v21 = vld [vmem:[%s6694_s28 + $0x21c] sm:$0xff]   ;;  %v6136_v26 = vld [vmem:[%s6694_s28 + $0x228] sm:$0xff]   ;;  %v3122_v32 = vshll.u32 %v945_v15, 16 }
  0x99   : > { %v3029_v39 = vsel %vm6758_vm4, %v3024_v27, %v3028_v14  ;;  %v3104_v18 = vrot.slane %v3102_v9, 4  ;;  %v3126_v35 = vshrl.u32 %v945_v15, 16  ;;  %v3132_v43 = vshll.u32 %v946_v30, 16  ;;  %v951_v15 = vld [vmem:[%s6694_s28 + $0x25c] sm:$0xf] }
  0x9a   : > { %v3047_v40 = vor.u32 %v3046_v29, %v3043_v28  ;;  %v3057_v51 = vor.u32 %v3056_v42, %v3052_v34  ;;  %v3082_v23 = vrot.slane %v3081_v13, 4  ;;  %v3110_v29 = vrot.slane %v3108_v19, 5 }
  0x9b   : > { %v3128_v42 = vrot.slane %v3126_v35, 4  ;;  %v3137_v58 = vshrl.u32 %v947_v47, 16  ;;  %v4920_v9 = vcombine.low %v6716_v31, %v6716_v31  ;;  %v3174_v30 = vshrl.u32 %v951_v15, 16  ;;  %v953_v35 = vld [vmem:[%s6694_s28 + $0x264] sm:$0xf] }
  0x9c   : > { %v3048_v50 = vrot.slane %v3047_v40, 4  ;;  %v3058_v61 = vrot.slane %v3057_v51, 4  ;;  %v3087_v33 = vsel %vm6758_vm4, %v3082_v23, %v3086_v1  ;;  %v6850_v51 = vld [vmem:[%s6694_s28 + $0x4] sm:$0xf] }
  0x9d   : > { %5557 = vmatmul.mubr.msk.bf16.vlgmr.msra.gmra.mrb[0].mxu0 %vm1083_vm1, %v4970_v49  ;;  %v6134_v49 = vld [vmem:[%s6694_s28 + $0x210] sm:$0xff]   ;;  %v3139_v0 = vrot.slane %v3137_v58, 4 }
  0x9e   : > { %5403 = vmatmul.mubr.msk.bf16.gmra.mrb[16].mxu1 %vm1083_vm1, %v6130_v63  ;;  %5589 = vmatpush3.bf16.msra.mxu0 %v6741_v41  ;;  %v3033_v41 = vor.u32 %v3032_v24, %v3028_v14  ;;  %v3053_v60 = vsel %vm6758_vm4, %v3048_v50, %v3052_v34  ;;  %v3071_v63 = vor.u32 %v3070_v57, %v3067_v56  ;;  %v3091_v14 = vrot.slane %v3089_v4, 4  ;;  %v950_v4 = vld [vmem:[%s6694_s28 + $0x258] sm:$0xf] }
  0x9f   : > { %5560 = vmatprep.mubr.msk.bf16.mxu0 %vm1083_vm1, %v4971_v6  ;;  %5406 = vmatprep.mubr.msk.bf16.mxu1 %vm1083_vm1, %v6132_v8  ;;  %v3063_v5 = vsel %vm6758_vm4, %v3058_v61, %v3062_v45  ;;  %v3092_v6 = vshll.u32 %v885_v48, 16  ;;  %v3098_v8 = vshll.u32 %v886_v54, 16  ;;  %v3113_v24 = vshrl.u32 %v944_v10, 16  ;;  %v949_v54 = vld [vmem:[%s6694_s28 + $0x254] sm:$0x1] }
  0xa0   : > { %5956 = vmatprep.subr.msk.bf16.mxu0 %vm1132_vm0, %v6762_v7  ;;  %v3034_v44 = vrot.slane %v3033_v41, 4  ;;  %v4974_v11 = vcombine.low %v3053_v60, %v3063_v5  ;;  %v3072_v12 = vrot.slane %v3071_v63, 4  ;;  %v3134_v50 = vrot.slane %v3132_v43, 5 }
  0xa1   : > { %v3094_v16 = vrot.slane %v3092_v6, 5  ;;  %v3100_v17 = vrot.slane %v3098_v8, 5  ;;  %v3115_v41 = vrot.slane %v3113_v24, 4  ;;  %v4840_v60 = vcombine.low %v6846_v46, %v6850_v51 }
  0xa2   : > { %v3039_v55 = vsel %vm6758_vm4, %v3034_v44, %v3038_v25  ;;  %v3077_v22 = vsel %vm6758_vm4, %v3072_v12, %v3076_v62  ;;  %v3116_v25 = vshll.u32 %v944_v10, 16  ;;  %v3146_v61 = vshll.u32 %v948_v52, 16  ;;  %v6870_v12 = vld [vmem:[%s6694_s28 + $0x10] sm:$0xf] }
  0xa3   : > { %v4973_v59 = vcombine.low %v3029_v39, %v3039_v55  ;;  %v3095_v27 = vor.u32 %v3094_v16, %v3091_v14  ;;  %v3105_v28 = vor.u32 %v3104_v18, %v3100_v17  ;;  %v4975_v36 = vcombine.low %v3077_v22, %v3087_v33  ;;  %v6137_v55 = vld [vmem:[%s6694_s28 + $0x234] sm:$0xff]   ;;  %v952_v16 = vld [vmem:[%s6694_s28 + $0x260] sm:$0x1]  ;;  %v6880_v22 = vld [vmem:[%s6694_s28 + $0x1c] sm:$0xf] }
  0xa4   : > { %v3118_v34 = vrot.slane %v3116_v25, 5  ;;  %v3124_v39 = vrot.slane %v3122_v32, 5  ;;  %v3150_v62 = vshrl.u32 %v948_v52, 16  ;;  %v3156_v2 = vshll.u32 %v949_v54, 16 }
  0xa5   : > { %5561 = vmatmul.mubr.msk.bf16.gmra.mrb[4].mxu0 %vm1083_vm1, %v4972_v37  ;;  %v3096_v37 = vrot.slane %v3095_v27, 4  ;;  %v3148_v6 = vrot.slane %v3146_v61, 5  ;;  %v3164_v19 = vshll.u32 %v950_v4, 16  ;;  %v6886_v25 = vrot.slane %v4920_v9, 2  ;;  %v956_v61 = vld [vmem:[%s6694_s28 + $0x270] sm:$0xf] }
  0xa6   : > { %5407 = vmatmul.mubr.msk.bf16.gmra.mrb[20].mxu1 %vm1083_vm1, %v6133_v38  ;;  %5564 = vmatprep.mubr.msk.bf16.mxu0 %vm1083_vm1, %v4973_v59  ;;  %v3106_v38 = vrot.slane %v3105_v28, 4  ;;  %v3119_v40 = vor.u32 %v3118_v34, %v3115_v41  ;;  %v3140_v59 = vshll.u32 %v947_v47, 16  ;;  %v3152_v8 = vrot.slane %v3150_v62, 4 }
  0xa7   : > { %5410 = vmatprep.mubr.msk.bf16.mxu1 %vm1083_vm1, %v6134_v49  ;;  %v3101_v44 = vsel %vm6758_vm4, %v3096_v37, %v3100_v17  ;;  %v3129_v49 = vor.u32 %v3128_v42, %v3124_v39  ;;  %v3158_v14 = vrot.slane %v3156_v2, 5  ;;  %v3161_v17 = vshrl.u32 %v950_v4, 16  ;;  %v958_v4 = vld [vmem:[%s6694_s28 + $0x278] sm:$0x1] }
  0xa8   : > { %v3111_v45 = vsel %vm6758_vm4, %v3106_v38, %v3110_v29  ;;  %v3120_v48 = vrot.slane %v3119_v40, 4  ;;  %v3142_v1 = vrot.slane %v3140_v59, 5  ;;  %v3153_v13 = vor.u32 %v3152_v8, %v3148_v6  ;;  %v954_v40 = vld [vmem:[%s6694_s28 + $0x268] sm:$0xf] }
  0xa9   : > { %v4976_v53 = vcombine.low %v3101_v44, %v3111_v45  ;;  %v3130_v57 = vrot.slane %v3129_v49, 4  ;;  %v3166_v28 = vrot.slane %v3164_v19, 5  ;;  %v3170_v29 = vshll.u32 %v951_v15, 16  ;;  %v955_v44 = vld [vmem:[%s6694_s28 + $0x26c] sm:$0x1] }
  0xaa   : > { %v3125_v56 = vsel %vm6758_vm4, %v3120_v48, %v3124_v39  ;;  %v3143_v10 = vor.u32 %v3142_v1, %v3139_v0  ;;  %v3154_v23 = vrot.slane %v3153_v13, 4  ;;  %v2073_v33 = vsel %vm1132_vm0, %v6716_v31, 0  ;;  %v6907_v49 = vld [vmem:[%s6694_s28 + $0x24] sm:$0xf]  ;;  %v957_v1 = vld [vmem:[%s6694_s28 + $0x274] sm:$0xf] }
  0xab   : > { %v3135_v63 = vsel %vm6758_vm4, %v3130_v57, %v3134_v50  ;;  %v3180_v41 = vshll.u32 %v952_v16, 16  ;;  %v3172_v38 = vrot.slane %v3170_v29, 5  ;;  %v3176_v39 = vrot.slane %v3174_v30, 4  ;;  %v6910_v50 = vld [vmem:[%s6694_s28 + $0x28] sm:$0xf] }
  0xac   : > { %v4977_v5 = vcombine.low %v3125_v56, %v3135_v63  ;;  %v3144_v18 = vrot.slane %v3143_v10, 4  ;;  %v3159_v32 = vsel %vm6758_vm4, %v3154_v23, %v3158_v14  ;;  %v3185_v45 = vshrl.u32 %v953_v35, 16  ;;  %v6930_v13 = vld [vmem:[%s6694_s28 + $0x34] sm:$0xf] }
  0xad   : > { %5565 = vmatmul.mubr.msk.bf16.gmra.mrb[8].mxu0 %vm1083_vm1, %v4974_v11  ;;  %v6867_v11 = vld [vmem:[%s6694_s28 + $0xc] sm:$0xf]  ;;  %v3177_v31 = vor.u32 %v3176_v39, %v3172_v38  ;;  %v3182_v43 = vrot.slane %v3180_v41, 5  ;;  %v3188_v47 = vshll.u32 %v953_v35, 16  ;;  %v3194_v48 = vshll.u32 %v954_v40, 16 }
  0xae   : > { %5411 = vmatmul.mubr.msk.bf16.gmra.mrb[24].mxu1 %vm1083_vm1, %v6135_v21  ;;  %5568 = vmatprep.mubr.msk.bf16.mxu0 %vm1083_vm1, %v4975_v36  ;;  %v6877_v21 = vld [vmem:[%s6694_s28 + $0x18] sm:$0xf]  ;;  %v6884_v24 = vcombine.low %v6867_v11, %v6870_v12  ;;  %v3149_v27 = vsel %vm6758_vm4, %v3144_v18, %v3148_v6  ;;  %v3187_v54 = vrot.slane %v3185_v45, 4  ;;  %v3198_v57 = vshrl.u32 %v954_v40, 16  ;;  %v6948_v39 = vld [vmem:[%s6694_s28 + $0x3c] sm:$0xf] }
  0xaf   : > { %5414 = vmatprep.mubr.msk.bf16.mxu1 %vm1083_vm1, %v6136_v26  ;;  %v3163_v26 = vrot.slane %v3161_v17, 4  ;;  %v6896_v34 = vcombine.low %v6877_v21, %v6880_v22  ;;  %v4978_v36 = vcombine.low %v3149_v27, %v3159_v32  ;;  %v3196_v56 = vrot.slane %v3194_v48, 5  ;;  %v959_v32 = vld [vmem:[%s6694_s28 + $0x27c] sm:$0xf] }
  0xb0   : > { %v3204_v58 = vshll.u32 %v955_v44, 16  ;;  %v3200_v0 = vrot.slane %v3198_v57, 4  ;;  %v3209_v9 = vshrl.u32 %v956_v61, 16  ;;  %v3212_v10 = vshll.u32 %v956_v61, 16 }
  0xb1   : > { %v3167_v37 = vor.u32 %v3166_v28, %v3163_v26  ;;  %v3218_v14 = vshll.u32 %v957_v1, 16  ;;  %v3222_v15 = vshrl.u32 %v957_v1, 16  ;;  %v3228_v27 = vshll.u32 %v958_v4, 16  ;;  %v964_v1 = vld [vmem:[%s6694_s28 + $0x290] sm:$0x1] }
  0xb2   : > { %v3206_v2 = vrot.slane %v3204_v58, 5  ;;  %v3201_v8 = vor.u32 %v3200_v0, %v3196_v56  ;;  %v3211_v18 = vrot.slane %v3209_v9, 4  ;;  %v3214_v19 = vrot.slane %v3212_v10, 5  ;;  %v963_v0 = vld [vmem:[%s6694_s28 + $0x28c] sm:$0xf] }
  0xb3   : > { %v3168_v42 = vrot.slane %v3167_v37, 4  ;;  %v3220_v23 = vrot.slane %v3218_v14, 5  ;;  %v3224_v26 = vrot.slane %v3222_v15, 4  ;;  %v3230_v35 = vrot.slane %v3228_v27, 5  ;;  %v6972_v9 = vld [vmem:[%s6694_s28 + $0x4c] sm:$0xf] }
  0xb4   : > { %v3202_v17 = vrot.slane %v3201_v8, 4  ;;  %v3215_v30 = vor.u32 %v3214_v19, %v3211_v18  ;;  %v6969_v8 = vld [vmem:[%s6694_s28 + $0x48] sm:$0xf]  ;;  %v3270_v18 = vshrl.u32 %v963_v0, 16  ;;  %v1593_v19 = vshrl.u32 %v6846_v46, 16 }
  0xb5   : > { %5569 = vmatmul.mubr.msk.bf16.gmra.mrb[12].mxu0 %vm1083_vm1, %v4976_v53  ;;  %v3173_v52 = vsel %vm6758_vm4, %v3168_v42, %v3172_v38  ;;  %v3178_v53 = vrot.slane %v3177_v31, 4  ;;  %v3225_v41 = vor.u32 %v3224_v26, %v3220_v23  ;;  %v961_v38 = vld [vmem:[%s6694_s28 + $0x284] sm:$0x1]  ;;  %v3233_v42 = vshrl.u32 %v959_v32, 16 }
  0xb6   : > { %5415 = vmatmul.mubr.msk.bf16.gmra.mrb[28].mxu1 %vm1083_vm1, %v6137_v55  ;;  %5572 = vmatprep.mubr.msk.bf16.mxu0 %vm1083_vm1, %v4977_v5  ;;  %v3190_v55 = vrot.slane %v3188_v47, 5  ;;  %v6926_v5 = vld [vmem:[%s6694_s28 + $0x30] sm:$0xf]  ;;  %v3207_v29 = vsel %vm6758_vm4, %v3202_v17, %v3206_v2  ;;  %v3216_v37 = vrot.slane %v3215_v30, 4  ;;  %v3236_v31 = vshll.u32 %v959_v32, 16 }
  0xb7   : > { %5420 = vmatprep.mubr.msk.bf16.mxu1 %vm1083_vm1, %v4840_v60  ;;  %v3183_v59 = vsel %vm6758_vm4, %v3178_v53, %v3182_v43  ;;  %v6920_v60 = vcombine.low %v6907_v49, %v6910_v50  ;;  %v6938_v28 = vcombine.low %v6926_v5, %v6930_v13  ;;  %v3226_v40 = vrot.slane %v3225_v41, 4  ;;  %v6952_v43 = vld [vmem:[%s6694_s28 + $0x40] sm:$0xf] }
  0xb8   : > { %v4979_v62 = vcombine.low %v3173_v52, %v3183_v59  ;;  %v3191_v63 = vor.u32 %v3190_v55, %v3187_v54  ;;  %v3221_v44 = vsel %vm6758_vm4, %v3216_v37, %v3220_v23  ;;  %v3235_v52 = vrot.slane %v3233_v42, 4  ;;  %v962_v55 = vld [vmem:[%s6694_s28 + $0x288] sm:$0xf] }
  0xb9   : > { %v3231_v48 = vsel %vm6758_vm4, %v3226_v40, %v3230_v35  ;;  %v3238_v53 = vrot.slane %v3236_v31, 5  ;;  %v3252_v54 = vshll.u32 %v961_v38, 16  ;;  %v6961_v59 = vcombine.low %v6948_v39, %v6952_v43  ;;  %v966_v35 = vld [vmem:[%s6694_s28 + $0x298] sm:$0xf] }
  0xba   : > { %v3192_v6 = vrot.slane %v3191_v63, 4  ;;  %v3257_v2 = vshrl.u32 %v962_v55, 16  ;;  %v3266_v17 = vshll.u32 %v963_v0, 16  ;;  %v3276_v26 = vshll.u32 %v964_v1, 16 }
  0xbb   : > { %v3239_v61 = vor.u32 %v3238_v53, %v3235_v52  ;;  %v3254_v63 = vrot.slane %v3252_v54, 5  ;;  %v6981_v27 = vcombine.low %v6969_v8, %v6972_v9  ;;  %v3272_v41 = vrot.slane %v3270_v18, 4  ;;  %v7002_v52 = vld [vmem:[%s6694_s28 + $0x58] sm:$0xf] }
  0xbc   : > { %v3197_v16 = vsel %vm6758_vm4, %v3192_v6, %v3196_v56  ;;  %v4981_v56 = vcombine.low %v3221_v44, %v3231_v48  ;;  %v3260_v6 = vshll.u32 %v962_v55, 16  ;;  %v3259_v14 = vrot.slane %v3257_v2, 4  ;;  %v967_v44 = vld [vmem:[%s6694_s28 + $0x29c] sm:$0x1]  ;;  %v6999_v48 = vld [vmem:[%s6694_s28 + $0x54] sm:$0xf] }
  0xbd   : > { %5573 = vmatmul.mubr.msk.bf16.gmra.mrb[16].mxu0 %vm1083_vm1, %v4978_v36  ;;  %v960_v36 = vld [vmem:[%s6694_s28 + $0x280] sm:$0xf]  ;;  %v3240_v4 = vrot.slane %v3239_v61, 4  ;;  %v1602_v37 = vshll.u32 %v6850_v51, 16  ;;  %v6992_v38 = vsel %vm1132_vm0, %v6762_v7, 0  ;;  %v3278_v31 = vrot.slane %v3276_v26, 5 }
  0xbe   : > { %5421 = vmatmul.mubr.msk.bf16.vlgmr.msra.gmra.mrb[0].mxu1 %vm1083_vm1, %v6884_v24  ;;  %5576 = vmatprep.mubr.msk.bf16.mxu0 %vm1083_vm1, %v4979_v62  ;;  %v3242_v45 = vshll.u32 %v960_v36, 16  ;;  %v3246_v47 = vshrl.u32 %v960_v36, 16  ;;  %v1596_v36 = vshll.u32 %v6846_v46, 16  ;;  %v3290_v46 = vshll.u32 %v966_v35, 16  ;;  %v7018_v2 = vld [vmem:[%s6694_s28 + $0x180] sm:$0xf] }
  0xbf   : > { %5453 = vmatpush3.bf16.msra.mxu1 %v2073_v33  ;;  %5424 = vmatprep.mubr.msk.bf16.mxu1 %vm1083_vm1, %v6896_v34  ;;  %v4980_v33 = vcombine.low %v3197_v16, %v3207_v29  ;;  %v3262_v16 = vrot.slane %v3260_v6, 5  ;;  %v965_v29 = vld [vmem:[%s6694_s28 + $0x294] sm:$0xf]  ;;  %v7004_v53 = vrot.slane %v1593_v19, 4  ;;  %v3300_v61 = vshll.u32 %v967_v44, 16 }
  0xc0   : > { %5951 = vmatprep.subr.msk.bf16.mxu1 %vm1132_vm0, %v6886_v25  ;;  %v3244_v57 = vrot.slane %v3242_v45, 5  ;;  %v3248_v58 = vrot.slane %v3246_v47, 4  ;;  %v3281_v45 = vshrl.u32 %v965_v29, 16  ;;  %v3284_v47 = vshll.u32 %v965_v29, 16  ;;  %v7032_v19 = vld [vmem:[%s6694_s28 + $0x18c] sm:$0xf] }
  0xc1   : > { %v3263_v32 = vor.u32 %v3262_v16, %v3259_v14  ;;  %v7015_v1 = vcombine.low %v6999_v48, %v7002_v52  ;;  %v7023_v6 = vrot.slane %v1602_v37, 5  ;;  %v1620_v16 = vshll.u32 %v6867_v11, 16 }
  0xc2   : > { %v3249_v62 = vor.u32 %v3248_v58, %v3244_v57  ;;  %v3245_v15 = vsel %vm6758_vm4, %v3240_v4, %v3244_v57  ;;  %v3283_v55 = vrot.slane %v3281_v45, 4  ;;  %v3292_v57 = vrot.slane %v3290_v46, 5  ;;  %v7021_v4 = vld [vmem:[%s6694_s28 + $0x184] sm:$0xf] }
  0xc3   : > { %v3264_v40 = vrot.slane %v3263_v32, 4  ;;  %v3294_v58 = vshrl.u32 %v966_v35, 16  ;;  %v1630_v18 = vshrl.u32 %v6870_v12, 16  ;;  %v3302_v29 = vrot.slane %v3300_v61, 5 }
  0xc4   : > { %v3250_v10 = vrot.slane %v3249_v62, 4  ;;  %v7008_v62 = vrot.slane %v1596_v36, 5  ;;  %v1641_v32 = vshrl.u32 %v6877_v21, 16  ;;  %v1654_v35 = vshrl.u32 %v6880_v22, 16 }
  0xc5   : > { %5577 = vmatmul.mubr.msk.bf16.gmra.mrb[20].mxu0 %vm1083_vm1, %v4980_v33  ;;  %v3268_v33 = vrot.slane %v3266_v17, 5  ;;  %v1626_v17 = vshll.u32 %v6870_v12, 16  ;;  %v7060_v44 = vrot.slane %v1620_v16, 5  ;;  %v1668_v46 = vshll.u32 %v6907_v49, 16 }
  0xc6   : > { %5425 = vmatmul.mubr.msk.bf16.gmra.mrb[4].mxu1 %vm1083_vm1, %v6920_v60  ;;  %5580 = vmatprep.mubr.msk.bf16.mxu0 %vm1083_vm1, %v4981_v56  ;;  %v3255_v23 = vsel %vm6758_vm4, %v3250_v10, %v3254_v63  ;;  %v3286_v56 = vrot.slane %v3284_v47, 5  ;;  %v1606_v63 = vshrl.u32 %v6850_v51, 16  ;;  %v1617_v51 = vshrl.u32 %v6867_v11, 16  ;;  %v7038_v11 = vld [vmem:[%s6694_s28 + $0x190] sm:$0xf] }
  0xc7   : > { %5428 = vmatprep.mubr.msk.bf16.mxu1 %vm1083_vm1, %v6938_v28  ;;  %v4982_v30 = vcombine.low %v3245_v15, %v3255_v23  ;;  %v3273_v42 = vor.u32 %v3272_v41, %v3268_v33  ;;  %v3269_v7 = vsel %vm6758_vm4, %v3264_v40, %v3268_v33  ;;  %v3296_v15 = vrot.slane %v3294_v58, 4  ;;  %v7053_v40 = vld [vmem:[%s6694_s28 + $0x198] sm:$0xf] }
  0xc8   : > { %v3287_v14 = vor.u32 %v3286_v56, %v3283_v55  ;;  %v7043_v12 = vrot.slane %v1606_v63, 4  ;;  %v1644_v33 = vshll.u32 %v6877_v21, 16  ;;  %v1650_v41 = vshll.u32 %v6880_v22, 16 }
  0xc9   : > { %v3274_v54 = vrot.slane %v3273_v42, 4  ;;  %v3297_v26 = vor.u32 %v3296_v15, %v3292_v57  ;;  %v7056_v42 = vld [vmem:[%s6694_s28 + $0x19c] sm:$0xf]  ;;  %v7062_v45 = vrot.slane %v1626_v17, 5  ;;  %v7066_v21 = vcombine.low %v7032_v19, %v7038_v11 }
  0xca   : > { %v3288_v23 = vrot.slane %v3287_v14, 4  ;;  %v7068_v22 = vrot.slane %v1630_v18, 4  ;;  %v1665_v47 = vshrl.u32 %v6907_v49, 16  ;;  %v1678_v55 = vshrl.u32 %v6910_v50, 16 }
  0xcb   : > { %v3279_v0 = vsel %vm6758_vm4, %v3274_v54, %v3278_v31  ;;  %v3298_v37 = vrot.slane %v3297_v26, 4  ;;  %v7058_v31 = vrot.slane %v1617_v51, 4  ;;  %v1674_v54 = vshll.u32 %v6910_v50, 16  ;;  %v7103_v51 = vld [vmem:[%s6694_s28 + $0x1a8] sm:$0xf] }
  0xcc   : > { %v4983_v10 = vcombine.low %v3269_v7, %v3279_v0  ;;  %v3293_v36 = vsel %vm6758_vm4, %v3288_v23, %v3292_v57  ;;  %v7078_v57 = vcombine.low %v7053_v40, %v7056_v42  ;;  %v7080_v58 = vrot.slane %v1641_v32, 4  ;;  %v7114_v23 = vld [vmem:[%s6694_s28 + $0x1b0] sm:$0xf] }
  0xcd   : > { %5581 = vmatmul.mubr.msk.bf16.gmra.mrb[24].mxu0 %vm1083_vm1, %v4982_v30  ;;  %v4848_v30 = vcombine.low %v7018_v2, %v7021_v4  ;;  %v3303_v7 = vsel %vm6758_vm4, %v3298_v37, %v3302_v29  ;;  %v7082_v61 = vrot.slane %v1644_v33, 5  ;;  %v7084_v63 = vrot.slane %v1650_v41, 5 }
  0xce   : > { %5429 = vmatmul.mubr.msk.bf16.gmra.mrb[8].mxu1 %vm1083_vm1, %v6961_v59  ;;  %5584 = vmatprep.mubr.msk.bf16.mxu0 %vm1083_vm1, %v4983_v10  ;;  %v4984_v56 = vcombine.low %v3293_v36, %v3303_v7  ;;  %7876 = vst [vmem:[#allocation11_spill] sm:$0xff] %v7078_v57  ;;  %v7086_v49 = vrot.slane %v1654_v35, 4  ;;  %v1689_v0 = vshrl.u32 %v6926_v5, 16  ;;  %v1692_v50 = vshll.u32 %v6926_v5, 16  ;;  %v7094_v10 = vld [vmem:[%s6694_s28 + $0x1a4] sm:$0xf] }
  0xcf   : > { %5432 = vmatprep.mubr.msk.bf16.mxu1 %vm1083_vm1, %v6981_v27  ;;  %v1698_v14 = vshll.u32 %v6930_v13, 16  ;;  %v1702_v15 = vshrl.u32 %v6930_v13, 16  ;;  %v7105_v5 = vrot.slane %v1665_v47, 4  ;;  %v7107_v16 = vrot.slane %v1668_v46, 5  ;;  %v7117_v13 = vld [vmem:[%s6694_s28 + $0x1b4] sm:$0xf] }
  0xd0   : > { %v7109_v17 = vrot.slane %v1674_v54, 5  ;;  %v7111_v18 = vrot.slane %v1678_v55, 4  ;;  %v1713_v26 = vshrl.u32 %v6948_v39, 16  ;;  %v1716_v29 = vshll.u32 %v6948_v39, 16  ;;  %v7144_v54 = vld [vmem:[%s6694_s28 + $0x1bc] sm:$0xf] }
  0xd1   : > { %v7127_v32 = vrot.slane %v1692_v50, 5  ;;  %v7129_v33 = vrot.slane %v1698_v14, 5  ;;  %v7131_v41 = vrot.slane %v1702_v15, 4  ;;  %v1722_v35 = vshll.u32 %v6952_v43, 16  ;;  %v7147_v55 = vld [vmem:[%s6694_s28 + $0x1c0] sm:$0xf] }
  0xd2   : > { %v1726_v36 = vshrl.u32 %v6952_v43, 16  ;;  %v1737_v37 = vshrl.u32 %v6969_v8, 16  ;;  %v1740_v39 = vshll.u32 %v6969_v8, 16  ;;  %v7139_v47 = vcombine.low %v7114_v23, %v7117_v13  ;;  %v7152_v43 = vld [vmem:[%s7849_s2 + $0x10] sm:$0x3] }
  0xd3   : > { %v1746_v46 = vshll.u32 %v6972_v9, 16  ;;  %v1750_v7 = vshrl.u32 %v6972_v9, 16  ;;  %7879 = vst [vmem:[#allocation14_spill] sm:$0xff] %v7152_v43  ;;  %v7156_v8 = vrot.slane %v1716_v29, 5  ;;  %v1764_v50 = vshll.u32 %v6999_v48, 16 }
  0xd4   : > { %7878 = vst [vmem:[#allocation13_spill] sm:$0xff] %v7139_v47  ;;  %v7165_v9 = vld [vmem:[%s6694_s28 + $0x1c8] sm:$0xf]  ;;  %v7168_v14 = vld [vmem:[%s6694_s28 + $0x1cc] sm:$0xf]  ;;  %v7170_v15 = vrot.slane %v1722_v35, 5 }
  0xd5   : > { %5585 = vmatmul.mubr.msk.bf16.gmra.mrb[28].mxu0 %vm1083_vm1, %v4984_v56  ;;  %v7154_v56 = vrot.slane %v1713_v26, 4  ;;  %7880 = vst [vmem:[#allocation15_spill] sm:$0xff] %v7168_v14  ;;  %v1770_v26 = vshll.u32 %v7002_v52, 16  ;;  %v1774_v29 = vshrl.u32 %v7002_v52, 16  ;;  %v1785_v20 = vshrl.u32 %v7018_v2, 16 }
  0xd6   : > { %5433 = vmatmul.mubr.msk.bf16.gmra.mrb[12].mxu1 %vm1083_vm1, %v7015_v1  ;;  %5590 = vmatprep.mubr.msk.bf16.mxu0 %vm1083_vm1, %v6884_v24  ;;  %v7119_v24 = vrot.slane %v1689_v0, 4  ;;  %v1761_v0 = vshrl.u32 %v6999_v48, 16  ;;  %v7180_v48 = vrot.slane %v1737_v37, 4  ;;  %v1788_v35 = vshll.u32 %v7018_v2, 16 }
  0xd7   : > { %5436 = vmatprep.mubr.msk.bf16.mxu1 %vm1083_vm1, %v4848_v30  ;;  %v7125_v30 = vcombine.low %v7094_v10, %v7103_v51  ;;  %v7190_v52 = vrot.slane %v1746_v46, 5  ;;  %v7198_v2 = vrot.slane %v1764_v50, 5  ;;  %v7205_v46 = vrot.slane %v1770_v26, 5 }
  0xd8   : > { %v7196_v37 = vrot.slane %v1761_v0, 4  ;;  %v7215_v0 = vrot.slane %v1788_v35, 5  ;;  %v1812_v50 = vshll.u32 %v7032_v19, 16  ;;  %v1609_v26 = vor.u32 %v7043_v12, %v7023_v6  ;;  %v832_v12 = vld [vmem:[%s6694_s28 + $0x20] sm:$0x1] }
  0xd9   : > { %7877 = vst [vmem:[#allocation12_spill] sm:$0xff] %v7125_v30  ;;  %7881 = vst [vmem:[#allocation16_spill] sm:$0xff] %v7198_v2  ;;  %v1599_v2 = vor.u32 %v7008_v62, %v7004_v53 }
  0xda   : > { %7883 = vst [vmem:[#allocation18_spill] sm:$0xff] %v7205_v46  ;;  %7886 = vst [vmem:[#allocation21_spill] sm:$0xff] %v7215_v0  ;;  %v829_v46 = vld [vmem:[%s6694_s28 + $0x14] sm:$0x1]  ;;  %v1610_v62 = vrot.slane %v1609_v26, 4  ;;  %v1833_v26 = vshrl.u32 %v7053_v40, 16 }
  0xdb   : > { %v1600_v53 = vrot.slane %v1599_v2, 4  ;;  %v1636_v2 = vshll.u32 %v829_v46, 16  ;;  %v1660_v46 = vshll.u32 %v832_v12, 16 }
  0xdd   : > { %5591 = vmatmul.mubr.msk.bf16.vlgmr.msra.gmra.mrb[0].mxu0 %vm1083_vm1, %v6896_v34  ;;  %v7178_v34 = vrot.slane %v1726_v36, 4  ;;  %v1798_v36 = vshrl.u32 %v7021_v4, 16 }
  0xde   : > { %5437 = vmatmul.mubr.msk.bf16.gmra.mrb[16].mxu1 %vm1083_vm1, %v7066_v21  ;;  %5623 = vmatpush3.bf16.msra.mxu0 %v6992_v38  ;;  %v7192_v38 = vrot.slane %v1750_v7, 4  ;;  %v7209_v7 = vrot.slane %v1785_v20, 4 }
  0xdf   : > { %5440 = vmatprep.mubr.msk.bf16.mxu1 %vm1083_vm1, %v7078_v57  ;;  %5594 = vmatprep.mubr.msk.bf16.mxu0 %vm1083_vm1, %v6920_v60  ;;  %v826_v57 = vld [vmem:[%s6694_s28 + $0x8] sm:$0x1]  ;;  %v1794_v60 = vshll.u32 %v7021_v4, 16  ;;  %v7213_v4 = vcombine.low %v7165_v9, %v7168_v14  ;;  %v7225_v20 = vrot.slane %v1798_v36, 4  ;;  %v1818_v14 = vshll.u32 %v7038_v11, 16 }
  0xe0   : > { %5957 = vmatprep.subr.msk.bf16.mxu0 %vm1132_vm0, %v7152_v43  ;;  %v7207_v43 = vrot.slane %v1774_v29, 4  ;;  %7884 = vst [vmem:[#allocation19_spill] sm:$0xff] %v7209_v7  ;;  %v7229_v7 = vld [vmem:[%s6694_s28 + $0x1d4] sm:$0xf]  ;;  %v1612_v35 = vshll.u32 %v826_v57, 16  ;;  %v1633_v36 = vor.u32 %v7068_v22, %v7062_v45 }
  0xe1   : > { %7885 = vst [vmem:[#allocation20_spill] sm:$0xff] %v7213_v4  ;;  %v7223_v29 = vrot.slane %v1794_v60, 5  ;;  %v1822_v60 = vshrl.u32 %v7038_v11, 16  ;;  %v7246_v57 = vld [vmem:[%s6694_s28 + $0x1d8] sm:$0xf]  ;;  %v1647_v11 = vor.u32 %v7082_v61, %v7080_v58 }
  0xe5   : > { %5595 = vmatmul.mubr.msk.bf16.gmra.mrb[4].mxu0 %vm1083_vm1, %v6938_v28  ;;  %v1614_v28 = vrot.slane %v1612_v35, 5  ;;  %v1648_v35 = vrot.slane %v1647_v11, 4 }
  0xe6   : > { %5441 = vmatmul.mubr.msk.bf16.gmra.mrb[20].mxu1 %vm1083_vm1, %v7125_v30  ;;  %v7182_v30 = vrot.slane %v1740_v39, 5  ;;  %v1809_v39 = vshrl.u32 %v7032_v19, 16  ;;  %v1623_v19 = vor.u32 %v7060_v44, %v7058_v31  ;;  %5598 = vmatprep.mubr.msk.bf16.mxu0 %vm1083_vm1, %v6961_v59  ;;  %v1605_v31 = vsel %vm6758_vm4, %v1600_v53, %v7023_v6 }
  0xe7   : > { %5444 = vmatprep.mubr.msk.bf16.mxu1 %vm1083_vm1, %v7139_v47  ;;  %v7203_v47 = vcombine.low %v7144_v54, %v7147_v55  ;;  %v1657_v59 = vor.u32 %v7086_v49, %v7084_v63  ;;  %v7259_v44 = vrot.slane %v1818_v14, 5  ;;  %v1615_v22 = vsel %vm6758_vm4, %v1610_v62, %v1614_v28 }
  0xe8   : > { %v7231_v0 = vrot.slane %v1809_v39, 4  ;;  %v7250_v39 = vrot.slane %v1812_v50, 5  ;;  %v7266_v50 = vcombine.low %v7229_v7, %v7246_v57  ;;  %v1624_v6 = vrot.slane %v1623_v19, 4  ;;  %v835_v19 = vld [vmem:[%s6694_s28 + $0x2c] sm:$0x1] }
  0xe9   : > { %7882 = vst [vmem:[#allocation17_spill] sm:$0xff] %v7203_v47  ;;  %v1658_v58 = vrot.slane %v1657_v59, 4  ;;  %v4872_v61 = vcombine.low %v1605_v31, %v1615_v22  ;;  %v1634_v53 = vrot.slane %v1633_v36, 4  ;;  %v1638_v49 = vrot.slane %v1636_v2, 5  ;;  %v838_v2 = vld [vmem:[%s6694_s28 + $0x38] sm:$0x1] }
  0xea   : > { %v1662_v14 = vrot.slane %v1660_v46, 5  ;;  %v1842_v62 = vshll.u32 %v7056_v42, 16  ;;  %v1653_v12 = vsel %vm6758_vm4, %v1648_v35, %v7084_v63  ;;  %v7276_v28 = vrot.slane %v1833_v26, 4  ;;  %v7298_v59 = vld [vmem:[%s7041_s27] sm:$0xf] }
  0xeb   : > { %v1846_v31 = vshrl.u32 %v7056_v42, 16  ;;  %v1857_v36 = vshrl.u32 %v7094_v10, 16  ;;  %v1629_v63 = vsel %vm6758_vm4, %v1624_v6, %v7062_v45  ;;  %v1671_v42 = vor.u32 %v7107_v16, %v7105_v5 }
  0xec   : > { %v1681_v45 = vor.u32 %v7111_v18, %v7109_v17  ;;  %v1684_v26 = vshll.u32 %v835_v19, 16  ;;  %v1695_v22 = vor.u32 %v7127_v32, %v7119_v24  ;;  %v1705_v16 = vor.u32 %v7131_v41, %v7129_v33 }
  0xed   : > { %5599 = vmatmul.mubr.msk.bf16.gmra.mrb[8].mxu0 %vm1083_vm1, %v6981_v27  ;;  %v1639_v27 = vsel %vm6758_vm4, %v1634_v53, %v1638_v49  ;;  %v1708_v46 = vshll.u32 %v838_v2, 16  ;;  %v7315_v6 = vrot.slane %v1842_v62, 5  ;;  %v7317_v35 = vrot.slane %v1846_v31, 4  ;;  %v841_v62 = vld [vmem:[%s6694_s28 + $0x44] sm:$0x1] }
  0xee   : > { %5445 = vmatmul.mubr.msk.bf16.gmra.mrb[24].mxu1 %vm1083_vm1, %v7203_v47  ;;  %v1836_v47 = vshll.u32 %v7053_v40, 16  ;;  %v1860_v40 = vshll.u32 %v7094_v10, 16  ;;  %5602 = vmatprep.mubr.msk.bf16.mxu0 %vm1083_vm1, %v7015_v1  ;;  %v7301_v10 = vld [vmem:[%s7041_s27 + $0x4] sm:$0xf]  ;;  %v1866_v1 = vshll.u32 %v7103_v51, 16  ;;  %v1870_v18 = vshrl.u32 %v7103_v51, 16 }
  0xef   : > { %5448 = vmatprep.mubr.msk.bf16.mxu1 %vm1083_vm1, %v7213_v4  ;;  %v7268_v4 = vrot.slane %v1822_v60, 4  ;;  %v1663_v60 = vsel %vm6758_vm4, %v1658_v58, %v1662_v14  ;;  %v7319_v58 = vrot.slane %v1857_v36, 4  ;;  %v1881_v24 = vshrl.u32 %v7114_v23, 16 }
  0xf0   : > { %v7291_v11 = vcombine.low %v1653_v12, %v1663_v60  ;;  %v7310_v5 = vrot.slane %v1836_v47, 5  ;;  %v5002_v32 = vcombine.low %v7298_v59, %v7301_v10  ;;  %v7327_v47 = vcombine.low %v1629_v63, %v1639_v27  ;;  %v844_v63 = vld [vmem:[%s6694_s28 + $0x50] sm:$0x1] }
  0xf1   : > { %v1672_v41 = vrot.slane %v1671_v42, 4  ;;  %v1682_v53 = vrot.slane %v1681_v45, 4  ;;  %v1686_v49 = vrot.slane %v1684_v26, 5  ;;  %v1696_v14 = vrot.slane %v1695_v22, 4  ;;  %v6183_v26 = vld [vmem:[%s7849_s2 + $0x8] sm:$0xf] }
  0xf2   : > { %v7330_v12 = vrot.slane %v1866_v1, 5  ;;  %v2401_v51 = vsel %vm1132_vm0, %v6886_v25, 0  ;;  %v1706_v19 = vrot.slane %v1705_v16, 4  ;;  %v1710_v31 = vrot.slane %v1708_v46, 5 }
  0xf3   : > { %v7334_v36 = vrot.slane %v1870_v18, 4  ;;  %v1884_v60 = vshll.u32 %v7114_v23, 16  ;;  %v1890_v2 = vshll.u32 %v7117_v13, 16  ;;  %v1894_v42 = vshrl.u32 %v7117_v13, 16 }
  0xf4   : > { %v1905_v27 = vshrl.u32 %v7144_v54, 16  ;;  %v1729_v25 = vor.u32 %v7178_v34, %v7170_v15  ;;  %v1732_v45 = vshll.u32 %v841_v62, 16  ;;  %v1908_v23 = vshll.u32 %v7144_v54, 16 }
  0xf5   : > { %5603 = vmatmul.mubr.msk.bf16.gmra.mrb[12].mxu0 %vm1083_vm1, %v5002_v32  ;;  %v1677_v13 = vsel %vm6758_vm4, %v1672_v41, %v7109_v17  ;;  %v1711_v54 = vsel %vm6758_vm4, %v1706_v19, %v1710_v31  ;;  %v1753_v34 = vor.u32 %v7192_v38, %v7190_v52  ;;  %v1756_v17 = vshll.u32 %v844_v63, 16  ;;  %v906_v19 = vld [vmem:[%s6694_s28 + $0x188] sm:$0x1] }
  0xf6   : > { %5449 = vmatmul.mubr.msk.bf16.gmra.mrb[28].mxu1 %vm1083_vm1, %v7266_v50  ;;  %5606 = vmatprep.mubr.msk.bf16.mxu0 %vm1083_vm1, %v7066_v21  ;;  %v1743_v21 = vor.u32 %v7182_v30, %v7180_v48  ;;  %v7373_v22 = vrot.slane %v1884_v60, 5  ;;  %v1914_v1 = vshll.u32 %v7147_v55, 16  ;;  %v7376_v30 = vrot.slane %v1890_v2, 5  ;;  %v7888_v63 = vld [vmem:[#allocation11_spill] sm:$0xff] }
  0xf7   : > { %5454 = vmatprep.mubr.msk.bf16.mxu1 %vm1083_vm1, %v4872_v61  ;;  %v7322_v61 = vrot.slane %v1860_v40, 5  ;;  %v1719_v40 = vor.u32 %v7156_v8, %v7154_v56  ;;  %v1687_v56 = vsel %vm6758_vm4, %v1682_v53, %v1686_v49  ;;  %v1701_v8 = vsel %vm6758_vm4, %v1696_v14, %v7129_v33  ;;  %v847_v53 = vld [vmem:[%s6694_s28 + $0x5c] sm:$0x1] }
  0xf8   : > { %v7371_v33 = vrot.slane %v1881_v24, 4  ;;  %v7378_v48 = vcombine.low %v1677_v13, %v1687_v56  ;;  %v1730_v38 = vrot.slane %v1729_v25, 4  ;;  %v1734_v46 = vrot.slane %v1732_v45, 5  ;;  %v7891_v13 = vld [vmem:[#allocation21_spill] sm:$0xff] }
  0xf9   : > { %v1720_v16 = vrot.slane %v1719_v40, 4  ;;  %v7380_v18 = vrot.slane %v1894_v42, 4  ;;  %v7382_v32 = vrot.slane %v1905_v27, 4  ;;  %v1918_v41 = vshrl.u32 %v7147_v55, 16  ;;  %v7887_v40 = vld [vmem:[#allocation16_spill] sm:$0xff]  ;;  %v7889_v27 = vld [vmem:[#allocation18_spill] sm:$0xff] }
  0xfa   : > { %v7385_v24 = vcombine.low %v1701_v8, %v1711_v54  ;;  %v7388_v49 = vrot.slane %v1908_v23, 5  ;;  %v1744_v14 = vrot.slane %v1743_v21, 4  ;;  %v1754_v62 = vrot.slane %v1753_v34, 4  ;;  %v7890_v23 = vld [vmem:[#allocation19_spill] sm:$0xff]  ;;  %v7892_v8 = vld [vmem:[#allocation12_spill] sm:$0xff] }
  0xfb   : > { %v7391_v31 = vrot.slane %v1914_v1, 5  ;;  %v1929_v60 = vshrl.u32 %v7165_v9, 16  ;;  %v1725_v2 = vsel %vm6758_vm4, %v1720_v16, %v7170_v15  ;;  %v1767_v55 = vor.u32 %v7887_v40, %v7196_v37  ;;  %v7893_v34 = vld [vmem:[#allocation15_spill] sm:$0xff]  ;;  %v909_v1 = vld [vmem:[%s6694_s28 + $0x194] sm:$0x1] }
  0xfc   : > { %v1735_v42 = vsel %vm6758_vm4, %v1730_v38, %v1734_v46  ;;  %v1777_v25 = vor.u32 %v7207_v43, %v7889_v27  ;;  %v1780_v45 = vshll.u32 %v847_v53, 16  ;;  %v1791_v15 = vor.u32 %v7891_v13, %v7890_v23 }
  0xfd   : > { %5607 = vmatmul.mubr.msk.bf16.gmra.mrb[16].mxu0 %vm1083_vm1, %v7888_v63  ;;  %v7409_v56 = vrot.slane %v1918_v41, 4  ;;  %v1932_v37 = vshll.u32 %v7165_v9, 16  ;;  %v1801_v54 = vor.u32 %v7225_v20, %v7223_v29  ;;  %v1804_v21 = vshll.u32 %v906_v19, 16 }
  0xfe   : > { %5455 = vmatmul.mubr.msk.bf16.vlgmr.msra.gmra.mrb[0].mxu1 %vm1083_vm1, %v7327_v47  ;;  %5610 = vmatprep.mubr.msk.bf16.mxu0 %vm1083_vm1, %v7892_v8  ;;  %v1938_v43 = vshll.u32 %v7893_v34, 16  ;;  %v7426_v16 = vrot.slane %v1929_v60, 4  ;;  %v7428_v38 = vcombine.low %v1725_v2, %v1735_v42  ;;  %v1768_v46 = vrot.slane %v1767_v55, 4 }
  0xff   : > { %5487 = vmatpush3.bf16.msra.mxu1 %v2401_v51  ;;  %5458 = vmatprep.mubr.msk.bf16.mxu1 %vm1083_vm1, %v7291_v11  ;;  %v1758_v51 = vrot.slane %v1756_v17, 5  ;;  %v1942_v17 = vshrl.u32 %v7893_v34, 16  ;;  %v1815_v20 = vor.u32 %v7250_v39, %v7231_v0  ;;  %v1778_v41 = vrot.slane %v1777_v25, 4  ;;  %v912_v39 = vld [vmem:[%s6694_s28 + $0x1a0] sm:$0x1] }
 0x100   : > { %5953 = vmatprep.subr.msk.bf16.mxu1 %vm1132_vm0, %v6183_v26  ;;  %v1749_v26 = vsel %vm6758_vm4, %v1744_v14, %v7190_v52  ;;  %v1782_v53 = vrot.slane %v1780_v45, 5  ;;  %v1792_v19 = vrot.slane %v1791_v15, 4  ;;  %v1825_v40 = vor.u32 %v7268_v4, %v7259_v44  ;;  %v7894_v45 = vld [vmem:[#allocation13_spill] sm:$0xff] }
 0x101   : > { %v1759_v9 = vsel %vm6758_vm4, %v1754_v62, %v1758_v51  ;;  %v1802_v14 = vrot.slane %v1801_v54, 4  ;;  %v1806_v62 = vrot.slane %v1804_v21, 5  ;;  %v1828_v51 = vshll.u32 %v909_v1, 16 }
 0x102   : > { %v7434_v52 = vcombine.low %v1749_v26, %v1759_v9  ;;  %v7436_v60 = vrot.slane %v1932_v37, 5  ;;  %v7438_v63 = vrot.slane %v1938_v43, 5  ;;  %v4029_v2 = vshrl.u32 %v7298_v59, 16  ;;  %v7465_v37 = vld [vmem:[%s7041_s27 + $0x30] sm:$0xf] }
 0x103   : > { %v4032_v0 = vshll.u32 %v7298_v59, 16  ;;  %v7443_v55 = vrot.slane %v1942_v17, 4  ;;  %v4038_v42 = vshll.u32 %v7301_v10, 16  ;;  %v1773_v4 = vsel %vm6758_vm4, %v1768_v46, %v7889_v27  ;;  %v7895_v27 = vld [vmem:[#allocation17_spill] sm:$0xff] }
 0x104   : > { %v1816_v25 = vrot.slane %v1815_v20, 4  ;;  %v1783_v59 = vsel %vm6758_vm4, %v1778_v41, %v1782_v53  ;;  %v1797_v23 = vsel %vm6758_vm4, %v1792_v19, %v7223_v29  ;;  %v1826_v13 = vrot.slane %v1825_v40, 4  ;;  %v915_v53 = vld [vmem:[%s6694_s28 + $0x1ac] sm:$0x1] }
 0x105   : > { %5611 = vmatmul.mubr.msk.bf16.gmra.mrb[20].mxu0 %vm1083_vm1, %v7894_v45  ;;  %v1839_v15 = vor.u32 %v7310_v5, %v7276_v28  ;;  %v1807_v8 = vsel %vm6758_vm4, %v1802_v14, %v1806_v62  ;;  %v1830_v54 = vrot.slane %v1828_v51, 5  ;;  %v1849_v29 = vor.u32 %v7317_v35, %v7315_v6  ;;  %v7473_v5 = vld [vmem:[%s7041_s27 + $0x34] sm:$0xf]  ;;  %v986_v51 = vld [vmem:[%s7041_s27 + $0x8] sm:$0x1] }
 0x106   : > { %5459 = vmatmul.mubr.msk.bf16.gmra.mrb[4].mxu1 %vm1083_vm1, %v7378_v48  ;;  %5614 = vmatprep.mubr.msk.bf16.mxu0 %vm1083_vm1, %v7895_v27  ;;  %v1852_v21 = vshll.u32 %v912_v39, 16  ;;  %v4031_v34 = vrot.slane %v4029_v2, 4  ;;  %v4034_v43 = vrot.slane %v4032_v0, 5  ;;  %v4042_v28 = vshrl.u32 %v7301_v10, 16  ;;  %v918_v27 = vld [vmem:[%s6694_s28 + $0x1b8] sm:$0x1] }
 0x107   : > { %5462 = vmatprep.mubr.msk.bf16.mxu1 %vm1083_vm1, %v7385_v24  ;;  %v4053_v17 = vshrl.u32 %v7465_v37, 16  ;;  %v1953_v26 = vshrl.u32 %v7229_v7, 16  ;;  %v4056_v9 = vshll.u32 %v7465_v37, 16  ;;  %v4062_v1 = vshll.u32 %v7473_v5, 16 }
 0x108   : > { %v4066_v46 = vshrl.u32 %v7473_v5, 16  ;;  %v4040_v20 = vrot.slane %v4038_v42, 5  ;;  %v7480_v35 = vcombine.low %v1773_v4, %v1783_v59  ;;  %v4880_v41 = vcombine.low %v1797_v23, %v1807_v8  ;;  %v7896_v59 = vld [vmem:[#allocation20_spill] sm:$0xff]  ;;  %v991_v8 = vld [vmem:[%s7041_s27 + $0x38] sm:$0x1] }
 0x109   : > { %v1821_v10 = vsel %vm6758_vm4, %v1816_v25, %v7259_v44  ;;  %v1831_v19 = vsel %vm6758_vm4, %v1826_v13, %v1830_v54  ;;  %v1840_v40 = vrot.slane %v1839_v15, 4  ;;  %v1850_v14 = vrot.slane %v1849_v29, 4 }
 0x10a   : > { %v1854_v62 = vrot.slane %v1852_v21, 5  ;;  %v4044_v2 = vrot.slane %v4042_v28, 4  ;;  %v1956_v0 = vshll.u32 %v7229_v7, 16  ;;  %v5003_v39 = vcombine.low %v7465_v37, %v7473_v5 }
 0x10b   : > { %v4055_v42 = vrot.slane %v4053_v17, 4  ;;  %v4058_v4 = vrot.slane %v4056_v9, 5  ;;  %v4064_v45 = vrot.slane %v4062_v1, 5  ;;  %v4068_v44 = vrot.slane %v4066_v46, 4 }
 0x10c   : > { %v1863_v25 = vor.u32 %v7322_v61, %v7319_v58  ;;  %v7498_v23 = vcombine.low %v1821_v10, %v1831_v19  ;;  %v1873_v13 = vor.u32 %v7334_v36, %v7330_v12  ;;  %v1876_v15 = vshll.u32 %v915_v53, 16 }
 0x10d   : > { %5615 = vmatmul.mubr.msk.bf16.gmra.mrb[24].mxu0 %vm1083_vm1, %v7896_v59  ;;  %v4048_v37 = vshll.u32 %v986_v51, 16  ;;  %v1845_v58 = vsel %vm6758_vm4, %v1840_v40, %v7315_v6  ;;  %v1855_v61 = vsel %vm6758_vm4, %v1850_v14, %v1854_v62  ;;  %v1887_v54 = vor.u32 %v7373_v22, %v7371_v33  ;;  %v924_v51 = vld [vmem:[%s6694_s28 + $0x1d0] sm:$0x1] }
 0x10e   : > { %5463 = vmatmul.mubr.msk.bf16.gmra.mrb[8].mxu1 %vm1083_vm1, %v7428_v38  ;;  %5618 = vmatprep.mubr.msk.bf16.mxu0 %vm1083_vm1, %v7266_v50  ;;  %v4072_v36 = vshll.u32 %v991_v8, 16  ;;  %v1897_v29 = vor.u32 %v7380_v18, %v7376_v30  ;;  %v4035_v21 = vor.u32 %v4034_v43, %v4031_v34  ;;  %v4045_v28 = vor.u32 %v4044_v2, %v4040_v20  ;;  %v921_v34 = vld [vmem:[%s6694_s28 + $0x1c4] sm:$0x1] }
 0x10f   : > { %5466 = vmatprep.mubr.msk.bf16.mxu1 %vm1083_vm1, %v7434_v52  ;;  %v4050_v50 = vrot.slane %v4048_v37, 5  ;;  %v1900_v5 = vshll.u32 %v918_v27, 16  ;;  %v4059_v17 = vor.u32 %v4058_v4, %v4055_v42  ;;  %v4069_v9 = vor.u32 %v4068_v44, %v4064_v45 }
 0x110   : > { %v4074_v1 = vrot.slane %v4072_v36, 5  ;;  %v1864_v6 = vrot.slane %v1863_v25, 4  ;;  %v1874_v46 = vrot.slane %v1873_v13, 4  ;;  %v4046_v10 = vrot.slane %v4045_v28, 4  ;;  %v6184_v13 = vld [vmem:[%s6694_s28 + $0x6c] sm:$0xff]  }
 0x111   : > { %v7516_v53 = vcombine.low %v1845_v58, %v1855_v61  ;;  %v1878_v33 = vrot.slane %v1876_v15, 5  ;;  %v4060_v22 = vrot.slane %v4059_v17, 4  ;;  %v4070_v19 = vrot.slane %v4069_v9, 4  ;;  %v7897_v61 = vld [vmem:[#allocation14_spill] sm:$0xff] }
 0x112   : > { %v1888_v40 = vrot.slane %v1887_v54, 4  ;;  %v1898_v18 = vrot.slane %v1897_v29, 4  ;;  %v4051_v14 = vsel %vm6758_vm4, %v4046_v10, %v4050_v50  ;;  %v1902_v62 = vrot.slane %v1900_v5, 5  ;;  %v927_v50 = vld [vmem:[%s6694_s28 + $0x1dc] sm:$0x1] }
 0x113   : > { %v4065_v42 = vsel %vm6758_vm4, %v4060_v22, %v4064_v45  ;;  %v4075_v4 = vsel %vm6758_vm4, %v4070_v19, %v4074_v1  ;;  %v1962_v44 = vshll.u32 %v7246_v57, 16  ;;  %v1966_v25 = vshrl.u32 %v7246_v57, 16  ;;  %v6185_v5 = vld [vmem:[%s6694_s28 + $0x78] sm:$0xff]  }
 0x114   : > { %v7537_v59 = vcombine.low %v4065_v42, %v4075_v4  ;;  %v1869_v57 = vsel %vm6758_vm4, %v1864_v6, %v7330_v12  ;;  %v1921_v45 = vor.u32 %v7409_v56, %v7391_v31  ;;  %v1924_v15 = vshll.u32 %v921_v34, 16  ;;  %v6191_v42 = vld [vmem:[%s6694_s28 + $0xa8] sm:$0xff]   ;;  %v6192_v4 = vld [vmem:[%s6694_s28 + $0xb4] sm:$0xff]  }
 0x115   : > { %5619 = vmatmul.mubr.msk.bf16.gmra.mrb[28].mxu0 %vm1083_vm1, %v5003_v39  ;;  %v1879_v39 = vsel %vm6758_vm4, %v1874_v46, %v1878_v33  ;;  %v1948_v27 = vshll.u32 %v924_v51, 16  ;;  %v1955_v37 = vrot.slane %v1953_v26, 4  ;;  %v1893_v12 = vsel %vm6758_vm4, %v1888_v40, %v7376_v30  ;;  %v6187_v40 = vld [vmem:[%s6694_s28 + $0x90] sm:$0xff]  }
 0x116   : > { %5467 = vmatmul.mubr.msk.bf16.gmra.mrb[12].mxu1 %vm1083_vm1, %v7480_v35  ;;  %5624 = vmatprep.mubr.msk.bf16.mxu0 %vm1083_vm1, %v6184_v13  ;;  %v1903_v56 = vsel %vm6758_vm4, %v1898_v18, %v1902_v62  ;;  %v1958_v8 = vrot.slane %v1956_v0, 5  ;;  %v1968_v58 = vrot.slane %v1966_v25, 4  ;;  %v4089_v26 = vsel %vm1132_vm0, %v7897_v61, 0  ;;  %v6186_v0 = vld [vmem:[%s6694_s28 + $0x84] sm:$0xff]   ;;  %v6194_v25 = vld [vmem:[%s6694_s28 + $0xd0] sm:$0xf] }
 0x117   : > { %5470 = vmatprep.mubr.msk.bf16.mxu1 %vm1083_vm1, %v4880_v41  ;;  %v4036_v41 = vrot.slane %v4035_v21, 4  ;;  %v1922_v54 = vrot.slane %v1921_v45, 4  ;;  %v1926_v36 = vrot.slane %v1924_v15, 5  ;;  %v7567_v29 = vcombine.low %v1893_v12, %v1903_v56  ;;  %v6190_v62 = vld [vmem:[%s6694_s28 + $0xc4] sm:$0xf]  ;;  %v6197_v45 = vld [vmem:[%s6694_s28 + $0x1ec] sm:$0xff]  }
 0x118   : > { %v1950_v28 = vrot.slane %v1948_v27, 5  ;;  %v1959_v9 = vor.u32 %v1958_v8, %v1955_v37  ;;  %v1972_v6 = vshll.u32 %v927_v50, 16  ;;  %v6195_v13 = vld [vmem:[%s6694_s28 + $0xd8] sm:$0xf]  ;;  %v7898_v15 = vld [vmem:[#allocation10_spill] sm:$0xff] }
 0x119   : > { %v4041_v43 = vsel %vm6758_vm4, %v4036_v41, %v4040_v20  ;;  %v1911_v20 = vor.u32 %v7388_v49, %v7382_v32  ;;  %v1935_v32 = vor.u32 %v7436_v60, %v7426_v16  ;;  %v1945_v49 = vor.u32 %v7443_v55, %v7438_v63  ;;  %v6200_v37 = vld [vmem:[%s6694_s28 + $0xf0] sm:$0xf]  ;;  %v6201_v12 = vld [vmem:[%s6694_s28 + $0xf4] sm:$0xf]  ;;  %v6202_v8 = vld [vmem:[%s6694_s28 + $0x1f8] sm:$0xff]  }
 0x11a   : > { %v7524_v2 = vcombine.low %v4041_v43, %v4051_v14  ;;  %v1964_v16 = vrot.slane %v1962_v44, 5  ;;  %v7563_v60 = vcombine.low %v1869_v57, %v1879_v39  ;;  %v1927_v17 = vsel %vm6758_vm4, %v1922_v54, %v1926_v36  ;;  %v6189_v14 = vld [vmem:[%s6694_s28 + $0xc0] sm:$0xf]  ;;  %v6193_v44 = vld [vmem:[%s6694_s28 + $0xcc] sm:$0xf] }
 0x11b   : > { %v1912_v55 = vrot.slane %v1911_v20, 4  ;;  %v1936_v30 = vrot.slane %v1935_v32, 4  ;;  %v1946_v21 = vrot.slane %v1945_v49, 4  ;;  %v1960_v33 = vrot.slane %v1959_v9, 4  ;;  %v6196_v57 = vld [vmem:[%s6694_s28 + $0xdc] sm:$0xf] }
 0x11c   : > { %v1969_v1 = vor.u32 %v1968_v58, %v1964_v16  ;;  %v1974_v19 = vrot.slane %v1972_v6, 5  ;;  %v4904_v51 = vcombine.low %v6189_v14, %v6190_v62  ;;  %v4905_v20 = vcombine.low %v6193_v44, %v6194_v25  ;;  %v6198_v32 = vld [vmem:[%s6694_s28 + $0xe4] sm:$0xf]  ;;  %v6199_v49 = vld [vmem:[%s6694_s28 + $0xe8] sm:$0xf]  ;;  %v6165_v6 = vld [vmem:[%s7041_s27 + $0x3c] sm:$0xff]  }
 0x11d   : > { %5625 = vmatmul.mubr.msk.bf16.vlgmr.msra.gmra.mrb[0].mxu0 %vm1083_vm1, %v6185_v5  ;;  %v1917_v7 = vsel %vm6758_vm4, %v1912_v55, %v7391_v31  ;;  %v1941_v46 = vsel %vm6758_vm4, %v1936_v30, %v7438_v63  ;;  %v1951_v31 = vsel %vm6758_vm4, %v1946_v21, %v1950_v28  ;;  %v6188_v63 = vld [vmem:[%s6694_s28 + $0x9c] sm:$0xff]   ;;  %v1965_v18 = vsel %vm6758_vm4, %v1960_v33, %v1964_v16  ;;  %v6203_v16 = vld [vmem:[%s6694_s28 + $0x204] sm:$0xff]   ;;  %v6207_v54 = vld [vmem:[%s6694_s28 + $0x10c] sm:$0xf] }
 0x11e   : > { %5471 = vmatmul.mubr.msk.bf16.gmra.mrb[16].mxu1 %vm1083_vm1, %v7498_v23  ;;  %5657 = vmatpush3.bf16.msra.mxu0 %v4089_v26  ;;  %v7588_v41 = vcombine.low %v1917_v7, %v1927_v17  ;;  %v7590_v10 = vcombine.low %v1941_v46, %v1951_v31  ;;  %v1970_v22 = vrot.slane %v1969_v1, 4  ;;  %v4906_v39 = vcombine.low %v6195_v13, %v6196_v57  ;;  %v6204_v55 = vld [vmem:[%s6694_s28 + $0xfc] sm:$0xf]  ;;  %v6205_v58 = vld [vmem:[%s6694_s28 + $0x100] sm:$0xf]  ;;  %v6208_v30 = vld [vmem:[%s6694_s28 + $0x210] sm:$0xff]  }
 0x11f   : > { %5474 = vmatprep.mubr.msk.bf16.mxu1 %vm1083_vm1, %v7516_v53  ;;  %5628 = vmatprep.mubr.msk.bf16.mxu0 %vm1083_vm1, %v6186_v0  ;;  %v4907_v27 = vcombine.low %v6198_v32, %v6199_v49  ;;  %v4908_v56 = vcombine.low %v6200_v37, %v6201_v12  ;;  %v4909_v61 = vcombine.low %v6204_v55, %v6205_v58  ;;  %v6206_v26 = vld [vmem:[%s6694_s28 + $0x108] sm:$0xf]  ;;  %v6209_v21 = vld [vmem:[%s6694_s28 + $0x21c] sm:$0xff]   ;;  %v6210_v28 = vld [vmem:[%s6694_s28 + $0x114] sm:$0xf] }
 0x120   : > { %v1975_v34 = vsel %vm6758_vm4, %v1970_v22, %v1974_v19  ;;  %v4910_v36 = vcombine.low %v6206_v26, %v6207_v54  ;;  %v6211_v50 = vld [vmem:[%s6694_s28 + $0x118] sm:$0xf]  ;;  %v6212_v7 = vld [vmem:[%s6694_s28 + $0x240] sm:$0xf]  ;;  %v6213_v0 = vld [vmem:[%s6694_s28 + $0x244] sm:$0xf] }
 0x121   : > { %v7604_v43 = vcombine.low %v1965_v18, %v1975_v34  ;;  %v4911_v5 = vcombine.low %v6210_v28, %v6211_v50  ;;  %v4912_v17 = vcombine.low %v6212_v7, %v6213_v0  ;;  %v6214_v9 = vld [vmem:[%s6694_s28 + $0x228] sm:$0xff]   ;;  %v6215_v1 = vld [vmem:[%s6694_s28 + $0x234] sm:$0xff]   ;;  %v6217_v31 = vld [vmem:[%s6694_s28 + $0x250] sm:$0xf] }
 0x122   : > { %v6216_v46 = vld [vmem:[%s6694_s28 + $0x24c] sm:$0xf]  ;;  %v6218_v22 = vld [vmem:[%s6694_s28 + $0x258] sm:$0xf]  ;;  %v6219_v19 = vld [vmem:[%s6694_s28 + $0x25c] sm:$0xf] }
 0x123   : > { %v4913_v33 = vcombine.low %v6216_v46, %v6217_v31  ;;  %v6221_v18 = vld [vmem:[%s6694_s28 + $0x268] sm:$0xf]  ;;  %v6222_v14 = vld [vmem:[%s6694_s28 + $0x270] sm:$0xf]  ;;  %v6223_v62 = vld [vmem:[%s6694_s28 + $0x274] sm:$0xf] }
 0x124   : > { %v6227_v44 = vld [vmem:[%s6694_s28 + $0x28c] sm:$0xf]  ;;  %v6175_v13 = vld [vmem:[%s6694_s28 + $0x2a0] sm:$0xff]   ;;  %v6179_v57 = vld [vmem:[%s6694_s28 + $0x2d0] sm:$0xff]  }
 0x125   : > { %5629 = vmatmul.mubr.msk.bf16.gmra.mrb[4].mxu0 %vm1083_vm1, %v6187_v40  ;;  %v4914_v40 = vcombine.low %v6218_v22, %v6219_v19 }
 0x126   : > { %5475 = vmatmul.mubr.msk.bf16.gmra.mrb[20].mxu1 %vm1083_vm1, %v7563_v60  ;;  %5632 = vmatprep.mubr.msk.bf16.mxu0 %vm1083_vm1, %v6188_v63  ;;  %v6220_v63 = vld [vmem:[%s6694_s28 + $0x264] sm:$0xf] }
 0x127   : > { %5478 = vmatprep.mubr.msk.bf16.mxu1 %vm1083_vm1, %v7567_v29  ;;  %v4915_v34 = vcombine.low %v6220_v63, %v6221_v18 }
 0x12d   : > { %5633 = vmatmul.mubr.msk.bf16.gmra.mrb[8].mxu0 %vm1083_vm1, %v6191_v42  ;;  %v6225_v42 = vld [vmem:[%s6694_s28 + $0x280] sm:$0xf] }
 0x12e   : > { %5479 = vmatmul.mubr.msk.bf16.gmra.mrb[24].mxu1 %vm1083_vm1, %v7588_v41  ;;  %5636 = vmatprep.mubr.msk.bf16.mxu0 %vm1083_vm1, %v6192_v4 }
 0x12f   : > { %5482 = vmatprep.mubr.msk.bf16.mxu1 %vm1083_vm1, %v7590_v10 }
 0x135   : > { %5637 = vmatmul.mubr.msk.bf16.gmra.mrb[12].mxu0 %vm1083_vm1, %v6157_v3  ;;  %v6226_v3 = vld [vmem:[%s6694_s28 + $0x288] sm:$0xf] }
 0x136   : > { %5483 = vmatmul.mubr.msk.bf16.gmra.mrb[28].mxu1 %vm1083_vm1, %v7604_v43  ;;  %5640 = vmatprep.mubr.msk.bf16.mxu0 %vm1083_vm1, %v6197_v45  ;;  %v4918_v25 = vcombine.low %v6226_v3, %v6227_v44 }
 0x137   : > { %5488 = vmatprep.mubr.msk.bf16.mxu1 %vm1083_vm1, %v4904_v51  ;;  %v4916_v51 = vcombine.low %v6222_v14, %v6223_v62 }
 0x13d   : > { %5641 = vmatmul.mubr.msk.bf16.gmra.mrb[16].mxu0 %vm1083_vm1, %v6202_v8 }
 0x13e   : > { %5489 = vmatmul.mubr.msk.bf16.vlgmr.msra.gmra.mrb[0].mxu1 %vm1083_vm1, %v4905_v20  ;;  %5644 = vmatprep.mubr.msk.bf16.mxu0 %vm1083_vm1, %v6203_v16  ;;  %v7740_v16 = vld [vmem:[%s7850_s3] ss:$0 sm:$0xff] }
 0x13f   : > { %5691 = vmatpush3.bf16.msra.mxu1 %v7898_v15  ;;  %5492 = vmatprep.mubr.msk.bf16.mxu1 %vm1083_vm1, %v4906_v39 }
 0x145   : > { %5645 = vmatmul.mubr.msk.bf16.gmra.mrb[20].mxu0 %vm1083_vm1, %v6208_v30 }
 0x146   : > { %5493 = vmatmul.mubr.msk.bf16.gmra.mrb[4].mxu1 %vm1083_vm1, %v4907_v27  ;;  %5648 = vmatprep.mubr.msk.bf16.mxu0 %vm1083_vm1, %v6209_v21 }
 0x147   : > { %5496 = vmatprep.mubr.msk.bf16.mxu1 %vm1083_vm1, %v4908_v56 }
 0x14d   : > { %5649 = vmatmul.mubr.msk.bf16.gmra.mrb[24].mxu0 %vm1083_vm1, %v6214_v9 }
 0x14e   : > { %5497 = vmatmul.mubr.msk.bf16.gmra.mrb[8].mxu1 %vm1083_vm1, %v4909_v61  ;;  %5652 = vmatprep.mubr.msk.bf16.mxu0 %vm1083_vm1, %v6215_v1 }
 0x14f   : > { %5500 = vmatprep.mubr.msk.bf16.mxu1 %vm1083_vm1, %v4910_v36 }
 0x155   : > { %5653 = vmatmul.mubr.msk.bf16.gmra.mrb[28].mxu0 %vm1083_vm1, %v6165_v6 }
 0x156   : > { %5501 = vmatmul.mubr.msk.bf16.gmra.mrb[12].mxu1 %vm1083_vm1, %v4911_v5  ;;  %5658 = vmatprep.mubr.msk.bf16.mxu0 %vm1083_vm1, %v7327_v47  ;;  %v6224_v47 = vld [vmem:[%s6694_s28 + $0x27c] sm:$0xf] }
 0x157   : > { %5504 = vmatprep.mubr.msk.bf16.mxu1 %vm1083_vm1, %v4912_v17  ;;  %v4917_v4 = vcombine.low %v6224_v47, %v6225_v42 }
 0x15d   : > { %5659 = vmatmul.mubr.msk.bf16.vlgmr.msra.gmra.mrb[0].mxu0 %vm1083_vm1, %v7291_v11  ;;  %v6228_v11 = vld [vmem:[%s6694_s28 + $0x294] sm:$0xf] }
 0x15e   : > { %5505 = vmatmul.mubr.msk.bf16.gmra.mrb[16].mxu1 %vm1083_vm1, %v4913_v33  ;;  %5662 = vmatprep.mubr.msk.bf16.mxu0 %vm1083_vm1, %v7378_v48  ;;  %v6229_v48 = vld [vmem:[%s6694_s28 + $0x298] sm:$0xf] }
 0x15f   : > { %5508 = vmatprep.mubr.msk.bf16.mxu1 %vm1083_vm1, %v4914_v40  ;;  %v4919_v20 = vcombine.low %v6228_v11, %v6229_v48 }
 0x165   : > { %5663 = vmatmul.mubr.msk.bf16.gmra.mrb[4].mxu0 %vm1083_vm1, %v7385_v24  ;;  %v6176_v24 = vld [vmem:[%s6694_s28 + $0x2ac] sm:$0xff]  }
 0x166   : > { %5509 = vmatmul.mubr.msk.bf16.gmra.mrb[20].mxu1 %vm1083_vm1, %v4915_v34  ;;  %5666 = vmatprep.mubr.msk.bf16.mxu0 %vm1083_vm1, %v7428_v38  ;;  %v6177_v38 = vld [vmem:[%s6694_s28 + $0x2b8] sm:$0xff]  }
 0x167   : > { %5512 = vmatprep.mubr.msk.bf16.mxu1 %vm1083_vm1, %v4916_v51 }
 0x16d   : > { %5667 = vmatmul.mubr.msk.bf16.gmra.mrb[8].mxu0 %vm1083_vm1, %v7434_v52  ;;  %v6178_v52 = vld [vmem:[%s6694_s28 + $0x2c4] sm:$0xff]  }
 0x16e   : > { %5513 = vmatmul.mubr.msk.bf16.gmra.mrb[24].mxu1 %vm1083_vm1, %v4917_v4  ;;  %5670 = vmatprep.mubr.msk.bf16.mxu0 %vm1083_vm1, %v7480_v35  ;;  %v6180_v35 = vld [vmem:[%s6694_s28 + $0x2dc] sm:$0xff]  }
 0x16f   : > { %5516 = vmatprep.mubr.msk.bf16.mxu1 %vm1083_vm1, %v4918_v25 }
 0x175   : > { %5671 = vmatmul.mubr.msk.bf16.gmra.mrb[12].mxu0 %vm1083_vm1, %v7524_v2  ;;  %v6181_v2 = vld [vmem:[%s6694_s28 + $0x2e8] sm:$0xff]  }
 0x176   : > { %5517 = vmatmul.mubr.msk.bf16.gmra.mrb[28].mxu1 %vm1083_vm1, %v4919_v20  ;;  %5674 = vmatprep.mubr.msk.bf16.mxu0 %vm1083_vm1, %v7498_v23  ;;  %v6182_v23 = vld [vmem:[%s6694_s28 + $0x2f4] sm:$0xff]   ;;  %s7749_s28 = scalar_lea.vmem [#allocation4], %s4806_s5 }
 0x177   : > { %5538 = vmatprep.mubr.msk.bf16.mxu1 %vm1083_vm1, %v6175_v13 }
 0x17d   : > { %5675 = vmatmul.mubr.msk.bf16.gmra.mrb[16].mxu0 %vm1083_vm1, %v7516_v53 }
 0x17e   : > { %5539 = vmatmul.mubr.msk.bf16.vlgmr.msra.gmra.mrb[16].mxu1 %vm1083_vm1, %v6176_v24  ;;  %5678 = vmatprep.mubr.msk.bf16.mxu0 %vm1083_vm1, %v7563_v60 }
 0x17f   : > { %5542 = vmatprep.mubr.msk.bf16.mxu1 %vm1083_vm1, %v6177_v38 }
 0x185   : > { %5679 = vmatmul.mubr.msk.bf16.gmra.mrb[20].mxu0 %vm1083_vm1, %v7567_v29 }
 0x186   : > { %5543 = vmatmul.mubr.msk.bf16.gmra.mrb[20].mxu1 %vm1083_vm1, %v6178_v52  ;;  %5682 = vmatprep.mubr.msk.bf16.mxu0 %vm1083_vm1, %v7588_v41 }
 0x187   : > { %5546 = vmatprep.mubr.msk.bf16.mxu1 %vm1083_vm1, %v6179_v57 }
 0x18d   : > { %5683 = vmatmul.mubr.msk.bf16.gmra.mrb[24].mxu0 %vm1083_vm1, %v7590_v10 }
 0x18e   : > { %5547 = vmatmul.mubr.msk.bf16.gmra.mrb[24].mxu1 %vm1083_vm1, %v6180_v35  ;;  %5686 = vmatprep.mubr.msk.bf16.mxu0 %vm1083_vm1, %v7604_v43 }
 0x18f   : > { %5550 = vmatprep.mubr.msk.bf16.mxu1 %vm1083_vm1, %v6181_v2 }
 0x195   : > { %5687 = vmatmul.mubr.msk.bf16.gmra.mrb[28].mxu0 %vm1083_vm1, %v7537_v59 }
 0x196   : > { %5551 = vmatmul.mubr.msk.bf16.gmra.mrb[28].mxu1 %vm1083_vm1, %v6182_v23 }
 0x211   : > { %v5490_v53 = vpop.f32.mrb[0].mxu1 }
 0x212   : > { %v2437_v60 = vpop.f32.mrb[1].mxu1 }
 0x213   : > { %v5491_v29 = vpop.f32.mrb[2].mxu1 }
 0x214   : > { %v2440_v39 = vpop.f32.mrb[3].mxu1 }
 0x219   : > { %v5494_v45 = vpop.f32.mrb[4].mxu1 }
 0x21a   : > { %v2453_v41 = vpop.f32.mrb[5].mxu1 }
 0x21b   : > { %v5495_v15 = vpop.f32.mrb[6].mxu1 }
 0x21c   : > { %v2456_v32 = vpop.f32.mrb[7].mxu1 }
 0x221   : > { %v5498_v49 = vpop.f32.mrb[8].mxu1 }
 0x222   : > { %v2469_v27 = vpop.f32.mrb[9].mxu1 }
 0x223   : > { %v5499_v37 = vpop.f32.mrb[10].mxu1 }
 0x224   : > { %v7727_v10 = vpop.f32.mrb[11].mxu1 }
 0x229   : > { %v7729_v12 = vpop.f32.mrb[12].mxu1 }
 0x22a   : > { %v7731_v56 = vpop.f32.mrb[13].mxu1 }
 0x22b   : > { %v7733_v43 = vpop.f32.mrb[14].mxu1 }
 0x22c   : > { %v7735_v59 = vpop.f32.mrb[15].mxu1 }
 0x230   : > { %v5660_v8 = vpop.f32.mrb[0].mxu0 }
 0x231   : > { %v5692_v55 = vadd.f32 %v5660_v8, %v5490_v53  ;;  %v4125_v58 = vpop.f32.mrb[1].mxu0 }
 0x232   : > { %v5693_v61 = vadd.f32 %v4125_v58, %v2437_v60  ;;  %v5661_v26 = vpop.f32.mrb[2].mxu0 }
 0x233   : > { %v4293_v54 = vadd.f32 %v5692_v55, %v7740_v16  ;;  %v5694_v36 = vadd.f32 %v5661_v26, %v5491_v29  ;;  %v4128_v30 = vpop.f32.mrb[3].mxu0 }
 0x234   : > { %v4291_v21 = vadd.f32 %v5693_v61, %v7740_v16  ;;  %v5695_v28 = vadd.f32 %v4128_v30, %v2440_v39 }
 0x235   : > { %v4325_v50 = vmul.f32 0.01, %v4293_v54  ;;  %v4294_v5 = vadd.f32 %v5694_v36, %v7740_v16 }
 0x236   : > { %v4323_v7 = vmul.f32 0.01, %v4291_v21  ;;  %v4292_v0 = vadd.f32 %v5695_v28, %v7740_v16 }
 0x237   : > { %v4326_v17 = vmul.f32 0.01, %v4294_v5  ;;  %v4357_v6 = vmax.f32 %v4293_v54, %v4325_v50 }
 0x238   : > { %v4324_v9 = vmul.f32 0.01, %v4292_v0  ;;  %v5664_v1 = vpop.f32.mrb[4].mxu0  ;;  %v4355_v22 = vmax.f32 %v4291_v21, %v4323_v7 }
 0x239   : > { %v4358_v46 = vmax.f32 %v4294_v5, %v4326_v17  ;;  %v5696_v31 = vadd.f32 %v5664_v1, %v5494_v45  ;;  %v4141_v33 = vpop.f32.mrb[5].mxu0 }
 0x23a   : > { %v4356_v19 = vmax.f32 %v4292_v0, %v4324_v9  ;;  %v5697_v40 = vadd.f32 %v4141_v33, %v2453_v41  ;;  %v5665_v63 = vpop.f32.mrb[6].mxu0 }
 0x23b   : > { %v5144_v18 = vpack.c.bf16 %v4358_v46, %v4357_v6  ;;  %v4297_v34 = vadd.f32 %v5696_v31, %v7740_v16  ;;  %v5698_v14 = vadd.f32 %v5665_v63, %v5495_v15  ;;  %v4144_v62 = vpop.f32.mrb[7].mxu0 }
 0x23c   : > { %v5139_v51 = vpack.c.bf16 %v4356_v19, %v4355_v22  ;;  %v4295_v47 = vadd.f32 %v5697_v40, %v7740_v16  ;;  %v5699_v42 = vadd.f32 %v4144_v62, %v2456_v32 }
 0x23d   : > { %5216 = vst [vmem:[%s7749_s28 + $0x8] sm:$0xff] %v5144_v18   ;;  %v4329_v4 = vmul.f32 0.01, %v4297_v34  ;;  %v4298_v3 = vadd.f32 %v5698_v14, %v7740_v16 }
 0x23e   : > { %5140 = vst [vmem:[%s7749_s28] sm:$0xff] %v5139_v51   ;;  %v4327_v44 = vmul.f32 0.01, %v4295_v47  ;;  %v4296_v25 = vadd.f32 %v5699_v42, %v7740_v16 }
 0x23f   : > { %v4330_v11 = vmul.f32 0.01, %v4298_v3  ;;  %v4361_v13 = vmax.f32 %v4297_v34, %v4329_v4 }
 0x240   : > { %v4328_v48 = vmul.f32 0.01, %v4296_v25  ;;  %v5668_v20 = vpop.f32.mrb[8].mxu0  ;;  %v4359_v57 = vmax.f32 %v4295_v47, %v4327_v44 }
 0x241   : > { %v4362_v24 = vmax.f32 %v4298_v3, %v4330_v11  ;;  %v5700_v38 = vadd.f32 %v5668_v20, %v5498_v49  ;;  %v4157_v52 = vpop.f32.mrb[9].mxu0 }
 0x242   : > { %v4360_v35 = vmax.f32 %v4296_v25, %v4328_v48  ;;  %v5701_v2 = vadd.f32 %v4157_v52, %v2469_v27  ;;  %v5669_v23 = vpop.f32.mrb[10].mxu0 }
 0x243   : > { %v5154_v53 = vpack.c.bf16 %v4362_v24, %v4361_v13  ;;  %v4301_v60 = vadd.f32 %v5700_v38, %v7740_v16  ;;  %v5702_v29 = vadd.f32 %v5669_v23, %v5499_v37  ;;  %v4160_v39 = vpop.f32.mrb[11].mxu0 }
 0x244   : > { %v5149_v45 = vpack.c.bf16 %v4360_v35, %v4359_v57  ;;  %v4299_v41 = vadd.f32 %v5701_v2, %v7740_v16  ;;  %v5703_v15 = vadd.f32 %v4160_v39, %v7727_v10 }
 0x245   : > { %5218 = vst [vmem:[%s7749_s28 + $0x18] sm:$0xff] %v5154_v53   ;;  %v4333_v32 = vmul.f32 0.01, %v4301_v60  ;;  %v4302_v49 = vadd.f32 %v5702_v29, %v7740_v16 }
 0x246   : > { %5217 = vst [vmem:[%s7749_s28 + $0x10] sm:$0xff] %v5149_v45   ;;  %v4331_v8 = vmul.f32 0.01, %v4299_v41  ;;  %v4300_v55 = vadd.f32 %v5703_v15, %v7740_v16 }
 0x247   : > { %v4334_v27 = vmul.f32 0.01, %v4302_v49  ;;  %v4365_v54 = vmax.f32 %v4301_v60, %v4333_v32 }
 0x248   : > { %v4332_v58 = vmul.f32 0.01, %v4300_v55  ;;  %v5672_v61 = vpop.f32.mrb[12].mxu0  ;;  %v4363_v10 = vmax.f32 %v4299_v41, %v4331_v8 }
 0x249   : > { %v4366_v37 = vmax.f32 %v4302_v49, %v4334_v27  ;;  %v5704_v36 = vadd.f32 %v5672_v61, %v7729_v12  ;;  %v4173_v30 = vpop.f32.mrb[13].mxu0 }
 0x24a   : > { %v4364_v28 = vmax.f32 %v4300_v55, %v4332_v58  ;;  %v5705_v50 = vadd.f32 %v4173_v30, %v7731_v56  ;;  %v5673_v5 = vpop.f32.mrb[14].mxu0 }
 0x24b   : > { %v5164_v0 = vpack.c.bf16 %v4366_v37, %v4365_v54  ;;  %v4305_v17 = vadd.f32 %v5704_v36, %v7740_v16  ;;  %v5706_v9 = vadd.f32 %v5673_v5, %v7733_v43  ;;  %v4176_v1 = vpop.f32.mrb[15].mxu0 }
 0x24c   : > { %v5159_v46 = vpack.c.bf16 %v4364_v28, %v4363_v10  ;;  %v4303_v12 = vadd.f32 %v5705_v50, %v7740_v16  ;;  %v5707_v31 = vadd.f32 %v4176_v1, %v7735_v59 }
 0x24d   : > { %5220 = vst [vmem:[%s7749_s28 + $0x28] sm:$0xff] %v5164_v0   ;;  %v4337_v33 = vmul.f32 0.01, %v4305_v17  ;;  %v4306_v22 = vadd.f32 %v5706_v9, %v7740_v16 }
 0x24e   : > { %5219 = vst [vmem:[%s7749_s28 + $0x20] sm:$0xff] %v5159_v46   ;;  %v4335_v56 = vmul.f32 0.01, %v4303_v12  ;;  %v4304_v19 = vadd.f32 %v5707_v31, %v7740_v16 }
 0x24f   : > { %v4338_v40 = vmul.f32 0.01, %v4306_v22  ;;  %v4369_v43 = vmax.f32 %v4305_v17, %v4337_v33 }
 0x250   : > { %v4336_v63 = vmul.f32 0.01, %v4304_v19  ;;  %v5676_v18 = vpop.f32.mrb[16].mxu0  ;;  %v4367_v42 = vmax.f32 %v4303_v12, %v4335_v56 }
 0x251   : > { %v5540_v26 = vpop.f32.mrb[16].mxu1  ;;  %v4370_v14 = vmax.f32 %v4306_v22, %v4338_v40  ;;  %v4189_v51 = vpop.f32.mrb[17].mxu0 }
 0x252   : > { %v2825_v21 = vpop.f32.mrb[17].mxu1  ;;  %v5708_v62 = vadd.f32 %v5676_v18, %v5540_v26  ;;  %v4368_v59 = vmax.f32 %v4304_v19, %v4336_v63  ;;  %v5677_v3 = vpop.f32.mrb[18].mxu0 }
 0x253   : > { %v5541_v7 = vpop.f32.mrb[18].mxu1  ;;  %v5709_v4 = vadd.f32 %v4189_v51, %v2825_v21  ;;  %v5174_v25 = vpack.c.bf16 %v4370_v14, %v4369_v43  ;;  %v4192_v20 = vpop.f32.mrb[19].mxu0 }
 0x254   : > { %v2828_v6 = vpop.f32.mrb[19].mxu1  ;;  %v4309_v11 = vadd.f32 %v5708_v62, %v7740_v16  ;;  %v5710_v48 = vadd.f32 %v5677_v3, %v5541_v7  ;;  %v5169_v24 = vpack.c.bf16 %v4368_v59, %v4367_v42 }
 0x255   : > { %v4307_v38 = vadd.f32 %v5709_v4, %v7740_v16  ;;  %v5711_v52 = vadd.f32 %v4192_v20, %v2828_v6  ;;  %5222 = vst [vmem:[%s7749_s28 + $0x38] sm:$0xff] %v5174_v25  }
 0x256   : > { %v4341_v57 = vmul.f32 0.01, %v4309_v11  ;;  %v4310_v35 = vadd.f32 %v5710_v48, %v7740_v16  ;;  %5221 = vst [vmem:[%s7749_s28 + $0x30] sm:$0xff] %v5169_v24  }
 0x257   : > { %v4339_v2 = vmul.f32 0.01, %v4307_v38  ;;  %v4308_v23 = vadd.f32 %v5711_v52, %v7740_v16 }
 0x258   : > { %v4342_v53 = vmul.f32 0.01, %v4310_v35  ;;  %v5680_v29 = vpop.f32.mrb[20].mxu0  ;;  %v4373_v45 = vmax.f32 %v4309_v11, %v4341_v57 }
 0x259   : > { %v5544_v34 = vpop.f32.mrb[20].mxu1  ;;  %v4340_v60 = vmul.f32 0.01, %v4308_v23  ;;  %v4205_v32 = vpop.f32.mrb[21].mxu0  ;;  %v4371_v8 = vmax.f32 %v4307_v38, %v4339_v2 }
 0x25a   : > { %v2841_v47 = vpop.f32.mrb[21].mxu1  ;;  %v4374_v41 = vmax.f32 %v4310_v35, %v4342_v53  ;;  %v5712_v15 = vadd.f32 %v5680_v29, %v5544_v34  ;;  %v5681_v58 = vpop.f32.mrb[22].mxu0 }
 0x25b   : > { %v5545_v44 = vpop.f32.mrb[22].mxu1  ;;  %v4372_v55 = vmax.f32 %v4308_v23, %v4340_v60  ;;  %v5713_v27 = vadd.f32 %v4205_v32, %v2841_v47  ;;  %v4208_v36 = vpop.f32.mrb[23].mxu0 }
 0x25c   : > { %v2844_v13 = vpop.f32.mrb[23].mxu1  ;;  %v5184_v26 = vpack.c.bf16 %v4374_v41, %v4373_v45  ;;  %v4313_v54 = vadd.f32 %v5712_v15, %v7740_v16  ;;  %v5714_v37 = vadd.f32 %v5681_v58, %v5545_v44 }
 0x25d   : > { %v5179_v21 = vpack.c.bf16 %v4372_v55, %v4371_v8  ;;  %v4311_v10 = vadd.f32 %v5713_v27, %v7740_v16  ;;  %v5715_v28 = vadd.f32 %v4208_v36, %v2844_v13 }
 0x25e   : > { %5224 = vst [vmem:[%s7749_s28 + $0x48] sm:$0xff] %v5184_v26   ;;  %v4345_v50 = vmul.f32 0.01, %v4313_v54  ;;  %v4314_v5 = vadd.f32 %v5714_v37, %v7740_v16 }
 0x25f   : > { %5223 = vst [vmem:[%s7749_s28 + $0x40] sm:$0xff] %v5179_v21   ;;  %v4343_v7 = vmul.f32 0.01, %v4311_v10  ;;  %v4312_v0 = vadd.f32 %v5715_v28, %v7740_v16 }
 0x260   : > { %v4346_v17 = vmul.f32 0.01, %v4314_v5  ;;  %v5684_v1 = vpop.f32.mrb[24].mxu0  ;;  %v4377_v46 = vmax.f32 %v4313_v54, %v4345_v50 }
 0x261   : > { %v5548_v39 = vpop.f32.mrb[24].mxu1  ;;  %v4344_v9 = vmul.f32 0.01, %v4312_v0  ;;  %v4221_v33 = vpop.f32.mrb[25].mxu0  ;;  %v4375_v56 = vmax.f32 %v4311_v10, %v4343_v7 }
 0x262   : > { %v2857_v49 = vpop.f32.mrb[25].mxu1  ;;  %v4378_v12 = vmax.f32 %v4314_v5, %v4346_v17  ;;  %v5716_v31 = vadd.f32 %v5684_v1, %v5548_v39  ;;  %v5685_v63 = vpop.f32.mrb[26].mxu0 }
 0x263   : > { %v5549_v61 = vpop.f32.mrb[26].mxu1  ;;  %v4376_v19 = vmax.f32 %v4312_v0, %v4344_v9  ;;  %v5717_v40 = vadd.f32 %v4221_v33, %v2857_v49  ;;  %v4224_v62 = vpop.f32.mrb[27].mxu0 }
 0x264   : > { %v2860_v30 = vpop.f32.mrb[27].mxu1  ;;  %v5194_v34 = vpack.c.bf16 %v4378_v12, %v4377_v46  ;;  %v4317_v43 = vadd.f32 %v5716_v31, %v7740_v16  ;;  %v5718_v14 = vadd.f32 %v5685_v63, %v5549_v61 }
 0x265   : > { %v5189_v47 = vpack.c.bf16 %v4376_v19, %v4375_v56  ;;  %v4315_v42 = vadd.f32 %v5717_v40, %v7740_v16  ;;  %v5719_v59 = vadd.f32 %v4224_v62, %v2860_v30 }
 0x266   : > { %5226 = vst [vmem:[%s7749_s28 + $0x58] sm:$0xff] %v5194_v34   ;;  %v4349_v4 = vmul.f32 0.01, %v4317_v43  ;;  %v4318_v3 = vadd.f32 %v5718_v14, %v7740_v16 }
 0x267   : > { %5225 = vst [vmem:[%s7749_s28 + $0x50] sm:$0xff] %v5189_v47   ;;  %v4347_v44 = vmul.f32 0.01, %v4315_v42  ;;  %v4316_v25 = vadd.f32 %v5719_v59, %v7740_v16 }
 0x268   : > { %v4350_v11 = vmul.f32 0.01, %v4318_v3  ;;  %v5688_v20 = vpop.f32.mrb[28].mxu0  ;;  %v4381_v13 = vmax.f32 %v4317_v43, %v4349_v4 }
 0x269   : > { %v5552_v6 = vpop.f32.mrb[28].mxu1  ;;  %v4348_v48 = vmul.f32 0.01, %v4316_v25  ;;  %v4237_v52 = vpop.f32.mrb[29].mxu0  ;;  %v4379_v57 = vmax.f32 %v4315_v42, %v4347_v44 }
 0x26a   : > { %v2873_v22 = vpop.f32.mrb[29].mxu1  ;;  %v4382_v24 = vmax.f32 %v4318_v3, %v4350_v11  ;;  %v5720_v38 = vadd.f32 %v5688_v20, %v5552_v6  ;;  %v5689_v23 = vpop.f32.mrb[30].mxu0 }
 0x26b   : > { %v5553_v18 = vpop.f32.mrb[30].mxu1  ;;  %v4380_v35 = vmax.f32 %v4316_v25, %v4348_v48  ;;  %v5721_v2 = vadd.f32 %v4237_v52, %v2873_v22  ;;  %v4240_v39 = vpop.f32.mrb[31].mxu0 }
 0x26c   : > { %v2876_v51 = vpop.f32.mrb[31].mxu1  ;;  %v5204_v53 = vpack.c.bf16 %v4382_v24, %v4381_v13  ;;  %v4321_v60 = vadd.f32 %v5720_v38, %v7740_v16  ;;  %v5722_v29 = vadd.f32 %v5689_v23, %v5553_v18 }
 0x26d   : > { %v5199_v45 = vpack.c.bf16 %v4380_v35, %v4379_v57  ;;  %v4319_v41 = vadd.f32 %v5721_v2, %v7740_v16  ;;  %v5723_v15 = vadd.f32 %v4240_v39, %v2876_v51 }
 0x26e   : > { %5228 = vst [vmem:[%s7749_s28 + $0x68] sm:$0xff] %v5204_v53   ;;  %v4353_v32 = vmul.f32 0.01, %v4321_v60  ;;  %v4322_v49 = vadd.f32 %v5722_v29, %v7740_v16 }
 0x26f   : > { %5227 = vst [vmem:[%s7749_s28 + $0x60] sm:$0xff] %v5199_v45   ;;  %v4351_v8 = vmul.f32 0.01, %v4319_v41  ;;  %v4320_v55 = vadd.f32 %v5723_v15, %v7740_v16 }
 0x270   : > { %v4354_v27 = vmul.f32 0.01, %v4322_v49  ;;  %v4385_v61 = vmax.f32 %v4321_v60, %v4353_v32 }
 0x271   : > { %v4352_v58 = vmul.f32 0.01, %v4320_v55  ;;  %v4383_v54 = vmax.f32 %v4319_v41, %v4351_v8 }
 0x272   : > { %v4386_v26 = vmax.f32 %v4322_v49, %v4354_v27 }
 0x273   : > { %v4384_v37 = vmax.f32 %v4320_v55, %v4352_v58 }
 0x274   : > { %v5214_v36 = vpack.c.bf16 %v4386_v26, %v4385_v61 }
 0x275   : > { %v5209_v30 = vpack.c.bf16 %v4384_v37, %v4383_v54 }
 0x276   : > { %5230 = vst [vmem:[%s7749_s28 + $0x78] sm:$0xff] %v5214_v36  }
 0x277   : > { %5229 = vst [vmem:[%s7749_s28 + $0x70] sm:$0xff] %v5209_v30  }
 0x278   : > { %s5135_s7 = sshll.u32 %s6325_s20, 10  ;;  %s4581_s8 = sshll.u32 %s7749_s28, 4  ;;  %s4582_s8 = int_to_ptr.vmem [resolvable:$true] %s4581_s8 }
 0x279   : > { %s4564_s16 = scalar_lea.hbm %s7851_s4, %s5135_s7  ;;  %s6351_s27 = smov 1024  }
 0x27a   : > { %5963 = sst [smem:[#allocation7]] (%p6465_p10), %s6351_s27  ;;  %s6352_s25 = smov 2048  }
 0x27b   : > { %5964 = sst [smem:[#allocation7 + $0x1]] (%p6465_p10), %s6352_s25  ;;  %s6353_s14 = smov 16  }
 0x27c   : > { %5965 = sst [smem:[#allocation7 + $0x2]] (%p6465_p10), %s6353_s14  ;;  %s6354_s11 = smov 64  }
 0x27d   : > { %5966 = sst [smem:[#allocation7 + $0x3]] (%p6465_p10), %s6354_s11  ;;  %s6355_s20 = smov 4  }
 0x27e   : > { %5967 = sst [smem:[#allocation7 + $0x4]] (%p6465_p10), %s6354_s11  ;;  %s6356_s0 = smov [#allocation6]  }
 0x27f   : > { %5968 = sst [smem:[#allocation7 + $0x5]] (%p6465_p10), %s6355_s20  ;;  %s6357_s23 = smov 0  }
 0x280   : > { %5969 = dma.general (%p6465_p10), %s4582_s8, 2048, %s4564_s16, %s4548_s6, %s6356_s0, [#allocation7], %s6357_s23, 0  }
 0x281 PF: > { %s4609_s29 = sand.u32 1, %s6305_s15   ;;  %p5972_p5 = pnand %p4763_p13, %p6469_p12 }
 0x282   : > { %s4610_s30 = scalar_lea.sflag [#allocation5], %s4609_s29 }
 0x283   : > { %6296 = dma.done.wait (!%p5972_p5), %s4610_s30, 2048  }
 0x284   : > { %6298 = vsyncadd (!%p5972_p5), %s4610_s30, 4294965248  ;;  %s17_s22 = sadd.s32 1, %s6333_s22   ;;  %s7899_s12 = sld [smem:[#allocation9_spill]] }
 0x285   : > { %p14_p6 = scmp.ge.s32.totalorder %s17_s22, 4   ;;  %s7900_s15 = smov %s6317_s18 }
 0x286   : > { %s7901_s16 = smov %s6313_s17  ;;  %s7902_s17 = smov %s6454_s10 }
 0x287   : > { %s7903_s18 = smov %s6321_s19  ;;  %s7904_s19 = smov %s6447_s9 }
 0x288   : > { %s7905_s20 = smov %s6329_s21  ;;  %16 = sbr.rel (!%p14_p6) target bundleno = 7 (0x7), region = 228 }
 0x28a   : > { %s7906_s21 = smov %s7899_s12 }
 0x28f   :  { %4615 = vsyncpa [#allocation5], 1 }
 0x290   :  { %4617 = vsyncpa [#allocation5 + $0x1], 1 }

// kernel: tpu_custom_call.1
= control target key start
LH: loop header
LB: loop body
LE: loop exit
PB: predicated region body
PF: predicated region fallthrough
CT: control target
= control target key end

     0   :  { %s7847_s0 = inlined_call_operand.vmem [shape: bf16[2,4,17,17,4], index: 0, kind: input, shape index: {}]   ;;  %s7848_s1 = inlined_call_operand.vmem [shape: bf16[2,4,17,17,4], index: 1, kind: input, shape index: {}]   ;;  %s7849_s2 = inlined_call_operand.vmem [shape: bf16[36,128], index: 2, kind: input, shape index: {}]   ;;  %s7850_s3 = inlined_call_operand.vmem [shape: f32[1,128], index: 3, kind: input, shape index: {}]   ;;  %s7851_s4 = inlined_call_operand.hbm [shape: bf16[2,16,16,128], index: 4, kind: output, shape index: {}]  }
   0x1   :  { %7863 = sst [smem:[#allocation22_spill]] %s7847_s0 }
   0x2   :  { %9 = vsyncpa [#allocation5], 0 }
   0x3   :  { %11 = vsyncpa [#allocation5 + $0x1], 0  ;;  %s6383_s15 = smov 0   ;;  %s6385_s16 = smov 0  }
   0x4   :  { %s6387_s17 = smov 0   ;;  %s6389_s18 = smov 0  }
   0x5   :  { %s6391_s19 = smov 0   ;;  %s6393_s20 = smov 0  }
   0x6   :  { %s6395_s21 = smov 0   ;;  %s6397_s22 = smov 0  }
   0x7 LB: > { %s4758_s23 = sadd.s32 4294967295, %s6333_s22   ;;  %s4759_s24 = sadd.s32 4294967294, %s6333_s22   ;;  %s6333_s22 = sphi %s6397_s22, %s17_s22   ;;  %s6329_s21 = sphi %s6395_s21, %s7906_s21   ;;  %s6325_s20 = sphi %s6393_s20, %s7905_s20   ;;  %s6321_s19 = sphi %s6391_s19, %s7904_s19   ;;  %s6317_s18 = sphi %s6389_s18, %s7903_s18   ;;  %s6313_s17 = sphi %s6387_s17, %s7902_s17   ;;  %s6309_s16 = sphi %s6385_s16, %s7901_s16   ;;  %s6305_s15 = sphi %s6383_s15, %s7900_s15  }
   0x8   : > { %s26_s25 = sadd.s32 1, %s6329_s21  ;;  %s38_s26 = sadd.s32 1, %s6321_s19 }
   0x9   : > { %p27_p0 = scmp.ge.s32.totalorder %s26_s25, 2  ;;  %p45_p1 = scmp.ne.s32.totalorder %s6321_s19, %s6317_s18 }
   0xa   : > { %p46_p2 = scmp.eq.s32.totalorder %s6333_s22, 0  ;;  %s5096_s27 = sshll.u32 %s6329_s21, 3 }
   0xb   : > { %s7908_s25 = smov (%p27_p0, %s26_s25), 0  ;;  %s5097_s29 = sadd.s32 8, %s5096_s27 }
   0xc   : > { %7864 = sst [smem:[#allocation9_spill]] %s7908_s25  ;;  %p6438_p3 = por %p46_p2, %p45_p1 }
   0xd   : > { %s34_s30 = ssub.s32 %s6329_s21, %s7908_s25  ;;  %s5098_s5 = sshll.u32 %s7908_s25, 3 }
   0xe   : > { %p36_p4 = scmp.eq.s32.totalorder %s34_s30, 0  ;;  %s5099_s6 = sadd.s32 8, %s5098_s5 }
   0xf   : > { %s66_s7 = ssub.s32 %s5097_s29, %s5099_s6  ;;  %s70_s8 = sadd.s32 1, %s6313_s17 }
  0x10   : > { %s6447_s9 = scalar_select %p36_p4, %s6321_s19, %s38_s26  }
  0x11   : > { %p68_p5 = scmp.eq.s32.totalorder %s66_s7, 0  ;;  %p77_p6 = scmp.ne.s32.totalorder %s6313_s17, %s6309_s16 }
  0x12   : > { %p151_p7 = scmp.eq.s32.totalorder %s4758_s23, 1  ;;  %p156_p8 = scmp.ne.s32.totalorder %s6317_s18, %s6305_s15 }
  0x13   : > { %s6454_s10 = scalar_select %p68_p5, %s6313_s17, %s70_s8  }
  0x14   : > { %p6458_p9 = por %p77_p6, %p46_p2  ;;  %p6465_p10 = por %p151_p7, %p45_p1 }
  0x15   : > { %p157_p11 = scmp.eq.s32.totalorder %s4759_s24, 1  ;;  %p4763_p13 = scmp.ge.s32.totalorder %s6333_s22, 2 }
  0x17   : > { %p6469_p12 = por %p157_p11, %p156_p8  ;;  %179 = sbr.rel (%p4763_p13) target bundleno = 106 (0x6a), region = 24 }
  0x1e   : > { %182 = sbr.rel (!%p6438_p3) target bundleno = 93 (0x5d), region = 28  ;;  %s184_s14 = sand.u32 (%p6438_p3), 1, %s6321_s19  }
  0x1f   : > { %s6479_s23 = smul.u32 (%p6438_p3), 768, %s184_s14  ;;  %s7869_s0 = sld [smem:[#allocation22_spill]] (%p6438_p3) }
  0x20   : > { %s5959_s26 = smul.u32 (%p6438_p3), 96, %s6329_s21  ;;  %s6495_s6 = smov (%p6438_p3), 0  }
  0x21   : > { %s186_s30 = scalar_lea.vmem (%p6438_p3), [#allocation2], %s6479_s23   ;;  %s6497_s7 = smov (%p6438_p3), 0  }
  0x22   : > { %s7870_s5 = smov (%p6438_p3), %s186_s30 }
  0x25   : > { %s6485_s29 = scalar_lea.vmem %s7869_s0, %s5959_s26  }
  0x26   : > { %s7871_s28 = smov %s6485_s29 }
  0x27 LB: >> { %v219_v0 = vld [vmem:[%s6341_s28] sm:$0xf]  ;;  %v221_v1 = vld [vmem:[%s6341_s28 + $0x4] sm:$0xf]  ;;  %v223_v2 = vld [vmem:[%s6341_s28 + $0x8] sm:$0xf]  ;;  %s6349_s7 = sphi %s6497_s7, %s213_s7   ;;  %s6345_s6 = sphi %s6495_s6, %s7872_s6   ;;  %s6341_s28 = sphi %s7871_s28, %s352_s28   ;;  %s6337_s5 = sphi %s7870_s5, %s353_s5  }
  0x28   : >> { %220 = vst [vmem:[%s6337_s5] sm:$0xf] %v219_v0  ;;  %222 = vst [vmem:[%s6337_s5 + $0x4] sm:$0xf] %v221_v1  ;;  %v225_v3 = vld [vmem:[%s6341_s28 + $0xc] sm:$0xf]  ;;  %s347_s8 = sadd.s32 1, %s6345_s6 }
  0x29   : >> { %224 = vst [vmem:[%s6337_s5 + $0x8] sm:$0xf] %v223_v2  ;;  %v227_v4 = vld [vmem:[%s6341_s28 + $0x10] sm:$0xf]  ;;  %v229_v5 = vld [vmem:[%s6341_s28 + $0x14] sm:$0xf] }
  0x2a   : >> { %226 = vst [vmem:[%s6337_s5 + $0xc] sm:$0xf] %v225_v3  ;;  %228 = vst [vmem:[%s6337_s5 + $0x10] sm:$0xf] %v227_v4  ;;  %v231_v6 = vld [vmem:[%s6341_s28 + $0x18] sm:$0xf] }
  0x2b   : >> { %230 = vst [vmem:[%s6337_s5 + $0x14] sm:$0xf] %v229_v5  ;;  %v233_v7 = vld [vmem:[%s6341_s28 + $0x1c] sm:$0xf]  ;;  %v235_v8 = vld [vmem:[%s6341_s28 + $0xcc] sm:$0xf] }
  0x2c   : >> { %232 = vst [vmem:[%s6337_s5 + $0x18] sm:$0xf] %v231_v6  ;;  %234 = vst [vmem:[%s6337_s5 + $0x1c] sm:$0xf] %v233_v7  ;;  %v237_v9 = vld [vmem:[%s6341_s28 + $0xd0] sm:$0xf] }
  0x2d   : >> { %236 = vst [vmem:[%s6337_s5 + $0x60] sm:$0xf] %v235_v8  ;;  %v239_v10 = vld [vmem:[%s6341_s28 + $0xd4] sm:$0xf]  ;;  %v241_v11 = vld [vmem:[%s6341_s28 + $0xd8] sm:$0xf] }
  0x2e   : >> { %238 = vst [vmem:[%s6337_s5 + $0x64] sm:$0xf] %v237_v9  ;;  %240 = vst [vmem:[%s6337_s5 + $0x68] sm:$0xf] %v239_v10  ;;  %v243_v12 = vld [vmem:[%s6341_s28 + $0xdc] sm:$0xf] }
  0x2f   : >> { %242 = vst [vmem:[%s6337_s5 + $0x6c] sm:$0xf] %v241_v11  ;;  %v245_v13 = vld [vmem:[%s6341_s28 + $0xe0] sm:$0xf]  ;;  %v247_v14 = vld [vmem:[%s6341_s28 + $0xe4] sm:$0xf] }
  0x30   : >> { %244 = vst [vmem:[%s6337_s5 + $0x70] sm:$0xf] %v243_v12  ;;  %246 = vst [vmem:[%s6337_s5 + $0x74] sm:$0xf] %v245_v13  ;;  %v249_v15 = vld [vmem:[%s6341_s28 + $0xe8] sm:$0xf] }
  0x31   : >> { %248 = vst [vmem:[%s6337_s5 + $0x78] sm:$0xf] %v247_v14  ;;  %v251_v16 = vld [vmem:[%s6341_s28 + $0x198] sm:$0xf]  ;;  %v253_v17 = vld [vmem:[%s6341_s28 + $0x19c] sm:$0xf] }
  0x32   : >> { %250 = vst [vmem:[%s6337_s5 + $0x7c] sm:$0xf] %v249_v15  ;;  %252 = vst [vmem:[%s6337_s5 + $0xc0] sm:$0xf] %v251_v16  ;;  %v255_v18 = vld [vmem:[%s6341_s28 + $0x1a0] sm:$0xf] }
  0x33   : >> { %254 = vst [vmem:[%s6337_s5 + $0xc4] sm:$0xf] %v253_v17  ;;  %v257_v19 = vld [vmem:[%s6341_s28 + $0x1a4] sm:$0xf]  ;;  %v259_v20 = vld [vmem:[%s6341_s28 + $0x1a8] sm:$0xf] }
  0x34   : >> { %256 = vst [vmem:[%s6337_s5 + $0xc8] sm:$0xf] %v255_v18  ;;  %258 = vst [vmem:[%s6337_s5 + $0xcc] sm:$0xf] %v257_v19  ;;  %v261_v21 = vld [vmem:[%s6341_s28 + $0x1ac] sm:$0xf] }
  0x35   : >> { %260 = vst [vmem:[%s6337_s5 + $0xd0] sm:$0xf] %v259_v20  ;;  %v263_v22 = vld [vmem:[%s6341_s28 + $0x1b0] sm:$0xf]  ;;  %v265_v23 = vld [vmem:[%s6341_s28 + $0x1b4] sm:$0xf] }
  0x36   : >> { %262 = vst [vmem:[%s6337_s5 + $0xd4] sm:$0xf] %v261_v21  ;;  %264 = vst [vmem:[%s6337_s5 + $0xd8] sm:$0xf] %v263_v22  ;;  %v267_v24 = vld [vmem:[%s6341_s28 + $0x264] sm:$0xf] }
  0x37   : >> { %266 = vst [vmem:[%s6337_s5 + $0xdc] sm:$0xf] %v265_v23  ;;  %v269_v25 = vld [vmem:[%s6341_s28 + $0x268] sm:$0xf]  ;;  %v271_v26 = vld [vmem:[%s6341_s28 + $0x26c] sm:$0xf] }
  0x38   : >> { %268 = vst [vmem:[%s6337_s5 + $0x120] sm:$0xf] %v267_v24  ;;  %270 = vst [vmem:[%s6337_s5 + $0x124] sm:$0xf] %v269_v25  ;;  %v273_v27 = vld [vmem:[%s6341_s28 + $0x270] sm:$0xf] }
  0x39   : >> { %272 = vst [vmem:[%s6337_s5 + $0x128] sm:$0xf] %v271_v26  ;;  %v275_v28 = vld [vmem:[%s6341_s28 + $0x274] sm:$0xf]  ;;  %v277_v29 = vld [vmem:[%s6341_s28 + $0x278] sm:$0xf] }
  0x3a   : >> { %274 = vst [vmem:[%s6337_s5 + $0x12c] sm:$0xf] %v273_v27  ;;  %276 = vst [vmem:[%s6337_s5 + $0x130] sm:$0xf] %v275_v28  ;;  %v279_v30 = vld [vmem:[%s6341_s28 + $0x27c] sm:$0xf] }
  0x3b   : >> { %278 = vst [vmem:[%s6337_s5 + $0x134] sm:$0xf] %v277_v29  ;;  %v281_v31 = vld [vmem:[%s6341_s28 + $0x280] sm:$0xf]  ;;  %v283_v32 = vld [vmem:[%s6341_s28 + $0x330] sm:$0xf] }
  0x3c   : >> { %280 = vst [vmem:[%s6337_s5 + $0x138] sm:$0xf] %v279_v30  ;;  %282 = vst [vmem:[%s6337_s5 + $0x13c] sm:$0xf] %v281_v31  ;;  %v285_v33 = vld [vmem:[%s6341_s28 + $0x334] sm:$0xf] }
  0x3d   : >> { %284 = vst [vmem:[%s6337_s5 + $0x180] sm:$0xf] %v283_v32  ;;  %v287_v34 = vld [vmem:[%s6341_s28 + $0x338] sm:$0xf]  ;;  %v289_v35 = vld [vmem:[%s6341_s28 + $0x33c] sm:$0xf] }
  0x3e   : >> { %286 = vst [vmem:[%s6337_s5 + $0x184] sm:$0xf] %v285_v33  ;;  %288 = vst [vmem:[%s6337_s5 + $0x188] sm:$0xf] %v287_v34  ;;  %v291_v36 = vld [vmem:[%s6341_s28 + $0x340] sm:$0xf] }
  0x3f   : >> { %290 = vst [vmem:[%s6337_s5 + $0x18c] sm:$0xf] %v289_v35  ;;  %v293_v37 = vld [vmem:[%s6341_s28 + $0x344] sm:$0xf]  ;;  %v295_v38 = vld [vmem:[%s6341_s28 + $0x348] sm:$0xf] }
  0x40   : >> { %292 = vst [vmem:[%s6337_s5 + $0x190] sm:$0xf] %v291_v36  ;;  %294 = vst [vmem:[%s6337_s5 + $0x194] sm:$0xf] %v293_v37  ;;  %v297_v39 = vld [vmem:[%s6341_s28 + $0x34c] sm:$0xf] }
  0x41   : >> { %296 = vst [vmem:[%s6337_s5 + $0x198] sm:$0xf] %v295_v38  ;;  %v299_v40 = vld [vmem:[%s6341_s28 + $0x3fc] sm:$0xf]  ;;  %v301_v41 = vld [vmem:[%s6341_s28 + $0x400] sm:$0xf] }
  0x42   : >> { %298 = vst [vmem:[%s6337_s5 + $0x19c] sm:$0xf] %v297_v39  ;;  %300 = vst [vmem:[%s6337_s5 + $0x1e0] sm:$0xf] %v299_v40  ;;  %v303_v42 = vld [vmem:[%s6341_s28 + $0x404] sm:$0xf] }
  0x43   : >> { %302 = vst [vmem:[%s6337_s5 + $0x1e4] sm:$0xf] %v301_v41  ;;  %v305_v43 = vld [vmem:[%s6341_s28 + $0x408] sm:$0xf]  ;;  %v307_v44 = vld [vmem:[%s6341_s28 + $0x40c] sm:$0xf] }
  0x44   : >> { %304 = vst [vmem:[%s6337_s5 + $0x1e8] sm:$0xf] %v303_v42  ;;  %306 = vst [vmem:[%s6337_s5 + $0x1ec] sm:$0xf] %v305_v43  ;;  %v309_v45 = vld [vmem:[%s6341_s28 + $0x410] sm:$0xf] }
  0x45   : >> { %308 = vst [vmem:[%s6337_s5 + $0x1f0] sm:$0xf] %v307_v44  ;;  %v311_v46 = vld [vmem:[%s6341_s28 + $0x414] sm:$0xf]  ;;  %v313_v47 = vld [vmem:[%s6341_s28 + $0x418] sm:$0xf] }
  0x46   : >> { %310 = vst [vmem:[%s6337_s5 + $0x1f4] sm:$0xf] %v309_v45  ;;  %312 = vst [vmem:[%s6337_s5 + $0x1f8] sm:$0xf] %v311_v46  ;;  %v315_v48 = vld [vmem:[%s6341_s28 + $0x4c8] sm:$0xf] }
  0x47   : >> { %314 = vst [vmem:[%s6337_s5 + $0x1fc] sm:$0xf] %v313_v47  ;;  %v317_v49 = vld [vmem:[%s6341_s28 + $0x4cc] sm:$0xf]  ;;  %v319_v50 = vld [vmem:[%s6341_s28 + $0x4d0] sm:$0xf] }
  0x48   : >> { %316 = vst [vmem:[%s6337_s5 + $0x240] sm:$0xf] %v315_v48  ;;  %318 = vst [vmem:[%s6337_s5 + $0x244] sm:$0xf] %v317_v49  ;;  %v321_v51 = vld [vmem:[%s6341_s28 + $0x4d4] sm:$0xf] }
  0x49   : >> { %320 = vst [vmem:[%s6337_s5 + $0x248] sm:$0xf] %v319_v50  ;;  %v323_v52 = vld [vmem:[%s6341_s28 + $0x4d8] sm:$0xf]  ;;  %v325_v53 = vld [vmem:[%s6341_s28 + $0x4dc] sm:$0xf] }
  0x4a   : >> { %322 = vst [vmem:[%s6337_s5 + $0x24c] sm:$0xf] %v321_v51  ;;  %324 = vst [vmem:[%s6337_s5 + $0x250] sm:$0xf] %v323_v52  ;;  %v327_v54 = vld [vmem:[%s6341_s28 + $0x4e0] sm:$0xf] }
  0x4b   : >> { %326 = vst [vmem:[%s6337_s5 + $0x254] sm:$0xf] %v325_v53  ;;  %v329_v55 = vld [vmem:[%s6341_s28 + $0x4e4] sm:$0xf]  ;;  %v331_v56 = vld [vmem:[%s6341_s28 + $0x594] sm:$0xf] }
  0x4c   : >> { %328 = vst [vmem:[%s6337_s5 + $0x258] sm:$0xf] %v327_v54  ;;  %330 = vst [vmem:[%s6337_s5 + $0x25c] sm:$0xf] %v329_v55  ;;  %v333_v57 = vld [vmem:[%s6341_s28 + $0x598] sm:$0xf] }
  0x4d   : >> { %332 = vst [vmem:[%s6337_s5 + $0x2a0] sm:$0xf] %v331_v56  ;;  %v335_v58 = vld [vmem:[%s6341_s28 + $0x59c] sm:$0xf]  ;;  %v337_v59 = vld [vmem:[%s6341_s28 + $0x5a0] sm:$0xf] }
  0x4e   : >> { %334 = vst [vmem:[%s6337_s5 + $0x2a4] sm:$0xf] %v333_v57  ;;  %336 = vst [vmem:[%s6337_s5 + $0x2a8] sm:$0xf] %v335_v58  ;;  %v339_v60 = vld [vmem:[%s6341_s28 + $0x5a4] sm:$0xf] }
  0x4f   : >> { %338 = vst [vmem:[%s6337_s5 + $0x2ac] sm:$0xf] %v337_v59  ;;  %v341_v61 = vld [vmem:[%s6341_s28 + $0x5a8] sm:$0xf]  ;;  %v343_v62 = vld [vmem:[%s6341_s28 + $0x5ac] sm:$0xf] }
  0x50   : >> { %340 = vst [vmem:[%s6337_s5 + $0x2b0] sm:$0xf] %v339_v60  ;;  %342 = vst [vmem:[%s6337_s5 + $0x2b4] sm:$0xf] %v341_v61  ;;  %v345_v63 = vld [vmem:[%s6341_s28 + $0x5b0] sm:$0xf] }
  0x51   : >> { %344 = vst [vmem:[%s6337_s5 + $0x2b8] sm:$0xf] %v343_v62  ;;  %346 = vst [vmem:[%s6337_s5 + $0x2bc] sm:$0xf] %v345_v63  ;;  %p348_p0 = scmp.ge.s32.totalorder %s347_s8, 3  ;;  %s213_s7 = sadd.s32 1, %s6349_s7  }
  0x52   : >> { %p212_p1 = scmp.ge.s32.totalorder %s213_s7, 3 }
  0x53   : >> { %s7910_s8 = smov (%p348_p0, %s347_s8), 0 }
  0x54   : >> { %s4772_s14 = sshll.u32 %s7910_s8, 5  ;;  %s7872_s6 = smov %s7910_s8 }
  0x55   : >> { %s352_s28 = scalar_lea.vmem %s6485_s29, %s4772_s14   ;;  %s353_s5 = scalar_lea.vmem %s186_s30, %s4772_s14 [#allocation2]  }
  0x56   : > { %215 = sbr.rel (!%p212_p1) target bundleno = 39 (0x27), region = 206 }
  0x5d PF: > { %623 = sbr.rel (!%p6458_p9) target bundleno = 106 (0x6a), region = 90  ;;  %s625_s26 = sand.u32 (%p6458_p9), 1, %s6313_s17  }
  0x5e   : > { %s4780_s24 = smul.u32 (%p6458_p9), 96, %s6329_s21 }
  0x5f   : > { %s5960_s27 = smul.u32 (%p6458_p9), 96, %s625_s26 }
  0x60   : > { %s6659_s25 = scalar_lea.vmem (%p6458_p9), %s7848_s1, %s4780_s24 }
  0x61   : > { %v4781_v0 = vld [vmem:[%s6659_s25 + $0x60] sm:$0xff] (%p6458_p9)   ;;  %v4783_v1 = vld [vmem:[%s6659_s25 + $0x68] sm:$0xf] (%p6458_p9)  ;;  %v4784_v2 = vld [vmem:[%s6659_s25 + $0x12c] sm:$0xff] (%p6458_p9)   ;;  %s627_s11 = scalar_lea.vmem (%p6458_p9), [#allocation3], %s5960_s27 }
  0x62   : > { %652 = vst [vmem:[%s627_s11] sm:$0xff] (%p6458_p9), %v4781_v0   ;;  %656 = vst [vmem:[%s627_s11 + $0x8] sm:$0xf] (%p6458_p9), %v4783_v1  ;;  %v4786_v3 = vld [vmem:[%s6659_s25 + $0x134] sm:$0xf] (%p6458_p9)  ;;  %v4787_v4 = vld [vmem:[%s6659_s25 + $0x1f8] sm:$0xff] (%p6458_p9)  }
  0x63   : > { %658 = vst [vmem:[%s627_s11 + $0xc] sm:$0xff] (%p6458_p9), %v4784_v2   ;;  %v4789_v5 = vld [vmem:[%s6659_s25 + $0x200] sm:$0xf] (%p6458_p9)  ;;  %662 = vst [vmem:[%s627_s11 + $0x14] sm:$0xf] (%p6458_p9), %v4786_v3  ;;  %v4790_v6 = vld [vmem:[%s6659_s25 + $0x2c4] sm:$0xff] (%p6458_p9)  }
  0x64   : > { %664 = vst [vmem:[%s627_s11 + $0x18] sm:$0xff] %v4787_v4   ;;  %668 = vst [vmem:[%s627_s11 + $0x20] sm:$0xf] %v4789_v5  ;;  %v4792_v7 = vld [vmem:[%s6659_s25 + $0x2cc] sm:$0xf]  ;;  %v4793_v8 = vld [vmem:[%s6659_s25 + $0x390] sm:$0xff]  }
  0x65   : > { %670 = vst [vmem:[%s627_s11 + $0x24] sm:$0xff] %v4790_v6   ;;  %674 = vst [vmem:[%s627_s11 + $0x2c] sm:$0xf] %v4792_v7  ;;  %v4795_v9 = vld [vmem:[%s6659_s25 + $0x398] sm:$0xf]  ;;  %v4796_v10 = vld [vmem:[%s6659_s25 + $0x45c] sm:$0xff]  }
  0x66   : > { %676 = vst [vmem:[%s627_s11 + $0x30] sm:$0xff] %v4793_v8   ;;  %v4798_v11 = vld [vmem:[%s6659_s25 + $0x464] sm:$0xf]  ;;  %680 = vst [vmem:[%s627_s11 + $0x38] sm:$0xf] %v4795_v9  ;;  %v4799_v12 = vld [vmem:[%s6659_s25 + $0x528] sm:$0xff]  }
  0x67   : > { %682 = vst [vmem:[%s627_s11 + $0x3c] sm:$0xff] %v4796_v10   ;;  %686 = vst [vmem:[%s627_s11 + $0x44] sm:$0xf] %v4798_v11  ;;  %v4801_v13 = vld [vmem:[%s6659_s25 + $0x530] sm:$0xf]  ;;  %v4802_v14 = vld [vmem:[%s6659_s25 + $0x5f4] sm:$0xff]  }
  0x68   : > { %688 = vst [vmem:[%s627_s11 + $0x48] sm:$0xff] %v4799_v12   ;;  %692 = vst [vmem:[%s627_s11 + $0x50] sm:$0xf] %v4801_v13  ;;  %v4804_v15 = vld [vmem:[%s6659_s25 + $0x5fc] sm:$0xf] }
  0x69   : > { %694 = vst [vmem:[%s627_s11 + $0x54] sm:$0xff] %v4802_v14   ;;  %698 = vst [vmem:[%s627_s11 + $0x5c] sm:$0xf] %v4804_v15 }
  0x6a PF: > { %p4805_p2 = scmp.ge.s32.totalorder %s6333_s22, 1  ;;  %p768_p3 = scmp.lt.s32.totalorder %s6333_s22, 3 }
  0x6c   : > { %p769_p4 = pnand %p4805_p2, %p768_p3 }
  0x6e   : > { %772 = sbr.rel (%p769_p4) target bundleno = 641 (0x281), region = 131 }
  0x75   : > { %v996_v16 = vld [vmem:[%s7849_s2 + $0x8] sm:$0xf]  ;;  %vm1132_vm0 = vcmask 1041408   ;;  %v994_v17 = vld [vmem:[%s7849_s2] sm:$0xf]  ;;  %s6686_s25 = sand.u32 1, %s6317_s18  }
  0x76   : > { %5952 = vmatprep.subr.msk.bf16.mxu0 %vm1132_vm0, %v996_v16  ;;  %v4985_v18 = vcombine.low %v996_v16, %v996_v16  ;;  %v4823_v19 = vcombine.low %v994_v17, %v994_v17  ;;  %v6690_v20 = vsel %vm1132_vm0, %v996_v16, 0  ;;  %s5961_s5 = smul.u32 768, %s6686_s25  ;;  %vm1083_vm1 = vcmask 31744   ;;  %v6707_v28 = vld [vmem:[%s7849_s2 + $0xc] sm:$0xf]  ;;  %s782_s24 = sand.u32 1, %s6309_s16  }
  0x77   : > { %7873 = vst [vmem:[#allocation10_spill] sm:$0xff] %v6690_v20  ;;  %5521 = vmatpush3.bf16.msra.mxu0 %v6690_v20  ;;  %v1426_v30 = vsel %vm1132_vm0, %v994_v17, 0  ;;  %v6716_v31 = vld [vmem:[%s7849_s2 + $0x4] sm:$0xf]  ;;  %vm1589_vm2 = vsmask.f32 3328  ;;  %v5022_v52 = vcombine.low %v6707_v28, %v6707_v28 }
  0x78   : > { %v1082_v21 = vrot.slane %v4823_v19, 2  ;;  %v3355_v22 = vrot.slane %v4985_v18, 2  ;;  %s6694_s28 = scalar_lea.vmem [#allocation2], %s5961_s5  ;;  %vm1590_vm3 = vsmask.f32 7440  ;;  %v6741_v41 = vsel %vm1132_vm0, %v6707_v28, 0 }
  0x79   : > { %v6113_v23 = vld [vmem:[%s6694_s28 + $0x120] sm:$0xff]   ;;  %v6115_v26 = vld [vmem:[%s6694_s28 + $0x12c] sm:$0xff]   ;;  %v6117_v32 = vld [vmem:[%s6694_s28 + $0x138] sm:$0xff]   ;;  %v6762_v7 = vrot.slane %v5022_v52, 2  ;;  %s6996_s16 = smul.u32 96, %s782_s24  ;;  %s4806_s5 = sshll.u32 %s6686_s25, 7 }
  0x7a   : > { %5948 = vmatprep.subr.msk.bf16.mxu1 %vm1132_vm0, %v1082_v21  ;;  %v1134_v24 = vsel %vm1132_vm0, %v1082_v21, 0  ;;  %v6114_v25 = vld [vmem:[%s6694_s28 + $0x60] sm:$0xff]   ;;  %5954 = vmatprep.subr.msk.bf16.mxu0 %vm1132_vm0, %v3355_v22  ;;  %v3405_v27 = vsel %vm1132_vm0, %v3355_v22, 0  ;;  %v6116_v29 = vld [vmem:[%s6694_s28 + $0x6c] sm:$0xff]   ;;  %v6118_v33 = vld [vmem:[%s6694_s28 + $0x78] sm:$0xff]   ;;  %s4548_s6 = scalar_lea.sflag [#allocation5], %s6686_s25 }
  0x7b   : > { %5385 = vmatpush3.bf16.msra.mxu1 %v1134_v24  ;;  %5522 = vmatprep.mubr.msk.bf16.mxu0 %vm1083_vm1, %v6113_v23  ;;  %v6119_v34 = vld [vmem:[%s6694_s28 + $0x144] sm:$0xff]   ;;  %v6121_v36 = vld [vmem:[%s6694_s28 + $0x150] sm:$0xff]   ;;  %v6123_v38 = vld [vmem:[%s6694_s28 + $0x15c] sm:$0xff]   ;;  %s7041_s27 = scalar_lea.vmem [#allocation3], %s6996_s16 }
  0x7c   : > { %5386 = vmatprep.mubr.msk.bf16.mxu1 %vm1083_vm1, %v6114_v25  ;;  %5949 = vmatprep.subr.msk.bf16.mxu1 %vm1132_vm0, %v994_v17  ;;  %v6120_v35 = vld [vmem:[%s6694_s28 + $0x84] sm:$0xff]   ;;  %v6122_v37 = vld [vmem:[%s6694_s28 + $0x90] sm:$0xff]   ;;  %v6124_v39 = vld [vmem:[%s6694_s28 + $0x9c] sm:$0xff]  }
  0x7d   : > { %5523 = vmatmul.mubr.msk.bf16.vlgmr.msra.gmra.mrb[0].mxu0 %vm1083_vm1, %v6115_v26  ;;  %v6125_v40 = vld [vmem:[%s6694_s28 + $0x168] sm:$0xff]   ;;  %v864_v42 = vld [vmem:[%s6694_s28 + $0xc0] sm:$0xf]  ;;  %v865_v43 = vld [vmem:[%s6694_s28 + $0xc4] sm:$0xf] }
  0x7e   : > { %5387 = vmatmul.mubr.msk.bf16.vlgmr.msra.gmra.mrb[0].mxu1 %vm1083_vm1, %v6116_v29  ;;  %5555 = vmatpush3.bf16.msra.mxu0 %v3405_v27  ;;  %v866_v44 = vld [vmem:[%s6694_s28 + $0xc8] sm:$0x1]  ;;  %v2921_v45 = vshrl.u32 %v864_v42, 16  ;;  %v2924_v46 = vshll.u32 %v864_v42, 16  ;;  %v2930_v47 = vshll.u32 %v865_v43, 16  ;;  %v2934_v48 = vshrl.u32 %v865_v43, 16  ;;  %vm6758_vm4 = vmor %vm1589_vm2, %vm1590_vm3 }
  0x7f   : > { %5419 = vmatpush3.bf16.msra.mxu1 %v1426_v30  ;;  %5526 = vmatprep.mubr.msk.bf16.mxu0 %vm1083_vm1, %v6117_v32  ;;  %v6126_v49 = vld [vmem:[%s6694_s28 + $0xa8] sm:$0xff]   ;;  %v2940_v50 = vshll.u32 %v866_v44, 16  ;;  %v868_v57 = vld [vmem:[%s6694_s28 + $0xd0] sm:$0xf]  ;;  %v869_v59 = vld [vmem:[%s6694_s28 + $0xd4] sm:$0x1] }
  0x80   : > { %5390 = vmatprep.mubr.msk.bf16.mxu1 %vm1083_vm1, %v6118_v33  ;;  %5955 = vmatprep.subr.msk.bf16.mxu0 %vm1132_vm0, %v6707_v28  ;;  %v867_v51 = vld [vmem:[%s6694_s28 + $0xcc] sm:$0xf]  ;;  %v2923_v53 = vrot.slane %v2921_v45, 4  ;;  %v2926_v54 = vrot.slane %v2924_v46, 5  ;;  %v2932_v55 = vrot.slane %v2930_v47, 5  ;;  %v2936_v56 = vrot.slane %v2934_v48, 4 }
  0x81   : > { %5950 = vmatprep.subr.msk.bf16.mxu1 %vm1132_vm0, %v6716_v31  ;;  %v2942_v58 = vrot.slane %v2940_v50, 5  ;;  %v2945_v60 = vshrl.u32 %v867_v51, 16  ;;  %v2948_v61 = vshll.u32 %v867_v51, 16  ;;  %v2954_v62 = vshll.u32 %v868_v57, 16  ;;  %v870_v8 = vld [vmem:[%s6694_s28 + $0xd8] sm:$0xf] }
  0x82   : > { %v2927_v63 = vor.u32 %v2926_v54, %v2923_v53  ;;  %v2937_v0 = vor.u32 %v2936_v56, %v2932_v55  ;;  %v2958_v1 = vshrl.u32 %v868_v57, 16  ;;  %v2964_v2 = vshll.u32 %v869_v59, 16  ;;  %v871_v13 = vld [vmem:[%s6694_s28 + $0xdc] sm:$0xf]  ;;  %v6127_v14 = vld [vmem:[%s6694_s28 + $0x174] sm:$0xff]   ;;  %v6129_v27 = vld [vmem:[%s6694_s28 + $0x1e0] sm:$0xff]  }
  0x83   : > { %v2947_v4 = vrot.slane %v2945_v60, 4  ;;  %v2950_v5 = vrot.slane %v2948_v61, 5  ;;  %v2956_v6 = vrot.slane %v2954_v62, 5  ;;  %v872_v16 = vld [vmem:[%s6694_s28 + $0xe0] sm:$0x1]  ;;  %v2969_v17 = vshrl.u32 %v870_v8, 16 }
  0x84   : > { %v2928_v9 = vrot.slane %v2927_v63, 4  ;;  %v2938_v10 = vrot.slane %v2937_v0, 4  ;;  %v2960_v11 = vrot.slane %v2958_v1, 4  ;;  %v2966_v12 = vrot.slane %v2964_v2, 5  ;;  %v6128_v21 = vld [vmem:[%s6694_s28 + $0xb4] sm:$0xff]   ;;  %v6130_v63 = vld [vmem:[%s6694_s28 + $0x1ec] sm:$0xff]  }
  0x85   : > { %5527 = vmatmul.mubr.msk.bf16.gmra.mrb[4].mxu0 %vm1083_vm1, %v6119_v34  ;;  %v2951_v15 = vor.u32 %v2950_v5, %v2947_v4  ;;  %v2972_v18 = vshll.u32 %v870_v8, 16  ;;  %v2978_v19 = vshll.u32 %v871_v13, 16  ;;  %v2982_v25 = vshrl.u32 %v871_v13, 16  ;;  %v873_v32 = vld [vmem:[%s6694_s28 + $0xe4] sm:$0xf]  ;;  %v6132_v8 = vld [vmem:[%s6694_s28 + $0x1f8] sm:$0xff]  }
  0x86   : > { %5391 = vmatmul.mubr.msk.bf16.gmra.mrb[4].mxu1 %vm1083_vm1, %v6120_v35  ;;  %5530 = vmatprep.mubr.msk.bf16.mxu0 %vm1083_vm1, %v6121_v36  ;;  %v2933_v22 = vsel %vm6758_vm4, %v2928_v9, %v2932_v55  ;;  %v2943_v23 = vsel %vm6758_vm4, %v2938_v10, %v2942_v58  ;;  %v2961_v24 = vor.u32 %v2960_v11, %v2956_v6  ;;  %v2971_v29 = vrot.slane %v2969_v17, 4  ;;  %v876_v48 = vld [vmem:[%s6694_s28 + $0xf0] sm:$0xf]  ;;  %v877_v53 = vld [vmem:[%s6694_s28 + $0xf4] sm:$0xf] }
  0x87   : > { %5394 = vmatprep.mubr.msk.bf16.mxu1 %vm1083_vm1, %v6122_v37  ;;  %v4969_v26 = vcombine.low %v2933_v22, %v2943_v23  ;;  %v2952_v28 = vrot.slane %v2951_v15, 4  ;;  %v2974_v30 = vrot.slane %v2972_v18, 5  ;;  %v2980_v34 = vrot.slane %v2978_v19, 5  ;;  %v874_v37 = vld [vmem:[%s6694_s28 + $0xe8] sm:$0xf]  ;;  %v6157_v3 = vld [vmem:[%s7041_s27 + $0xc] sm:$0xff]  }
  0x88   : > { %v2962_v33 = vrot.slane %v2961_v24, 4  ;;  %v2984_v35 = vrot.slane %v2982_v25, 4  ;;  %v2988_v36 = vshll.u32 %v872_v16, 16  ;;  %v2993_v42 = vshrl.u32 %v873_v32, 16  ;;  %v878_v58 = vld [vmem:[%s6694_s28 + $0xf8] sm:$0x1] }
  0x89   : > { %v2996_v43 = vshll.u32 %v873_v32, 16  ;;  %v3002_v47 = vshll.u32 %v874_v37, 16  ;;  %v3006_v56 = vshrl.u32 %v874_v37, 16  ;;  %v3017_v61 = vshrl.u32 %v876_v48, 16  ;;  %v879_v5 = vld [vmem:[%s6694_s28 + $0xfc] sm:$0xf] }
  0x8a   : > { %v2967_v44 = vsel %vm6758_vm4, %v2962_v33, %v2966_v12  ;;  %v2985_v45 = vor.u32 %v2984_v35, %v2980_v34  ;;  %v2990_v46 = vrot.slane %v2988_v36, 5  ;;  %v2995_v51 = vrot.slane %v2993_v42, 4  ;;  %v880_v12 = vld [vmem:[%s6694_s28 + $0x100] sm:$0xf]  ;;  %v881_v17 = vld [vmem:[%s6694_s28 + $0x104] sm:$0x1] }
  0x8b   : > { %v2998_v52 = vrot.slane %v2996_v43, 5  ;;  %v3004_v55 = vrot.slane %v3002_v47, 5  ;;  %v3020_v62 = vshll.u32 %v876_v48, 16  ;;  %v3008_v1 = vrot.slane %v3006_v56, 4  ;;  %v882_v32 = vld [vmem:[%s6694_s28 + $0x108] sm:$0xf] }
  0x8c   : > { %v2986_v54 = vrot.slane %v2985_v45, 4  ;;  %v3026_v4 = vshll.u32 %v877_v53, 16  ;;  %v3019_v10 = vrot.slane %v3017_v61, 4  ;;  %v3030_v15 = vshrl.u32 %v877_v53, 16  ;;  %v883_v36 = vld [vmem:[%s6694_s28 + $0x10c] sm:$0xf] }
  0x8d   : > { %5531 = vmatmul.mubr.msk.bf16.gmra.mrb[8].mxu0 %vm1083_vm1, %v6123_v38  ;;  %v2957_v38 = vsel %vm6758_vm4, %v2952_v28, %v2956_v6  ;;  %v2999_v60 = vor.u32 %v2998_v52, %v2995_v51  ;;  %v3022_v11 = vrot.slane %v3020_v62, 5  ;;  %v3009_v13 = vor.u32 %v3008_v1, %v3004_v55  ;;  %v884_v43 = vld [vmem:[%s6694_s28 + $0x110] sm:$0x1]  ;;  %v885_v48 = vld [vmem:[%s6694_s28 + $0x114] sm:$0xf] }
  0x8e   : > { %5395 = vmatmul.mubr.msk.bf16.gmra.mrb[8].mxu1 %vm1083_vm1, %v6124_v39  ;;  %5534 = vmatprep.mubr.msk.bf16.mxu0 %vm1083_vm1, %v6125_v40  ;;  %v2975_v39 = vor.u32 %v2974_v30, %v2971_v29  ;;  %v875_v40 = vld [vmem:[%s6694_s28 + $0xec] sm:$0x1]  ;;  %v2991_v0 = vsel %vm6758_vm4, %v2986_v54, %v2990_v46  ;;  %v3036_v16 = vshll.u32 %v878_v58, 16  ;;  %v3044_v22 = vshll.u32 %v879_v5, 16  ;;  %v886_v54 = vld [vmem:[%s6694_s28 + $0x118] sm:$0xf] }
  0x8f   : > { %5398 = vmatprep.mubr.msk.bf16.mxu1 %vm1083_vm1, %v6126_v49  ;;  %v4970_v49 = vcombine.low %v2957_v38, %v2967_v44  ;;  %v3012_v57 = vshll.u32 %v875_v40, 16  ;;  %v3000_v9 = vrot.slane %v2999_v60, 4  ;;  %v3023_v19 = vor.u32 %v3022_v11, %v3019_v10  ;;  %v6133_v38 = vld [vmem:[%s6694_s28 + $0x204] sm:$0xff]   ;;  %v944_v10 = vld [vmem:[%s6694_s28 + $0x240] sm:$0xf] }
  0x90   : > { %v2976_v50 = vrot.slane %v2975_v39, 4  ;;  %v3010_v23 = vrot.slane %v3009_v13, 4  ;;  %v3032_v24 = vrot.slane %v3030_v15, 4  ;;  %v3038_v25 = vrot.slane %v3036_v16, 5  ;;  %v945_v15 = vld [vmem:[%s6694_s28 + $0x244] sm:$0xf] }
  0x91   : > { %v3014_v2 = vrot.slane %v3012_v57, 5  ;;  %v3005_v18 = vsel %vm6758_vm4, %v3000_v9, %v3004_v55  ;;  %v3046_v29 = vrot.slane %v3044_v22, 5  ;;  %v3054_v30 = vshrl.u32 %v880_v12, 16 }
  0x92   : > { %v2981_v59 = vsel %vm6758_vm4, %v2976_v50, %v2980_v34  ;;  %v3060_v35 = vshll.u32 %v881_v17, 16  ;;  %v3065_v46 = vshrl.u32 %v882_v32, 16  ;;  %v3068_v47 = vshll.u32 %v882_v32, 16 }
  0x93   : > { %v4971_v6 = vcombine.low %v2981_v59, %v2991_v0  ;;  %v3015_v33 = vsel %vm6758_vm4, %v3010_v23, %v3014_v2  ;;  %v3056_v42 = vrot.slane %v3054_v30, 4  ;;  %v3074_v52 = vshll.u32 %v883_v36, 16  ;;  %v887_v2 = vld [vmem:[%s6694_s28 + $0x11c] sm:$0x1]  ;;  %v946_v30 = vld [vmem:[%s6694_s28 + $0x248] sm:$0x1] }
  0x94   : > { %v4972_v37 = vcombine.low %v3005_v18, %v3015_v33  ;;  %v3062_v45 = vrot.slane %v3060_v35, 5  ;;  %v3078_v53 = vshrl.u32 %v883_v36, 16  ;;  %v3067_v56 = vrot.slane %v3065_v46, 4  ;;  %v6846_v46 = vld [vmem:[%s6694_s28] sm:$0xf] }
  0x95   : > { %5535 = vmatmul.mubr.msk.bf16.gmra.mrb[12].mxu0 %vm1083_vm1, %v6127_v14  ;;  %v3028_v14 = vrot.slane %v3026_v4, 5  ;;  %v3070_v57 = vrot.slane %v3068_v47, 5  ;;  %v3084_v58 = vshll.u32 %v884_v43, 16  ;;  %v3076_v62 = vrot.slane %v3074_v52, 5  ;;  %v947_v47 = vld [vmem:[%s6694_s28 + $0x24c] sm:$0xf] }
  0x96   : > { %5399 = vmatmul.mubr.msk.bf16.gmra.mrb[12].mxu1 %vm1083_vm1, %v6128_v21  ;;  %5556 = vmatprep.mubr.msk.bf16.mxu0 %vm1083_vm1, %v4969_v26  ;;  %v3041_v21 = vshrl.u32 %v879_v5, 16  ;;  %v3050_v26 = vshll.u32 %v880_v12, 16  ;;  %v3080_v0 = vrot.slane %v3078_v53, 4  ;;  %v3089_v4 = vshrl.u32 %v885_v48, 16  ;;  %v948_v52 = vld [vmem:[%s6694_s28 + $0x250] sm:$0xf] }
  0x97   : > { %5402 = vmatprep.mubr.msk.bf16.mxu1 %vm1083_vm1, %v6129_v27  ;;  %v3024_v27 = vrot.slane %v3023_v19, 4  ;;  %v3086_v1 = vrot.slane %v3084_v58, 5  ;;  %v3102_v9 = vshrl.u32 %v886_v54, 16  ;;  %v3108_v19 = vshll.u32 %v887_v2, 16 }
  0x98   : > { %v3043_v28 = vrot.slane %v3041_v21, 4  ;;  %v3052_v34 = vrot.slane %v3050_v26, 5  ;;  %v3081_v13 = vor.u32 %v3080_v0, %v3076_v62  ;;  %v6135_v21 = vld [vmem:[%s6694_s28 + $0x21c] sm:$0xff]   ;;  %v6136_v26 = vld [vmem:[%s6694_s28 + $0x228] sm:$0xff]   ;;  %v3122_v32 = vshll.u32 %v945_v15, 16 }
  0x99   : > { %v3029_v39 = vsel %vm6758_vm4, %v3024_v27, %v3028_v14  ;;  %v3104_v18 = vrot.slane %v3102_v9, 4  ;;  %v3126_v35 = vshrl.u32 %v945_v15, 16  ;;  %v3132_v43 = vshll.u32 %v946_v30, 16  ;;  %v951_v15 = vld [vmem:[%s6694_s28 + $0x25c] sm:$0xf] }
  0x9a   : > { %v3047_v40 = vor.u32 %v3046_v29, %v3043_v28  ;;  %v3057_v51 = vor.u32 %v3056_v42, %v3052_v34  ;;  %v3082_v23 = vrot.slane %v3081_v13, 4  ;;  %v3110_v29 = vrot.slane %v3108_v19, 5 }
  0x9b   : > { %v3128_v42 = vrot.slane %v3126_v35, 4  ;;  %v3137_v58 = vshrl.u32 %v947_v47, 16  ;;  %v4920_v9 = vcombine.low %v6716_v31, %v6716_v31  ;;  %v3174_v30 = vshrl.u32 %v951_v15, 16  ;;  %v953_v35 = vld [vmem:[%s6694_s28 + $0x264] sm:$0xf] }
  0x9c   : > { %v3048_v50 = vrot.slane %v3047_v40, 4  ;;  %v3058_v61 = vrot.slane %v3057_v51, 4  ;;  %v3087_v33 = vsel %vm6758_vm4, %v3082_v23, %v3086_v1  ;;  %v6850_v51 = vld [vmem:[%s6694_s28 + $0x4] sm:$0xf] }
  0x9d   : > { %5557 = vmatmul.mubr.msk.bf16.vlgmr.msra.gmra.mrb[0].mxu0 %vm1083_vm1, %v4970_v49  ;;  %v6134_v49 = vld [vmem:[%s6694_s28 + $0x210] sm:$0xff]   ;;  %v3139_v0 = vrot.slane %v3137_v58, 4 }
  0x9e   : > { %5403 = vmatmul.mubr.msk.bf16.gmra.mrb[16].mxu1 %vm1083_vm1, %v6130_v63  ;;  %5589 = vmatpush3.bf16.msra.mxu0 %v6741_v41  ;;  %v3033_v41 = vor.u32 %v3032_v24, %v3028_v14  ;;  %v3053_v60 = vsel %vm6758_vm4, %v3048_v50, %v3052_v34  ;;  %v3071_v63 = vor.u32 %v3070_v57, %v3067_v56  ;;  %v3091_v14 = vrot.slane %v3089_v4, 4  ;;  %v950_v4 = vld [vmem:[%s6694_s28 + $0x258] sm:$0xf] }
  0x9f   : > { %5560 = vmatprep.mubr.msk.bf16.mxu0 %vm1083_vm1, %v4971_v6  ;;  %5406 = vmatprep.mubr.msk.bf16.mxu1 %vm1083_vm1, %v6132_v8  ;;  %v3063_v5 = vsel %vm6758_vm4, %v3058_v61, %v3062_v45  ;;  %v3092_v6 = vshll.u32 %v885_v48, 16  ;;  %v3098_v8 = vshll.u32 %v886_v54, 16  ;;  %v3113_v24 = vshrl.u32 %v944_v10, 16  ;;  %v949_v54 = vld [vmem:[%s6694_s28 + $0x254] sm:$0x1] }
  0xa0   : > { %5956 = vmatprep.subr.msk.bf16.mxu0 %vm1132_vm0, %v6762_v7  ;;  %v3034_v44 = vrot.slane %v3033_v41, 4  ;;  %v4974_v11 = vcombine.low %v3053_v60, %v3063_v5  ;;  %v3072_v12 = vrot.slane %v3071_v63, 4  ;;  %v3134_v50 = vrot.slane %v3132_v43, 5 }
  0xa1   : > { %v3094_v16 = vrot.slane %v3092_v6, 5  ;;  %v3100_v17 = vrot.slane %v3098_v8, 5  ;;  %v3115_v41 = vrot.slane %v3113_v24, 4  ;;  %v4840_v60 = vcombine.low %v6846_v46, %v6850_v51 }
  0xa2   : > { %v3039_v55 = vsel %vm6758_vm4, %v3034_v44, %v3038_v25  ;;  %v3077_v22 = vsel %vm6758_vm4, %v3072_v12, %v3076_v62  ;;  %v3116_v25 = vshll.u32 %v944_v10, 16  ;;  %v3146_v61 = vshll.u32 %v948_v52, 16  ;;  %v6870_v12 = vld [vmem:[%s6694_s28 + $0x10] sm:$0xf] }
  0xa3   : > { %v4973_v59 = vcombine.low %v3029_v39, %v3039_v55  ;;  %v3095_v27 = vor.u32 %v3094_v16, %v3091_v14  ;;  %v3105_v28 = vor.u32 %v3104_v18, %v3100_v17  ;;  %v4975_v36 = vcombine.low %v3077_v22, %v3087_v33  ;;  %v6137_v55 = vld [vmem:[%s6694_s28 + $0x234] sm:$0xff]   ;;  %v952_v16 = vld [vmem:[%s6694_s28 + $0x260] sm:$0x1]  ;;  %v6880_v22 = vld [vmem:[%s6694_s28 + $0x1c] sm:$0xf] }
  0xa4   : > { %v3118_v34 = vrot.slane %v3116_v25, 5  ;;  %v3124_v39 = vrot.slane %v3122_v32, 5  ;;  %v3150_v62 = vshrl.u32 %v948_v52, 16  ;;  %v3156_v2 = vshll.u32 %v949_v54, 16 }
  0xa5   : > { %5561 = vmatmul.mubr.msk.bf16.gmra.mrb[4].mxu0 %vm1083_vm1, %v4972_v37  ;;  %v3096_v37 = vrot.slane %v3095_v27, 4  ;;  %v3148_v6 = vrot.slane %v3146_v61, 5  ;;  %v3164_v19 = vshll.u32 %v950_v4, 16  ;;  %v6886_v25 = vrot.slane %v4920_v9, 2  ;;  %v956_v61 = vld [vmem:[%s6694_s28 + $0x270] sm:$0xf] }
  0xa6   : > { %5407 = vmatmul.mubr.msk.bf16.gmra.mrb[20].mxu1 %vm1083_vm1, %v6133_v38  ;;  %5564 = vmatprep.mubr.msk.bf16.mxu0 %vm1083_vm1, %v4973_v59  ;;  %v3106_v38 = vrot.slane %v3105_v28, 4  ;;  %v3119_v40 = vor.u32 %v3118_v34, %v3115_v41  ;;  %v3140_v59 = vshll.u32 %v947_v47, 16  ;;  %v3152_v8 = vrot.slane %v3150_v62, 4 }
  0xa7   : > { %5410 = vmatprep.mubr.msk.bf16.mxu1 %vm1083_vm1, %v6134_v49  ;;  %v3101_v44 = vsel %vm6758_vm4, %v3096_v37, %v3100_v17  ;;  %v3129_v49 = vor.u32 %v3128_v42, %v3124_v39  ;;  %v3158_v14 = vrot.slane %v3156_v2, 5  ;;  %v3161_v17 = vshrl.u32 %v950_v4, 16  ;;  %v958_v4 = vld [vmem:[%s6694_s28 + $0x278] sm:$0x1] }
  0xa8   : > { %v3111_v45 = vsel %vm6758_vm4, %v3106_v38, %v3110_v29  ;;  %v3120_v48 = vrot.slane %v3119_v40, 4  ;;  %v3142_v1 = vrot.slane %v3140_v59, 5  ;;  %v3153_v13 = vor.u32 %v3152_v8, %v3148_v6  ;;  %v954_v40 = vld [vmem:[%s6694_s28 + $0x268] sm:$0xf] }
  0xa9   : > { %v4976_v53 = vcombine.low %v3101_v44, %v3111_v45  ;;  %v3130_v57 = vrot.slane %v3129_v49, 4  ;;  %v3166_v28 = vrot.slane %v3164_v19, 5  ;;  %v3170_v29 = vshll.u32 %v951_v15, 16  ;;  %v955_v44 = vld [vmem:[%s6694_s28 + $0x26c] sm:$0x1] }
  0xaa   : > { %v3125_v56 = vsel %vm6758_vm4, %v3120_v48, %v3124_v39  ;;  %v3143_v10 = vor.u32 %v3142_v1, %v3139_v0  ;;  %v3154_v23 = vrot.slane %v3153_v13, 4  ;;  %v2073_v33 = vsel %vm1132_vm0, %v6716_v31, 0  ;;  %v6907_v49 = vld [vmem:[%s6694_s28 + $0x24] sm:$0xf]  ;;  %v957_v1 = vld [vmem:[%s6694_s28 + $0x274] sm:$0xf] }
  0xab   : > { %v3135_v63 = vsel %vm6758_vm4, %v3130_v57, %v3134_v50  ;;  %v3180_v41 = vshll.u32 %v952_v16, 16  ;;  %v3172_v38 = vrot.slane %v3170_v29, 5  ;;  %v3176_v39 = vrot.slane %v3174_v30, 4  ;;  %v6910_v50 = vld [vmem:[%s6694_s28 + $0x28] sm:$0xf] }
  0xac   : > { %v4977_v5 = vcombine.low %v3125_v56, %v3135_v63  ;;  %v3144_v18 = vrot.slane %v3143_v10, 4  ;;  %v3159_v32 = vsel %vm6758_vm4, %v3154_v23, %v3158_v14  ;;  %v3185_v45 = vshrl.u32 %v953_v35, 16  ;;  %v6930_v13 = vld [vmem:[%s6694_s28 + $0x34] sm:$0xf] }
  0xad   : > { %5565 = vmatmul.mubr.msk.bf16.gmra.mrb[8].mxu0 %vm1083_vm1, %v4974_v11  ;;  %v6867_v11 = vld [vmem:[%s6694_s28 + $0xc] sm:$0xf]  ;;  %v3177_v31 = vor.u32 %v3176_v39, %v3172_v38  ;;  %v3182_v43 = vrot.slane %v3180_v41, 5  ;;  %v3188_v47 = vshll.u32 %v953_v35, 16  ;;  %v3194_v48 = vshll.u32 %v954_v40, 16 }
  0xae   : > { %5411 = vmatmul.mubr.msk.bf16.gmra.mrb[24].mxu1 %vm1083_vm1, %v6135_v21  ;;  %5568 = vmatprep.mubr.msk.bf16.mxu0 %vm1083_vm1, %v4975_v36  ;;  %v6877_v21 = vld [vmem:[%s6694_s28 + $0x18] sm:$0xf]  ;;  %v6884_v24 = vcombine.low %v6867_v11, %v6870_v12  ;;  %v3149_v27 = vsel %vm6758_vm4, %v3144_v18, %v3148_v6  ;;  %v3187_v54 = vrot.slane %v3185_v45, 4  ;;  %v3198_v57 = vshrl.u32 %v954_v40, 16  ;;  %v6948_v39 = vld [vmem:[%s6694_s28 + $0x3c] sm:$0xf] }
  0xaf   : > { %5414 = vmatprep.mubr.msk.bf16.mxu1 %vm1083_vm1, %v6136_v26  ;;  %v3163_v26 = vrot.slane %v3161_v17, 4  ;;  %v6896_v34 = vcombine.low %v6877_v21, %v6880_v22  ;;  %v4978_v36 = vcombine.low %v3149_v27, %v3159_v32  ;;  %v3196_v56 = vrot.slane %v3194_v48, 5  ;;  %v959_v32 = vld [vmem:[%s6694_s28 + $0x27c] sm:$0xf] }
  0xb0   : > { %v3204_v58 = vshll.u32 %v955_v44, 16  ;;  %v3200_v0 = vrot.slane %v3198_v57, 4  ;;  %v3209_v9 = vshrl.u32 %v956_v61, 16  ;;  %v3212_v10 = vshll.u32 %v956_v61, 16 }
  0xb1   : > { %v3167_v37 = vor.u32 %v3166_v28, %v3163_v26  ;;  %v3218_v14 = vshll.u32 %v957_v1, 16  ;;  %v3222_v15 = vshrl.u32 %v957_v1, 16  ;;  %v3228_v27 = vshll.u32 %v958_v4, 16  ;;  %v964_v1 = vld [vmem:[%s6694_s28 + $0x290] sm:$0x1] }
  0xb2   : > { %v3206_v2 = vrot.slane %v3204_v58, 5  ;;  %v3201_v8 = vor.u32 %v3200_v0, %v3196_v56  ;;  %v3211_v18 = vrot.slane %v3209_v9, 4  ;;  %v3214_v19 = vrot.slane %v3212_v10, 5  ;;  %v963_v0 = vld [vmem:[%s6694_s28 + $0x28c] sm:$0xf] }
  0xb3   : > { %v3168_v42 = vrot.slane %v3167_v37, 4  ;;  %v3220_v23 = vrot.slane %v3218_v14, 5  ;;  %v3224_v26 = vrot.slane %v3222_v15, 4  ;;  %v3230_v35 = vrot.slane %v3228_v27, 5  ;;  %v6972_v9 = vld [vmem:[%s6694_s28 + $0x4c] sm:$0xf] }
  0xb4   : > { %v3202_v17 = vrot.slane %v3201_v8, 4  ;;  %v3215_v30 = vor.u32 %v3214_v19, %v3211_v18  ;;  %v6969_v8 = vld [vmem:[%s6694_s28 + $0x48] sm:$0xf]  ;;  %v3270_v18 = vshrl.u32 %v963_v0, 16  ;;  %v1593_v19 = vshrl.u32 %v6846_v46, 16 }
  0xb5   : > { %5569 = vmatmul.mubr.msk.bf16.gmra.mrb[12].mxu0 %vm1083_vm1, %v4976_v53  ;;  %v3173_v52 = vsel %vm6758_vm4, %v3168_v42, %v3172_v38  ;;  %v3178_v53 = vrot.slane %v3177_v31, 4  ;;  %v3225_v41 = vor.u32 %v3224_v26, %v3220_v23  ;;  %v961_v38 = vld [vmem:[%s6694_s28 + $0x284] sm:$0x1]  ;;  %v3233_v42 = vshrl.u32 %v959_v32, 16 }
  0xb6   : > { %5415 = vmatmul.mubr.msk.bf16.gmra.mrb[28].mxu1 %vm1083_vm1, %v6137_v55  ;;  %5572 = vmatprep.mubr.msk.bf16.mxu0 %vm1083_vm1, %v4977_v5  ;;  %v3190_v55 = vrot.slane %v3188_v47, 5  ;;  %v6926_v5 = vld [vmem:[%s6694_s28 + $0x30] sm:$0xf]  ;;  %v3207_v29 = vsel %vm6758_vm4, %v3202_v17, %v3206_v2  ;;  %v3216_v37 = vrot.slane %v3215_v30, 4  ;;  %v3236_v31 = vshll.u32 %v959_v32, 16 }
  0xb7   : > { %5420 = vmatprep.mubr.msk.bf16.mxu1 %vm1083_vm1, %v4840_v60  ;;  %v3183_v59 = vsel %vm6758_vm4, %v3178_v53, %v3182_v43  ;;  %v6920_v60 = vcombine.low %v6907_v49, %v6910_v50  ;;  %v6938_v28 = vcombine.low %v6926_v5, %v6930_v13  ;;  %v3226_v40 = vrot.slane %v3225_v41, 4  ;;  %v6952_v43 = vld [vmem:[%s6694_s28 + $0x40] sm:$0xf] }
  0xb8   : > { %v4979_v62 = vcombine.low %v3173_v52, %v3183_v59  ;;  %v3191_v63 = vor.u32 %v3190_v55, %v3187_v54  ;;  %v3221_v44 = vsel %vm6758_vm4, %v3216_v37, %v3220_v23  ;;  %v3235_v52 = vrot.slane %v3233_v42, 4  ;;  %v962_v55 = vld [vmem:[%s6694_s28 + $0x288] sm:$0xf] }
  0xb9   : > { %v3231_v48 = vsel %vm6758_vm4, %v3226_v40, %v3230_v35  ;;  %v3238_v53 = vrot.slane %v3236_v31, 5  ;;  %v3252_v54 = vshll.u32 %v961_v38, 16  ;;  %v6961_v59 = vcombine.low %v6948_v39, %v6952_v43  ;;  %v966_v35 = vld [vmem:[%s6694_s28 + $0x298] sm:$0xf] }
  0xba   : > { %v3192_v6 = vrot.slane %v3191_v63, 4  ;;  %v3257_v2 = vshrl.u32 %v962_v55, 16  ;;  %v3266_v17 = vshll.u32 %v963_v0, 16  ;;  %v3276_v26 = vshll.u32 %v964_v1, 16 }
  0xbb   : > { %v3239_v61 = vor.u32 %v3238_v53, %v3235_v52  ;;  %v3254_v63 = vrot.slane %v3252_v54, 5  ;;  %v6981_v27 = vcombine.low %v6969_v8, %v6972_v9  ;;  %v3272_v41 = vrot.slane %v3270_v18, 4  ;;  %v7002_v52 = vld [vmem:[%s6694_s28 + $0x58] sm:$0xf] }
  0xbc   : > { %v3197_v16 = vsel %vm6758_vm4, %v3192_v6, %v3196_v56  ;;  %v4981_v56 = vcombine.low %v3221_v44, %v3231_v48  ;;  %v3260_v6 = vshll.u32 %v962_v55, 16  ;;  %v3259_v14 = vrot.slane %v3257_v2, 4  ;;  %v967_v44 = vld [vmem:[%s6694_s28 + $0x29c] sm:$0x1]  ;;  %v6999_v48 = vld [vmem:[%s6694_s28 + $0x54] sm:$0xf] }
  0xbd   : > { %5573 = vmatmul.mubr.msk.bf16.gmra.mrb[16].mxu0 %vm1083_vm1, %v4978_v36  ;;  %v960_v36 = vld [vmem:[%s6694_s28 + $0x280] sm:$0xf]  ;;  %v3240_v4 = vrot.slane %v3239_v61, 4  ;;  %v1602_v37 = vshll.u32 %v6850_v51, 16  ;;  %v6992_v38 = vsel %vm1132_vm0, %v6762_v7, 0  ;;  %v3278_v31 = vrot.slane %v3276_v26, 5 }
  0xbe   : > { %5421 = vmatmul.mubr.msk.bf16.vlgmr.msra.gmra.mrb[0].mxu1 %vm1083_vm1, %v6884_v24  ;;  %5576 = vmatprep.mubr.msk.bf16.mxu0 %vm1083_vm1, %v4979_v62  ;;  %v3242_v45 = vshll.u32 %v960_v36, 16  ;;  %v3246_v47 = vshrl.u32 %v960_v36, 16  ;;  %v1596_v36 = vshll.u32 %v6846_v46, 16  ;;  %v3290_v46 = vshll.u32 %v966_v35, 16  ;;  %v7018_v2 = vld [vmem:[%s6694_s28 + $0x180] sm:$0xf] }
  0xbf   : > { %5453 = vmatpush3.bf16.msra.mxu1 %v2073_v33  ;;  %5424 = vmatprep.mubr.msk.bf16.mxu1 %vm1083_vm1, %v6896_v34  ;;  %v4980_v33 = vcombine.low %v3197_v16, %v3207_v29  ;;  %v3262_v16 = vrot.slane %v3260_v6, 5  ;;  %v965_v29 = vld [vmem:[%s6694_s28 + $0x294] sm:$0xf]  ;;  %v7004_v53 = vrot.slane %v1593_v19, 4  ;;  %v3300_v61 = vshll.u32 %v967_v44, 16 }
  0xc0   : > { %5951 = vmatprep.subr.msk.bf16.mxu1 %vm1132_vm0, %v6886_v25  ;;  %v3244_v57 = vrot.slane %v3242_v45, 5  ;;  %v3248_v58 = vrot.slane %v3246_v47, 4  ;;  %v3281_v45 = vshrl.u32 %v965_v29, 16  ;;  %v3284_v47 = vshll.u32 %v965_v29, 16  ;;  %v7032_v19 = vld [vmem:[%s6694_s28 + $0x18c] sm:$0xf] }
  0xc1   : > { %v3263_v32 = vor.u32 %v3262_v16, %v3259_v14  ;;  %v7015_v1 = vcombine.low %v6999_v48, %v7002_v52  ;;  %v7023_v6 = vrot.slane %v1602_v37, 5  ;;  %v1620_v16 = vshll.u32 %v6867_v11, 16 }
  0xc2   : > { %v3249_v62 = vor.u32 %v3248_v58, %v3244_v57  ;;  %v3245_v15 = vsel %vm6758_vm4, %v3240_v4, %v3244_v57  ;;  %v3283_v55 = vrot.slane %v3281_v45, 4  ;;  %v3292_v57 = vrot.slane %v3290_v46, 5  ;;  %v7021_v4 = vld [vmem:[%s6694_s28 + $0x184] sm:$0xf] }
  0xc3   : > { %v3264_v40 = vrot.slane %v3263_v32, 4  ;;  %v3294_v58 = vshrl.u32 %v966_v35, 16  ;;  %v1630_v18 = vshrl.u32 %v6870_v12, 16  ;;  %v3302_v29 = vrot.slane %v3300_v61, 5 }
  0xc4   : > { %v3250_v10 = vrot.slane %v3249_v62, 4  ;;  %v7008_v62 = vrot.slane %v1596_v36, 5  ;;  %v1641_v32 = vshrl.u32 %v6877_v21, 16  ;;  %v1654_v35 = vshrl.u32 %v6880_v22, 16 }
  0xc5   : > { %5577 = vmatmul.mubr.msk.bf16.gmra.mrb[20].mxu0 %vm1083_vm1, %v4980_v33  ;;  %v3268_v33 = vrot.slane %v3266_v17, 5  ;;  %v1626_v17 = vshll.u32 %v6870_v12, 16  ;;  %v7060_v44 = vrot.slane %v1620_v16, 5  ;;  %v1668_v46 = vshll.u32 %v6907_v49, 16 }
  0xc6   : > { %5425 = vmatmul.mubr.msk.bf16.gmra.mrb[4].mxu1 %vm1083_vm1, %v6920_v60  ;;  %5580 = vmatprep.mubr.msk.bf16.mxu0 %vm1083_vm1, %v4981_v56  ;;  %v3255_v23 = vsel %vm6758_vm4, %v3250_v10, %v3254_v63  ;;  %v3286_v56 = vrot.slane %v3284_v47, 5  ;;  %v1606_v63 = vshrl.u32 %v6850_v51, 16  ;;  %v1617_v51 = vshrl.u32 %v6867_v11, 16  ;;  %v7038_v11 = vld [vmem:[%s6694_s28 + $0x190] sm:$0xf] }
  0xc7   : > { %5428 = vmatprep.mubr.msk.bf16.mxu1 %vm1083_vm1, %v6938_v28  ;;  %v4982_v30 = vcombine.low %v3245_v15, %v3255_v23  ;;  %v3273_v42 = vor.u32 %v3272_v41, %v3268_v33  ;;  %v3269_v7 = vsel %vm6758_vm4, %v3264_v40, %v3268_v33  ;;  %v3296_v15 = vrot.slane %v3294_v58, 4  ;;  %v7053_v40 = vld [vmem:[%s6694_s28 + $0x198] sm:$0xf] }
  0xc8   : > { %v3287_v14 = vor.u32 %v3286_v56, %v3283_v55  ;;  %v7043_v12 = vrot.slane %v1606_v63, 4  ;;  %v1644_v33 = vshll.u32 %v6877_v21, 16  ;;  %v1650_v41 = vshll.u32 %v6880_v22, 16 }
  0xc9   : > { %v3274_v54 = vrot.slane %v3273_v42, 4  ;;  %v3297_v26 = vor.u32 %v3296_v15, %v3292_v57  ;;  %v7056_v42 = vld [vmem:[%s6694_s28 + $0x19c] sm:$0xf]  ;;  %v7062_v45 = vrot.slane %v1626_v17, 5  ;;  %v7066_v21 = vcombine.low %v7032_v19, %v7038_v11 }
  0xca   : > { %v3288_v23 = vrot.slane %v3287_v14, 4  ;;  %v7068_v22 = vrot.slane %v1630_v18, 4  ;;  %v1665_v47 = vshrl.u32 %v6907_v49, 16  ;;  %v1678_v55 = vshrl.u32 %v6910_v50, 16 }
  0xcb   : > { %v3279_v0 = vsel %vm6758_vm4, %v3274_v54, %v3278_v31  ;;  %v3298_v37 = vrot.slane %v3297_v26, 4  ;;  %v7058_v31 = vrot.slane %v1617_v51, 4  ;;  %v1674_v54 = vshll.u32 %v6910_v50, 16  ;;  %v7103_v51 = vld [vmem:[%s6694_s28 + $0x1a8] sm:$0xf] }
  0xcc   : > { %v4983_v10 = vcombine.low %v3269_v7, %v3279_v0  ;;  %v3293_v36 = vsel %vm6758_vm4, %v3288_v23, %v3292_v57  ;;  %v7078_v57 = vcombine.low %v7053_v40, %v7056_v42  ;;  %v7080_v58 = vrot.slane %v1641_v32, 4  ;;  %v7114_v23 = vld [vmem:[%s6694_s28 + $0x1b0] sm:$0xf] }
  0xcd   : > { %5581 = vmatmul.mubr.msk.bf16.gmra.mrb[24].mxu0 %vm1083_vm1, %v4982_v30  ;;  %v4848_v30 = vcombine.low %v7018_v2, %v7021_v4  ;;  %v3303_v7 = vsel %vm6758_vm4, %v3298_v37, %v3302_v29  ;;  %v7082_v61 = vrot.slane %v1644_v33, 5  ;;  %v7084_v63 = vrot.slane %v1650_v41, 5 }
  0xce   : > { %5429 = vmatmul.mubr.msk.bf16.gmra.mrb[8].mxu1 %vm1083_vm1, %v6961_v59  ;;  %5584 = vmatprep.mubr.msk.bf16.mxu0 %vm1083_vm1, %v4983_v10  ;;  %v4984_v56 = vcombine.low %v3293_v36, %v3303_v7  ;;  %7876 = vst [vmem:[#allocation11_spill] sm:$0xff] %v7078_v57  ;;  %v7086_v49 = vrot.slane %v1654_v35, 4  ;;  %v1689_v0 = vshrl.u32 %v6926_v5, 16  ;;  %v1692_v50 = vshll.u32 %v6926_v5, 16  ;;  %v7094_v10 = vld [vmem:[%s6694_s28 + $0x1a4] sm:$0xf] }
  0xcf   : > { %5432 = vmatprep.mubr.msk.bf16.mxu1 %vm1083_vm1, %v6981_v27  ;;  %v1698_v14 = vshll.u32 %v6930_v13, 16  ;;  %v1702_v15 = vshrl.u32 %v6930_v13, 16  ;;  %v7105_v5 = vrot.slane %v1665_v47, 4  ;;  %v7107_v16 = vrot.slane %v1668_v46, 5  ;;  %v7117_v13 = vld [vmem:[%s6694_s28 + $0x1b4] sm:$0xf] }
  0xd0   : > { %v7109_v17 = vrot.slane %v1674_v54, 5  ;;  %v7111_v18 = vrot.slane %v1678_v55, 4  ;;  %v1713_v26 = vshrl.u32 %v6948_v39, 16  ;;  %v1716_v29 = vshll.u32 %v6948_v39, 16  ;;  %v7144_v54 = vld [vmem:[%s6694_s28 + $0x1bc] sm:$0xf] }
  0xd1   : > { %v7127_v32 = vrot.slane %v1692_v50, 5  ;;  %v7129_v33 = vrot.slane %v1698_v14, 5  ;;  %v7131_v41 = vrot.slane %v1702_v15, 4  ;;  %v1722_v35 = vshll.u32 %v6952_v43, 16  ;;  %v7147_v55 = vld [vmem:[%s6694_s28 + $0x1c0] sm:$0xf] }
  0xd2   : > { %v1726_v36 = vshrl.u32 %v6952_v43, 16  ;;  %v1737_v37 = vshrl.u32 %v6969_v8, 16  ;;  %v1740_v39 = vshll.u32 %v6969_v8, 16  ;;  %v7139_v47 = vcombine.low %v7114_v23, %v7117_v13  ;;  %v7152_v43 = vld [vmem:[%s7849_s2 + $0x10] sm:$0x3] }
  0xd3   : > { %v1746_v46 = vshll.u32 %v6972_v9, 16  ;;  %v1750_v7 = vshrl.u32 %v6972_v9, 16  ;;  %7879 = vst [vmem:[#allocation14_spill] sm:$0xff] %v7152_v43  ;;  %v7156_v8 = vrot.slane %v1716_v29, 5  ;;  %v1764_v50 = vshll.u32 %v6999_v48, 16 }
  0xd4   : > { %7878 = vst [vmem:[#allocation13_spill] sm:$0xff] %v7139_v47  ;;  %v7165_v9 = vld [vmem:[%s6694_s28 + $0x1c8] sm:$0xf]  ;;  %v7168_v14 = vld [vmem:[%s6694_s28 + $0x1cc] sm:$0xf]  ;;  %v7170_v15 = vrot.slane %v1722_v35, 5 }
  0xd5   : > { %5585 = vmatmul.mubr.msk.bf16.gmra.mrb[28].mxu0 %vm1083_vm1, %v4984_v56  ;;  %v7154_v56 = vrot.slane %v1713_v26, 4  ;;  %7880 = vst [vmem:[#allocation15_spill] sm:$0xff] %v7168_v14  ;;  %v1770_v26 = vshll.u32 %v7002_v52, 16  ;;  %v1774_v29 = vshrl.u32 %v7002_v52, 16  ;;  %v1785_v20 = vshrl.u32 %v7018_v2, 16 }
  0xd6   : > { %5433 = vmatmul.mubr.msk.bf16.gmra.mrb[12].mxu1 %vm1083_vm1, %v7015_v1  ;;  %5590 = vmatprep.mubr.msk.bf16.mxu0 %vm1083_vm1, %v6884_v24  ;;  %v7119_v24 = vrot.slane %v1689_v0, 4  ;;  %v1761_v0 = vshrl.u32 %v6999_v48, 16  ;;  %v7180_v48 = vrot.slane %v1737_v37, 4  ;;  %v1788_v35 = vshll.u32 %v7018_v2, 16 }
  0xd7   : > { %5436 = vmatprep.mubr.msk.bf16.mxu1 %vm1083_vm1, %v4848_v30  ;;  %v7125_v30 = vcombine.low %v7094_v10, %v7103_v51  ;;  %v7190_v52 = vrot.slane %v1746_v46, 5  ;;  %v7198_v2 = vrot.slane %v1764_v50, 5  ;;  %v7205_v46 = vrot.slane %v1770_v26, 5 }
  0xd8   : > { %v7196_v37 = vrot.slane %v1761_v0, 4  ;;  %v7215_v0 = vrot.slane %v1788_v35, 5  ;;  %v1812_v50 = vshll.u32 %v7032_v19, 16  ;;  %v1609_v26 = vor.u32 %v7043_v12, %v7023_v6  ;;  %v832_v12 = vld [vmem:[%s6694_s28 + $0x20] sm:$0x1] }
  0xd9   : > { %7877 = vst [vmem:[#allocation12_spill] sm:$0xff] %v7125_v30  ;;  %7881 = vst [vmem:[#allocation16_spill] sm:$0xff] %v7198_v2  ;;  %v1599_v2 = vor.u32 %v7008_v62, %v7004_v53 }
  0xda   : > { %7883 = vst [vmem:[#allocation18_spill] sm:$0xff] %v7205_v46  ;;  %7886 = vst [vmem:[#allocation21_spill] sm:$0xff] %v7215_v0  ;;  %v829_v46 = vld [vmem:[%s6694_s28 + $0x14] sm:$0x1]  ;;  %v1610_v62 = vrot.slane %v1609_v26, 4  ;;  %v1833_v26 = vshrl.u32 %v7053_v40, 16 }
  0xdb   : > { %v1600_v53 = vrot.slane %v1599_v2, 4  ;;  %v1636_v2 = vshll.u32 %v829_v46, 16  ;;  %v1660_v46 = vshll.u32 %v832_v12, 16 }
  0xdd   : > { %5591 = vmatmul.mubr.msk.bf16.vlgmr.msra.gmra.mrb[0].mxu0 %vm1083_vm1, %v6896_v34  ;;  %v7178_v34 = vrot.slane %v1726_v36, 4  ;;  %v1798_v36 = vshrl.u32 %v7021_v4, 16 }
  0xde   : > { %5437 = vmatmul.mubr.msk.bf16.gmra.mrb[16].mxu1 %vm1083_vm1, %v7066_v21  ;;  %5623 = vmatpush3.bf16.msra.mxu0 %v6992_v38  ;;  %v7192_v38 = vrot.slane %v1750_v7, 4  ;;  %v7209_v7 = vrot.slane %v1785_v20, 4 }
  0xdf   : > { %5440 = vmatprep.mubr.msk.bf16.mxu1 %vm1083_vm1, %v7078_v57  ;;  %5594 = vmatprep.mubr.msk.bf16.mxu0 %vm1083_vm1, %v6920_v60  ;;  %v826_v57 = vld [vmem:[%s6694_s28 + $0x8] sm:$0x1]  ;;  %v1794_v60 = vshll.u32 %v7021_v4, 16  ;;  %v7213_v4 = vcombine.low %v7165_v9, %v7168_v14  ;;  %v7225_v20 = vrot.slane %v1798_v36, 4  ;;  %v1818_v14 = vshll.u32 %v7038_v11, 16 }
  0xe0   : > { %5957 = vmatprep.subr.msk.bf16.mxu0 %vm1132_vm0, %v7152_v43  ;;  %v7207_v43 = vrot.slane %v1774_v29, 4  ;;  %7884 = vst [vmem:[#allocation19_spill] sm:$0xff] %v7209_v7  ;;  %v7229_v7 = vld [vmem:[%s6694_s28 + $0x1d4] sm:$0xf]  ;;  %v1612_v35 = vshll.u32 %v826_v57, 16  ;;  %v1633_v36 = vor.u32 %v7068_v22, %v7062_v45 }
  0xe1   : > { %7885 = vst [vmem:[#allocation20_spill] sm:$0xff] %v7213_v4  ;;  %v7223_v29 = vrot.slane %v1794_v60, 5  ;;  %v1822_v60 = vshrl.u32 %v7038_v11, 16  ;;  %v7246_v57 = vld [vmem:[%s6694_s28 + $0x1d8] sm:$0xf]  ;;  %v1647_v11 = vor.u32 %v7082_v61, %v7080_v58 }
  0xe5   : > { %5595 = vmatmul.mubr.msk.bf16.gmra.mrb[4].mxu0 %vm1083_vm1, %v6938_v28  ;;  %v1614_v28 = vrot.slane %v1612_v35, 5  ;;  %v1648_v35 = vrot.slane %v1647_v11, 4 }
  0xe6   : > { %5441 = vmatmul.mubr.msk.bf16.gmra.mrb[20].mxu1 %vm1083_vm1, %v7125_v30  ;;  %v7182_v30 = vrot.slane %v1740_v39, 5  ;;  %v1809_v39 = vshrl.u32 %v7032_v19, 16  ;;  %v1623_v19 = vor.u32 %v7060_v44, %v7058_v31  ;;  %5598 = vmatprep.mubr.msk.bf16.mxu0 %vm1083_vm1, %v6961_v59  ;;  %v1605_v31 = vsel %vm6758_vm4, %v1600_v53, %v7023_v6 }
  0xe7   : > { %5444 = vmatprep.mubr.msk.bf16.mxu1 %vm1083_vm1, %v7139_v47  ;;  %v7203_v47 = vcombine.low %v7144_v54, %v7147_v55  ;;  %v1657_v59 = vor.u32 %v7086_v49, %v7084_v63  ;;  %v7259_v44 = vrot.slane %v1818_v14, 5  ;;  %v1615_v22 = vsel %vm6758_vm4, %v1610_v62, %v1614_v28 }
  0xe8   : > { %v7231_v0 = vrot.slane %v1809_v39, 4  ;;  %v7250_v39 = vrot.slane %v1812_v50, 5  ;;  %v7266_v50 = vcombine.low %v7229_v7, %v7246_v57  ;;  %v1624_v6 = vrot.slane %v1623_v19, 4  ;;  %v835_v19 = vld [vmem:[%s6694_s28 + $0x2c] sm:$0x1] }
  0xe9   : > { %7882 = vst [vmem:[#allocation17_spill] sm:$0xff] %v7203_v47  ;;  %v1658_v58 = vrot.slane %v1657_v59, 4  ;;  %v4872_v61 = vcombine.low %v1605_v31, %v1615_v22  ;;  %v1634_v53 = vrot.slane %v1633_v36, 4  ;;  %v1638_v49 = vrot.slane %v1636_v2, 5  ;;  %v838_v2 = vld [vmem:[%s6694_s28 + $0x38] sm:$0x1] }
  0xea   : > { %v1662_v14 = vrot.slane %v1660_v46, 5  ;;  %v1842_v62 = vshll.u32 %v7056_v42, 16  ;;  %v1653_v12 = vsel %vm6758_vm4, %v1648_v35, %v7084_v63  ;;  %v7276_v28 = vrot.slane %v1833_v26, 4  ;;  %v7298_v59 = vld [vmem:[%s7041_s27] sm:$0xf] }
  0xeb   : > { %v1846_v31 = vshrl.u32 %v7056_v42, 16  ;;  %v1857_v36 = vshrl.u32 %v7094_v10, 16  ;;  %v1629_v63 = vsel %vm6758_vm4, %v1624_v6, %v7062_v45  ;;  %v1671_v42 = vor.u32 %v7107_v16, %v7105_v5 }
  0xec   : > { %v1681_v45 = vor.u32 %v7111_v18, %v7109_v17  ;;  %v1684_v26 = vshll.u32 %v835_v19, 16  ;;  %v1695_v22 = vor.u32 %v7127_v32, %v7119_v24  ;;  %v1705_v16 = vor.u32 %v7131_v41, %v7129_v33 }
  0xed   : > { %5599 = vmatmul.mubr.msk.bf16.gmra.mrb[8].mxu0 %vm1083_vm1, %v6981_v27  ;;  %v1639_v27 = vsel %vm6758_vm4, %v1634_v53, %v1638_v49  ;;  %v1708_v46 = vshll.u32 %v838_v2, 16  ;;  %v7315_v6 = vrot.slane %v1842_v62, 5  ;;  %v7317_v35 = vrot.slane %v1846_v31, 4  ;;  %v841_v62 = vld [vmem:[%s6694_s28 + $0x44] sm:$0x1] }
  0xee   : > { %5445 = vmatmul.mubr.msk.bf16.gmra.mrb[24].mxu1 %vm1083_vm1, %v7203_v47  ;;  %v1836_v47 = vshll.u32 %v7053_v40, 16  ;;  %v1860_v40 = vshll.u32 %v7094_v10, 16  ;;  %5602 = vmatprep.mubr.msk.bf16.mxu0 %vm1083_vm1, %v7015_v1  ;;  %v7301_v10 = vld [vmem:[%s7041_s27 + $0x4] sm:$0xf]  ;;  %v1866_v1 = vshll.u32 %v7103_v51, 16  ;;  %v1870_v18 = vshrl.u32 %v7103_v51, 16 }
  0xef   : > { %5448 = vmatprep.mubr.msk.bf16.mxu1 %vm1083_vm1, %v7213_v4  ;;  %v7268_v4 = vrot.slane %v1822_v60, 4  ;;  %v1663_v60 = vsel %vm6758_vm4, %v1658_v58, %v1662_v14  ;;  %v7319_v58 = vrot.slane %v1857_v36, 4  ;;  %v1881_v24 = vshrl.u32 %v7114_v23, 16 }
  0xf0   : > { %v7291_v11 = vcombine.low %v1653_v12, %v1663_v60  ;;  %v7310_v5 = vrot.slane %v1836_v47, 5  ;;  %v5002_v32 = vcombine.low %v7298_v59, %v7301_v10  ;;  %v7327_v47 = vcombine.low %v1629_v63, %v1639_v27  ;;  %v844_v63 = vld [vmem:[%s6694_s28 + $0x50] sm:$0x1] }
  0xf1   : > { %v1672_v41 = vrot.slane %v1671_v42, 4  ;;  %v1682_v53 = vrot.slane %v1681_v45, 4  ;;  %v1686_v49 = vrot.slane %v1684_v26, 5  ;;  %v1696_v14 = vrot.slane %v1695_v22, 4  ;;  %v6183_v26 = vld [vmem:[%s7849_s2 + $0x8] sm:$0xf] }
  0xf2   : > { %v7330_v12 = vrot.slane %v1866_v1, 5  ;;  %v2401_v51 = vsel %vm1132_vm0, %v6886_v25, 0  ;;  %v1706_v19 = vrot.slane %v1705_v16, 4  ;;  %v1710_v31 = vrot.slane %v1708_v46, 5 }
  0xf3   : > { %v7334_v36 = vrot.slane %v1870_v18, 4  ;;  %v1884_v60 = vshll.u32 %v7114_v23, 16  ;;  %v1890_v2 = vshll.u32 %v7117_v13, 16  ;;  %v1894_v42 = vshrl.u32 %v7117_v13, 16 }
  0xf4   : > { %v1905_v27 = vshrl.u32 %v7144_v54, 16  ;;  %v1729_v25 = vor.u32 %v7178_v34, %v7170_v15  ;;  %v1732_v45 = vshll.u32 %v841_v62, 16  ;;  %v1908_v23 = vshll.u32 %v7144_v54, 16 }
  0xf5   : > { %5603 = vmatmul.mubr.msk.bf16.gmra.mrb[12].mxu0 %vm1083_vm1, %v5002_v32  ;;  %v1677_v13 = vsel %vm6758_vm4, %v1672_v41, %v7109_v17  ;;  %v1711_v54 = vsel %vm6758_vm4, %v1706_v19, %v1710_v31  ;;  %v1753_v34 = vor.u32 %v7192_v38, %v7190_v52  ;;  %v1756_v17 = vshll.u32 %v844_v63, 16  ;;  %v906_v19 = vld [vmem:[%s6694_s28 + $0x188] sm:$0x1] }
  0xf6   : > { %5449 = vmatmul.mubr.msk.bf16.gmra.mrb[28].mxu1 %vm1083_vm1, %v7266_v50  ;;  %5606 = vmatprep.mubr.msk.bf16.mxu0 %vm1083_vm1, %v7066_v21  ;;  %v1743_v21 = vor.u32 %v7182_v30, %v7180_v48  ;;  %v7373_v22 = vrot.slane %v1884_v60, 5  ;;  %v1914_v1 = vshll.u32 %v7147_v55, 16  ;;  %v7376_v30 = vrot.slane %v1890_v2, 5  ;;  %v7888_v63 = vld [vmem:[#allocation11_spill] sm:$0xff] }
  0xf7   : > { %5454 = vmatprep.mubr.msk.bf16.mxu1 %vm1083_vm1, %v4872_v61  ;;  %v7322_v61 = vrot.slane %v1860_v40, 5  ;;  %v1719_v40 = vor.u32 %v7156_v8, %v7154_v56  ;;  %v1687_v56 = vsel %vm6758_vm4, %v1682_v53, %v1686_v49  ;;  %v1701_v8 = vsel %vm6758_vm4, %v1696_v14, %v7129_v33  ;;  %v847_v53 = vld [vmem:[%s6694_s28 + $0x5c] sm:$0x1] }
  0xf8   : > { %v7371_v33 = vrot.slane %v1881_v24, 4  ;;  %v7378_v48 = vcombine.low %v1677_v13, %v1687_v56  ;;  %v1730_v38 = vrot.slane %v1729_v25, 4  ;;  %v1734_v46 = vrot.slane %v1732_v45, 5  ;;  %v7891_v13 = vld [vmem:[#allocation21_spill] sm:$0xff] }
  0xf9   : > { %v1720_v16 = vrot.slane %v1719_v40, 4  ;;  %v7380_v18 = vrot.slane %v1894_v42, 4  ;;  %v7382_v32 = vrot.slane %v1905_v27, 4  ;;  %v1918_v41 = vshrl.u32 %v7147_v55, 16  ;;  %v7887_v40 = vld [vmem:[#allocation16_spill] sm:$0xff]  ;;  %v7889_v27 = vld [vmem:[#allocation18_spill] sm:$0xff] }
  0xfa   : > { %v7385_v24 = vcombine.low %v1701_v8, %v1711_v54  ;;  %v7388_v49 = vrot.slane %v1908_v23, 5  ;;  %v1744_v14 = vrot.slane %v1743_v21, 4  ;;  %v1754_v62 = vrot.slane %v1753_v34, 4  ;;  %v7890_v23 = vld [vmem:[#allocation19_spill] sm:$0xff]  ;;  %v7892_v8 = vld [vmem:[#allocation12_spill] sm:$0xff] }
  0xfb   : > { %v7391_v31 = vrot.slane %v1914_v1, 5  ;;  %v1929_v60 = vshrl.u32 %v7165_v9, 16  ;;  %v1725_v2 = vsel %vm6758_vm4, %v1720_v16, %v7170_v15  ;;  %v1767_v55 = vor.u32 %v7887_v40, %v7196_v37  ;;  %v7893_v34 = vld [vmem:[#allocation15_spill] sm:$0xff]  ;;  %v909_v1 = vld [vmem:[%s6694_s28 + $0x194] sm:$0x1] }
  0xfc   : > { %v1735_v42 = vsel %vm6758_vm4, %v1730_v38, %v1734_v46  ;;  %v1777_v25 = vor.u32 %v7207_v43, %v7889_v27  ;;  %v1780_v45 = vshll.u32 %v847_v53, 16  ;;  %v1791_v15 = vor.u32 %v7891_v13, %v7890_v23 }
  0xfd   : > { %5607 = vmatmul.mubr.msk.bf16.gmra.mrb[16].mxu0 %vm1083_vm1, %v7888_v63  ;;  %v7409_v56 = vrot.slane %v1918_v41, 4  ;;  %v1932_v37 = vshll.u32 %v7165_v9, 16  ;;  %v1801_v54 = vor.u32 %v7225_v20, %v7223_v29  ;;  %v1804_v21 = vshll.u32 %v906_v19, 16 }
  0xfe   : > { %5455 = vmatmul.mubr.msk.bf16.vlgmr.msra.gmra.mrb[0].mxu1 %vm1083_vm1, %v7327_v47  ;;  %5610 = vmatprep.mubr.msk.bf16.mxu0 %vm1083_vm1, %v7892_v8  ;;  %v1938_v43 = vshll.u32 %v7893_v34, 16  ;;  %v7426_v16 = vrot.slane %v1929_v60, 4  ;;  %v7428_v38 = vcombine.low %v1725_v2, %v1735_v42  ;;  %v1768_v46 = vrot.slane %v1767_v55, 4 }
  0xff   : > { %5487 = vmatpush3.bf16.msra.mxu1 %v2401_v51  ;;  %5458 = vmatprep.mubr.msk.bf16.mxu1 %vm1083_vm1, %v7291_v11  ;;  %v1758_v51 = vrot.slane %v1756_v17, 5  ;;  %v1942_v17 = vshrl.u32 %v7893_v34, 16  ;;  %v1815_v20 = vor.u32 %v7250_v39, %v7231_v0  ;;  %v1778_v41 = vrot.slane %v1777_v25, 4  ;;  %v912_v39 = vld [vmem:[%s6694_s28 + $0x1a0] sm:$0x1] }
 0x100   : > { %5953 = vmatprep.subr.msk.bf16.mxu1 %vm1132_vm0, %v6183_v26  ;;  %v1749_v26 = vsel %vm6758_vm4, %v1744_v14, %v7190_v52  ;;  %v1782_v53 = vrot.slane %v1780_v45, 5  ;;  %v1792_v19 = vrot.slane %v1791_v15, 4  ;;  %v1825_v40 = vor.u32 %v7268_v4, %v7259_v44  ;;  %v7894_v45 = vld [vmem:[#allocation13_spill] sm:$0xff] }
 0x101   : > { %v1759_v9 = vsel %vm6758_vm4, %v1754_v62, %v1758_v51  ;;  %v1802_v14 = vrot.slane %v1801_v54, 4  ;;  %v1806_v62 = vrot.slane %v1804_v21, 5  ;;  %v1828_v51 = vshll.u32 %v909_v1, 16 }
 0x102   : > { %v7434_v52 = vcombine.low %v1749_v26, %v1759_v9  ;;  %v7436_v60 = vrot.slane %v1932_v37, 5  ;;  %v7438_v63 = vrot.slane %v1938_v43, 5  ;;  %v4029_v2 = vshrl.u32 %v7298_v59, 16  ;;  %v7465_v37 = vld [vmem:[%s7041_s27 + $0x30] sm:$0xf] }
 0x103   : > { %v4032_v0 = vshll.u32 %v7298_v59, 16  ;;  %v7443_v55 = vrot.slane %v1942_v17, 4  ;;  %v4038_v42 = vshll.u32 %v7301_v10, 16  ;;  %v1773_v4 = vsel %vm6758_vm4, %v1768_v46, %v7889_v27  ;;  %v7895_v27 = vld [vmem:[#allocation17_spill] sm:$0xff] }
 0x104   : > { %v1816_v25 = vrot.slane %v1815_v20, 4  ;;  %v1783_v59 = vsel %vm6758_vm4, %v1778_v41, %v1782_v53  ;;  %v1797_v23 = vsel %vm6758_vm4, %v1792_v19, %v7223_v29  ;;  %v1826_v13 = vrot.slane %v1825_v40, 4  ;;  %v915_v53 = vld [vmem:[%s6694_s28 + $0x1ac] sm:$0x1] }
 0x105   : > { %5611 = vmatmul.mubr.msk.bf16.gmra.mrb[20].mxu0 %vm1083_vm1, %v7894_v45  ;;  %v1839_v15 = vor.u32 %v7310_v5, %v7276_v28  ;;  %v1807_v8 = vsel %vm6758_vm4, %v1802_v14, %v1806_v62  ;;  %v1830_v54 = vrot.slane %v1828_v51, 5  ;;  %v1849_v29 = vor.u32 %v7317_v35, %v7315_v6  ;;  %v7473_v5 = vld [vmem:[%s7041_s27 + $0x34] sm:$0xf]  ;;  %v986_v51 = vld [vmem:[%s7041_s27 + $0x8] sm:$0x1] }
 0x106   : > { %5459 = vmatmul.mubr.msk.bf16.gmra.mrb[4].mxu1 %vm1083_vm1, %v7378_v48  ;;  %5614 = vmatprep.mubr.msk.bf16.mxu0 %vm1083_vm1, %v7895_v27  ;;  %v1852_v21 = vshll.u32 %v912_v39, 16  ;;  %v4031_v34 = vrot.slane %v4029_v2, 4  ;;  %v4034_v43 = vrot.slane %v4032_v0, 5  ;;  %v4042_v28 = vshrl.u32 %v7301_v10, 16  ;;  %v918_v27 = vld [vmem:[%s6694_s28 + $0x1b8] sm:$0x1] }
 0x107   : > { %5462 = vmatprep.mubr.msk.bf16.mxu1 %vm1083_vm1, %v7385_v24  ;;  %v4053_v17 = vshrl.u32 %v7465_v37, 16  ;;  %v1953_v26 = vshrl.u32 %v7229_v7, 16  ;;  %v4056_v9 = vshll.u32 %v7465_v37, 16  ;;  %v4062_v1 = vshll.u32 %v7473_v5, 16 }
 0x108   : > { %v4066_v46 = vshrl.u32 %v7473_v5, 16  ;;  %v4040_v20 = vrot.slane %v4038_v42, 5  ;;  %v7480_v35 = vcombine.low %v1773_v4, %v1783_v59  ;;  %v4880_v41 = vcombine.low %v1797_v23, %v1807_v8  ;;  %v7896_v59 = vld [vmem:[#allocation20_spill] sm:$0xff]  ;;  %v991_v8 = vld [vmem:[%s7041_s27 + $0x38] sm:$0x1] }
 0x109   : > { %v1821_v10 = vsel %vm6758_vm4, %v1816_v25, %v7259_v44  ;;  %v1831_v19 = vsel %vm6758_vm4, %v1826_v13, %v1830_v54  ;;  %v1840_v40 = vrot.slane %v1839_v15, 4  ;;  %v1850_v14 = vrot.slane %v1849_v29, 4 }
 0x10a   : > { %v1854_v62 = vrot.slane %v1852_v21, 5  ;;  %v4044_v2 = vrot.slane %v4042_v28, 4  ;;  %v1956_v0 = vshll.u32 %v7229_v7, 16  ;;  %v5003_v39 = vcombine.low %v7465_v37, %v7473_v5 }
 0x10b   : > { %v4055_v42 = vrot.slane %v4053_v17, 4  ;;  %v4058_v4 = vrot.slane %v4056_v9, 5  ;;  %v4064_v45 = vrot.slane %v4062_v1, 5  ;;  %v4068_v44 = vrot.slane %v4066_v46, 4 }
 0x10c   : > { %v1863_v25 = vor.u32 %v7322_v61, %v7319_v58  ;;  %v7498_v23 = vcombine.low %v1821_v10, %v1831_v19  ;;  %v1873_v13 = vor.u32 %v7334_v36, %v7330_v12  ;;  %v1876_v15 = vshll.u32 %v915_v53, 16 }
 0x10d   : > { %5615 = vmatmul.mubr.msk.bf16.gmra.mrb[24].mxu0 %vm1083_vm1, %v7896_v59  ;;  %v4048_v37 = vshll.u32 %v986_v51, 16  ;;  %v1845_v58 = vsel %vm6758_vm4, %v1840_v40, %v7315_v6  ;;  %v1855_v61 = vsel %vm6758_vm4, %v1850_v14, %v1854_v62  ;;  %v1887_v54 = vor.u32 %v7373_v22, %v7371_v33  ;;  %v924_v51 = vld [vmem:[%s6694_s28 + $0x1d0] sm:$0x1] }
 0x10e   : > { %5463 = vmatmul.mubr.msk.bf16.gmra.mrb[8].mxu1 %vm1083_vm1, %v7428_v38  ;;  %5618 = vmatprep.mubr.msk.bf16.mxu0 %vm1083_vm1, %v7266_v50  ;;  %v4072_v36 = vshll.u32 %v991_v8, 16  ;;  %v1897_v29 = vor.u32 %v7380_v18, %v7376_v30  ;;  %v4035_v21 = vor.u32 %v4034_v43, %v4031_v34  ;;  %v4045_v28 = vor.u32 %v4044_v2, %v4040_v20  ;;  %v921_v34 = vld [vmem:[%s6694_s28 + $0x1c4] sm:$0x1] }
 0x10f   : > { %5466 = vmatprep.mubr.msk.bf16.mxu1 %vm1083_vm1, %v7434_v52  ;;  %v4050_v50 = vrot.slane %v4048_v37, 5  ;;  %v1900_v5 = vshll.u32 %v918_v27, 16  ;;  %v4059_v17 = vor.u32 %v4058_v4, %v4055_v42  ;;  %v4069_v9 = vor.u32 %v4068_v44, %v4064_v45 }
 0x110   : > { %v4074_v1 = vrot.slane %v4072_v36, 5  ;;  %v1864_v6 = vrot.slane %v1863_v25, 4  ;;  %v1874_v46 = vrot.slane %v1873_v13, 4  ;;  %v4046_v10 = vrot.slane %v4045_v28, 4  ;;  %v6184_v13 = vld [vmem:[%s6694_s28 + $0x6c] sm:$0xff]  }
 0x111   : > { %v7516_v53 = vcombine.low %v1845_v58, %v1855_v61  ;;  %v1878_v33 = vrot.slane %v1876_v15, 5  ;;  %v4060_v22 = vrot.slane %v4059_v17, 4  ;;  %v4070_v19 = vrot.slane %v4069_v9, 4  ;;  %v7897_v61 = vld [vmem:[#allocation14_spill] sm:$0xff] }
 0x112   : > { %v1888_v40 = vrot.slane %v1887_v54, 4  ;;  %v1898_v18 = vrot.slane %v1897_v29, 4  ;;  %v4051_v14 = vsel %vm6758_vm4, %v4046_v10, %v4050_v50  ;;  %v1902_v62 = vrot.slane %v1900_v5, 5  ;;  %v927_v50 = vld [vmem:[%s6694_s28 + $0x1dc] sm:$0x1] }
 0x113   : > { %v4065_v42 = vsel %vm6758_vm4, %v4060_v22, %v4064_v45  ;;  %v4075_v4 = vsel %vm6758_vm4, %v4070_v19, %v4074_v1  ;;  %v1962_v44 = vshll.u32 %v7246_v57, 16  ;;  %v1966_v25 = vshrl.u32 %v7246_v57, 16  ;;  %v6185_v5 = vld [vmem:[%s6694_s28 + $0x78] sm:$0xff]  }
 0x114   : > { %v7537_v59 = vcombine.low %v4065_v42, %v4075_v4  ;;  %v1869_v57 = vsel %vm6758_vm4, %v1864_v6, %v7330_v12  ;;  %v1921_v45 = vor.u32 %v7409_v56, %v7391_v31  ;;  %v1924_v15 = vshll.u32 %v921_v34, 16  ;;  %v6191_v42 = vld [vmem:[%s6694_s28 + $0xa8] sm:$0xff]   ;;  %v6192_v4 = vld [vmem:[%s6694_s28 + $0xb4] sm:$0xff]  }
 0x115   : > { %5619 = vmatmul.mubr.msk.bf16.gmra.mrb[28].mxu0 %vm1083_vm1, %v5003_v39  ;;  %v1879_v39 = vsel %vm6758_vm4, %v1874_v46, %v1878_v33  ;;  %v1948_v27 = vshll.u32 %v924_v51, 16  ;;  %v1955_v37 = vrot.slane %v1953_v26, 4  ;;  %v1893_v12 = vsel %vm6758_vm4, %v1888_v40, %v7376_v30  ;;  %v6187_v40 = vld [vmem:[%s6694_s28 + $0x90] sm:$0xff]  }
 0x116   : > { %5467 = vmatmul.mubr.msk.bf16.gmra.mrb[12].mxu1 %vm1083_vm1, %v7480_v35  ;;  %5624 = vmatprep.mubr.msk.bf16.mxu0 %vm1083_vm1, %v6184_v13  ;;  %v1903_v56 = vsel %vm6758_vm4, %v1898_v18, %v1902_v62  ;;  %v1958_v8 = vrot.slane %v1956_v0, 5  ;;  %v1968_v58 = vrot.slane %v1966_v25, 4  ;;  %v4089_v26 = vsel %vm1132_vm0, %v7897_v61, 0  ;;  %v6186_v0 = vld [vmem:[%s6694_s28 + $0x84] sm:$0xff]   ;;  %v6194_v25 = vld [vmem:[%s6694_s28 + $0xd0] sm:$0xf] }
 0x117   : > { %5470 = vmatprep.mubr.msk.bf16.mxu1 %vm1083_vm1, %v4880_v41  ;;  %v4036_v41 = vrot.slane %v4035_v21, 4  ;;  %v1922_v54 = vrot.slane %v1921_v45, 4  ;;  %v1926_v36 = vrot.slane %v1924_v15, 5  ;;  %v7567_v29 = vcombine.low %v1893_v12, %v1903_v56  ;;  %v6190_v62 = vld [vmem:[%s6694_s28 + $0xc4] sm:$0xf]  ;;  %v6197_v45 = vld [vmem:[%s6694_s28 + $0x1ec] sm:$0xff]  }
 0x118   : > { %v1950_v28 = vrot.slane %v1948_v27, 5  ;;  %v1959_v9 = vor.u32 %v1958_v8, %v1955_v37  ;;  %v1972_v6 = vshll.u32 %v927_v50, 16  ;;  %v6195_v13 = vld [vmem:[%s6694_s28 + $0xd8] sm:$0xf]  ;;  %v7898_v15 = vld [vmem:[#allocation10_spill] sm:$0xff] }
 0x119   : > { %v4041_v43 = vsel %vm6758_vm4, %v4036_v41, %v4040_v20  ;;  %v1911_v20 = vor.u32 %v7388_v49, %v7382_v32  ;;  %v1935_v32 = vor.u32 %v7436_v60, %v7426_v16  ;;  %v1945_v49 = vor.u32 %v7443_v55, %v7438_v63  ;;  %v6200_v37 = vld [vmem:[%s6694_s28 + $0xf0] sm:$0xf]  ;;  %v6201_v12 = vld [vmem:[%s6694_s28 + $0xf4] sm:$0xf]  ;;  %v6202_v8 = vld [vmem:[%s6694_s28 + $0x1f8] sm:$0xff]  }
 0x11a   : > { %v7524_v2 = vcombine.low %v4041_v43, %v4051_v14  ;;  %v1964_v16 = vrot.slane %v1962_v44, 5  ;;  %v7563_v60 = vcombine.low %v1869_v57, %v1879_v39  ;;  %v1927_v17 = vsel %vm6758_vm4, %v1922_v54, %v1926_v36  ;;  %v6189_v14 = vld [vmem:[%s6694_s28 + $0xc0] sm:$0xf]  ;;  %v6193_v44 = vld [vmem:[%s6694_s28 + $0xcc] sm:$0xf] }
 0x11b   : > { %v1912_v55 = vrot.slane %v1911_v20, 4  ;;  %v1936_v30 = vrot.slane %v1935_v32, 4  ;;  %v1946_v21 = vrot.slane %v1945_v49, 4  ;;  %v1960_v33 = vrot.slane %v1959_v9, 4  ;;  %v6196_v57 = vld [vmem:[%s6694_s28 + $0xdc] sm:$0xf] }
 0x11c   : > { %v1969_v1 = vor.u32 %v1968_v58, %v1964_v16  ;;  %v1974_v19 = vrot.slane %v1972_v6, 5  ;;  %v4904_v51 = vcombine.low %v6189_v14, %v6190_v62  ;;  %v4905_v20 = vcombine.low %v6193_v44, %v6194_v25  ;;  %v6198_v32 = vld [vmem:[%s6694_s28 + $0xe4] sm:$0xf]  ;;  %v6199_v49 = vld [vmem:[%s6694_s28 + $0xe8] sm:$0xf]  ;;  %v6165_v6 = vld [vmem:[%s7041_s27 + $0x3c] sm:$0xff]  }
 0x11d   : > { %5625 = vmatmul.mubr.msk.bf16.vlgmr.msra.gmra.mrb[0].mxu0 %vm1083_vm1, %v6185_v5  ;;  %v1917_v7 = vsel %vm6758_vm4, %v1912_v55, %v7391_v31  ;;  %v1941_v46 = vsel %vm6758_vm4, %v1936_v30, %v7438_v63  ;;  %v1951_v31 = vsel %vm6758_vm4, %v1946_v21, %v1950_v28  ;;  %v6188_v63 = vld [vmem:[%s6694_s28 + $0x9c] sm:$0xff]   ;;  %v1965_v18 = vsel %vm6758_vm4, %v1960_v33, %v1964_v16  ;;  %v6203_v16 = vld [vmem:[%s6694_s28 + $0x204] sm:$0xff]   ;;  %v6207_v54 = vld [vmem:[%s6694_s28 + $0x10c] sm:$0xf] }
 0x11e   : > { %5471 = vmatmul.mubr.msk.bf16.gmra.mrb[16].mxu1 %vm1083_vm1, %v7498_v23  ;;  %5657 = vmatpush3.bf16.msra.mxu0 %v4089_v26  ;;  %v7588_v41 = vcombine.low %v1917_v7, %v1927_v17  ;;  %v7590_v10 = vcombine.low %v1941_v46, %v1951_v31  ;;  %v1970_v22 = vrot.slane %v1969_v1, 4  ;;  %v4906_v39 = vcombine.low %v6195_v13, %v6196_v57  ;;  %v6204_v55 = vld [vmem:[%s6694_s28 + $0xfc] sm:$0xf]  ;;  %v6205_v58 = vld [vmem:[%s6694_s28 + $0x100] sm:$0xf]  ;;  %v6208_v30 = vld [vmem:[%s6694_s28 + $0x210] sm:$0xff]  }
 0x11f   : > { %5474 = vmatprep.mubr.msk.bf16.mxu1 %vm1083_vm1, %v7516_v53  ;;  %5628 = vmatprep.mubr.msk.bf16.mxu0 %vm1083_vm1, %v6186_v0  ;;  %v4907_v27 = vcombine.low %v6198_v32, %v6199_v49  ;;  %v4908_v56 = vcombine.low %v6200_v37, %v6201_v12  ;;  %v4909_v61 = vcombine.low %v6204_v55, %v6205_v58  ;;  %v6206_v26 = vld [vmem:[%s6694_s28 + $0x108] sm:$0xf]  ;;  %v6209_v21 = vld [vmem:[%s6694_s28 + $0x21c] sm:$0xff]   ;;  %v6210_v28 = vld [vmem:[%s6694_s28 + $0x114] sm:$0xf] }
 0x120   : > { %v1975_v34 = vsel %vm6758_vm4, %v1970_v22, %v1974_v19  ;;  %v4910_v36 = vcombine.low %v6206_v26, %v6207_v54  ;;  %v6211_v50 = vld [vmem:[%s6694_s28 + $0x118] sm:$0xf]  ;;  %v6212_v7 = vld [vmem:[%s6694_s28 + $0x240] sm:$0xf]  ;;  %v6213_v0 = vld [vmem:[%s6694_s28 + $0x244] sm:$0xf] }
 0x121   : > { %v7604_v43 = vcombine.low %v1965_v18, %v1975_v34  ;;  %v4911_v5 = vcombine.low %v6210_v28, %v6211_v50  ;;  %v4912_v17 = vcombine.low %v6212_v7, %v6213_v0  ;;  %v6214_v9 = vld [vmem:[%s6694_s28 + $0x228] sm:$0xff]   ;;  %v6215_v1 = vld [vmem:[%s6694_s28 + $0x234] sm:$0xff]   ;;  %v6217_v31 = vld [vmem:[%s6694_s28 + $0x250] sm:$0xf] }
 0x122   : > { %v6216_v46 = vld [vmem:[%s6694_s28 + $0x24c] sm:$0xf]  ;;  %v6218_v22 = vld [vmem:[%s6694_s28 + $0x258] sm:$0xf]  ;;  %v6219_v19 = vld [vmem:[%s6694_s28 + $0x25c] sm:$0xf] }
 0x123   : > { %v4913_v33 = vcombine.low %v6216_v46, %v6217_v31  ;;  %v6221_v18 = vld [vmem:[%s6694_s28 + $0x268] sm:$0xf]  ;;  %v6222_v14 = vld [vmem:[%s6694_s28 + $0x270] sm:$0xf]  ;;  %v6223_v62 = vld [vmem:[%s6694_s28 + $0x274] sm:$0xf] }
 0x124   : > { %v6227_v44 = vld [vmem:[%s6694_s28 + $0x28c] sm:$0xf]  ;;  %v6175_v13 = vld [vmem:[%s6694_s28 + $0x2a0] sm:$0xff]   ;;  %v6179_v57 = vld [vmem:[%s6694_s28 + $0x2d0] sm:$0xff]  }
 0x125   : > { %5629 = vmatmul.mubr.msk.bf16.gmra.mrb[4].mxu0 %vm1083_vm1, %v6187_v40  ;;  %v4914_v40 = vcombine.low %v6218_v22, %v6219_v19 }
 0x126   : > { %5475 = vmatmul.mubr.msk.bf16.gmra.mrb[20].mxu1 %vm1083_vm1, %v7563_v60  ;;  %5632 = vmatprep.mubr.msk.bf16.mxu0 %vm1083_vm1, %v6188_v63  ;;  %v6220_v63 = vld [vmem:[%s6694_s28 + $0x264] sm:$0xf] }
 0x127   : > { %5478 = vmatprep.mubr.msk.bf16.mxu1 %vm1083_vm1, %v7567_v29  ;;  %v4915_v34 = vcombine.low %v6220_v63, %v6221_v18 }
 0x12d   : > { %5633 = vmatmul.mubr.msk.bf16.gmra.mrb[8].mxu0 %vm1083_vm1, %v6191_v42  ;;  %v6225_v42 = vld [vmem:[%s6694_s28 + $0x280] sm:$0xf] }
 0x12e   : > { %5479 = vmatmul.mubr.msk.bf16.gmra.mrb[24].mxu1 %vm1083_vm1, %v7588_v41  ;;  %5636 = vmatprep.mubr.msk.bf16.mxu0 %vm1083_vm1, %v6192_v4 }
 0x12f   : > { %5482 = vmatprep.mubr.msk.bf16.mxu1 %vm1083_vm1, %v7590_v10 }
 0x135   : > { %5637 = vmatmul.mubr.msk.bf16.gmra.mrb[12].mxu0 %vm1083_vm1, %v6157_v3  ;;  %v6226_v3 = vld [vmem:[%s6694_s28 + $0x288] sm:$0xf] }
 0x136   : > { %5483 = vmatmul.mubr.msk.bf16.gmra.mrb[28].mxu1 %vm1083_vm1, %v7604_v43  ;;  %5640 = vmatprep.mubr.msk.bf16.mxu0 %vm1083_vm1, %v6197_v45  ;;  %v4918_v25 = vcombine.low %v6226_v3, %v6227_v44 }
 0x137   : > { %5488 = vmatprep.mubr.msk.bf16.mxu1 %vm1083_vm1, %v4904_v51  ;;  %v4916_v51 = vcombine.low %v6222_v14, %v6223_v62 }
 0x13d   : > { %5641 = vmatmul.mubr.msk.bf16.gmra.mrb[16].mxu0 %vm1083_vm1, %v6202_v8 }
 0x13e   : > { %5489 = vmatmul.mubr.msk.bf16.vlgmr.msra.gmra.mrb[0].mxu1 %vm1083_vm1, %v4905_v20  ;;  %5644 = vmatprep.mubr.msk.bf16.mxu0 %vm1083_vm1, %v6203_v16  ;;  %v7740_v16 = vld [vmem:[%s7850_s3] ss:$0 sm:$0xff] }
 0x13f   : > { %5691 = vmatpush3.bf16.msra.mxu1 %v7898_v15  ;;  %5492 = vmatprep.mubr.msk.bf16.mxu1 %vm1083_vm1, %v4906_v39 }
 0x145   : > { %5645 = vmatmul.mubr.msk.bf16.gmra.mrb[20].mxu0 %vm1083_vm1, %v6208_v30 }
 0x146   : > { %5493 = vmatmul.mubr.msk.bf16.gmra.mrb[4].mxu1 %vm1083_vm1, %v4907_v27  ;;  %5648 = vmatprep.mubr.msk.bf16.mxu0 %vm1083_vm1, %v6209_v21 }
 0x147   : > { %5496 = vmatprep.mubr.msk.bf16.mxu1 %vm1083_vm1, %v4908_v56 }
 0x14d   : > { %5649 = vmatmul.mubr.msk.bf16.gmra.mrb[24].mxu0 %vm1083_vm1, %v6214_v9 }
 0x14e   : > { %5497 = vmatmul.mubr.msk.bf16.gmra.mrb[8].mxu1 %vm1083_vm1, %v4909_v61  ;;  %5652 = vmatprep.mubr.msk.bf16.mxu0 %vm1083_vm1, %v6215_v1 }
 0x14f   : > { %5500 = vmatprep.mubr.msk.bf16.mxu1 %vm1083_vm1, %v4910_v36 }
 0x155   : > { %5653 = vmatmul.mubr.msk.bf16.gmra.mrb[28].mxu0 %vm1083_vm1, %v6165_v6 }
 0x156   : > { %5501 = vmatmul.mubr.msk.bf16.gmra.mrb[12].mxu1 %vm1083_vm1, %v4911_v5  ;;  %5658 = vmatprep.mubr.msk.bf16.mxu0 %vm1083_vm1, %v7327_v47  ;;  %v6224_v47 = vld [vmem:[%s6694_s28 + $0x27c] sm:$0xf] }
 0x157   : > { %5504 = vmatprep.mubr.msk.bf16.mxu1 %vm1083_vm1, %v4912_v17  ;;  %v4917_v4 = vcombine.low %v6224_v47, %v6225_v42 }
 0x15d   : > { %5659 = vmatmul.mubr.msk.bf16.vlgmr.msra.gmra.mrb[0].mxu0 %vm1083_vm1, %v7291_v11  ;;  %v6228_v11 = vld [vmem:[%s6694_s28 + $0x294] sm:$0xf] }
 0x15e   : > { %5505 = vmatmul.mubr.msk.bf16.gmra.mrb[16].mxu1 %vm1083_vm1, %v4913_v33  ;;  %5662 = vmatprep.mubr.msk.bf16.mxu0 %vm1083_vm1, %v7378_v48  ;;  %v6229_v48 = vld [vmem:[%s6694_s28 + $0x298] sm:$0xf] }
 0x15f   : > { %5508 = vmatprep.mubr.msk.bf16.mxu1 %vm1083_vm1, %v4914_v40  ;;  %v4919_v20 = vcombine.low %v6228_v11, %v6229_v48 }
 0x165   : > { %5663 = vmatmul.mubr.msk.bf16.gmra.mrb[4].mxu0 %vm1083_vm1, %v7385_v24  ;;  %v6176_v24 = vld [vmem:[%s6694_s28 + $0x2ac] sm:$0xff]  }
 0x166   : > { %5509 = vmatmul.mubr.msk.bf16.gmra.mrb[20].mxu1 %vm1083_vm1, %v4915_v34  ;;  %5666 = vmatprep.mubr.msk.bf16.mxu0 %vm1083_vm1, %v7428_v38  ;;  %v6177_v38 = vld [vmem:[%s6694_s28 + $0x2b8] sm:$0xff]  }
 0x167   : > { %5512 = vmatprep.mubr.msk.bf16.mxu1 %vm1083_vm1, %v4916_v51 }
 0x16d   : > { %5667 = vmatmul.mubr.msk.bf16.gmra.mrb[8].mxu0 %vm1083_vm1, %v7434_v52  ;;  %v6178_v52 = vld [vmem:[%s6694_s28 + $0x2c4] sm:$0xff]  }
 0x16e   : > { %5513 = vmatmul.mubr.msk.bf16.gmra.mrb[24].mxu1 %vm1083_vm1, %v4917_v4  ;;  %5670 = vmatprep.mubr.msk.bf16.mxu0 %vm1083_vm1, %v7480_v35  ;;  %v6180_v35 = vld [vmem:[%s6694_s28 + $0x2dc] sm:$0xff]  }
 0x16f   : > { %5516 = vmatprep.mubr.msk.bf16.mxu1 %vm1083_vm1, %v4918_v25 }
 0x175   : > { %5671 = vmatmul.mubr.msk.bf16.gmra.mrb[12].mxu0 %vm1083_vm1, %v7524_v2  ;;  %v6181_v2 = vld [vmem:[%s6694_s28 + $0x2e8] sm:$0xff]  }
 0x176   : > { %5517 = vmatmul.mubr.msk.bf16.gmra.mrb[28].mxu1 %vm1083_vm1, %v4919_v20  ;;  %5674 = vmatprep.mubr.msk.bf16.mxu0 %vm1083_vm1, %v7498_v23  ;;  %v6182_v23 = vld [vmem:[%s6694_s28 + $0x2f4] sm:$0xff]   ;;  %s7749_s28 = scalar_lea.vmem [#allocation4], %s4806_s5 }
 0x177   : > { %5538 = vmatprep.mubr.msk.bf16.mxu1 %vm1083_vm1, %v6175_v13 }
 0x17d   : > { %5675 = vmatmul.mubr.msk.bf16.gmra.mrb[16].mxu0 %vm1083_vm1, %v7516_v53 }
 0x17e   : > { %5539 = vmatmul.mubr.msk.bf16.vlgmr.msra.gmra.mrb[16].mxu1 %vm1083_vm1, %v6176_v24  ;;  %5678 = vmatprep.mubr.msk.bf16.mxu0 %vm1083_vm1, %v7563_v60 }
 0x17f   : > { %5542 = vmatprep.mubr.msk.bf16.mxu1 %vm1083_vm1, %v6177_v38 }
 0x185   : > { %5679 = vmatmul.mubr.msk.bf16.gmra.mrb[20].mxu0 %vm1083_vm1, %v7567_v29 }
 0x186   : > { %5543 = vmatmul.mubr.msk.bf16.gmra.mrb[20].mxu1 %vm1083_vm1, %v6178_v52  ;;  %5682 = vmatprep.mubr.msk.bf16.mxu0 %vm1083_vm1, %v7588_v41 }
 0x187   : > { %5546 = vmatprep.mubr.msk.bf16.mxu1 %vm1083_vm1, %v6179_v57 }
 0x18d   : > { %5683 = vmatmul.mubr.msk.bf16.gmra.mrb[24].mxu0 %vm1083_vm1, %v7590_v10 }
 0x18e   : > { %5547 = vmatmul.mubr.msk.bf16.gmra.mrb[24].mxu1 %vm1083_vm1, %v6180_v35  ;;  %5686 = vmatprep.mubr.msk.bf16.mxu0 %vm1083_vm1, %v7604_v43 }
 0x18f   : > { %5550 = vmatprep.mubr.msk.bf16.mxu1 %vm1083_vm1, %v6181_v2 }
 0x195   : > { %5687 = vmatmul.mubr.msk.bf16.gmra.mrb[28].mxu0 %vm1083_vm1, %v7537_v59 }
 0x196   : > { %5551 = vmatmul.mubr.msk.bf16.gmra.mrb[28].mxu1 %vm1083_vm1, %v6182_v23 }
 0x211   : > { %v5490_v53 = vpop.f32.mrb[0].mxu1 }
 0x212   : > { %v2437_v60 = vpop.f32.mrb[1].mxu1 }
 0x213   : > { %v5491_v29 = vpop.f32.mrb[2].mxu1 }
 0x214   : > { %v2440_v39 = vpop.f32.mrb[3].mxu1 }
 0x219   : > { %v5494_v45 = vpop.f32.mrb[4].mxu1 }
 0x21a   : > { %v2453_v41 = vpop.f32.mrb[5].mxu1 }
 0x21b   : > { %v5495_v15 = vpop.f32.mrb[6].mxu1 }
 0x21c   : > { %v2456_v32 = vpop.f32.mrb[7].mxu1 }
 0x221   : > { %v5498_v49 = vpop.f32.mrb[8].mxu1 }
 0x222   : > { %v2469_v27 = vpop.f32.mrb[9].mxu1 }
 0x223   : > { %v5499_v37 = vpop.f32.mrb[10].mxu1 }
 0x224   : > { %v7727_v10 = vpop.f32.mrb[11].mxu1 }
 0x229   : > { %v7729_v12 = vpop.f32.mrb[12].mxu1 }
 0x22a   : > { %v7731_v56 = vpop.f32.mrb[13].mxu1 }
 0x22b   : > { %v7733_v43 = vpop.f32.mrb[14].mxu1 }
 0x22c   : > { %v7735_v59 = vpop.f32.mrb[15].mxu1 }
 0x230   : > { %v5660_v8 = vpop.f32.mrb[0].mxu0 }
 0x231   : > { %v5692_v55 = vadd.f32 %v5660_v8, %v5490_v53  ;;  %v4125_v58 = vpop.f32.mrb[1].mxu0 }
 0x232   : > { %v5693_v61 = vadd.f32 %v4125_v58, %v2437_v60  ;;  %v5661_v26 = vpop.f32.mrb[2].mxu0 }
 0x233   : > { %v4293_v54 = vadd.f32 %v5692_v55, %v7740_v16  ;;  %v5694_v36 = vadd.f32 %v5661_v26, %v5491_v29  ;;  %v4128_v30 = vpop.f32.mrb[3].mxu0 }
 0x234   : > { %v4291_v21 = vadd.f32 %v5693_v61, %v7740_v16  ;;  %v5695_v28 = vadd.f32 %v4128_v30, %v2440_v39 }
 0x235   : > { %v4325_v50 = vmul.f32 0.01, %v4293_v54  ;;  %v4294_v5 = vadd.f32 %v5694_v36, %v7740_v16 }
 0x236   : > { %v4323_v7 = vmul.f32 0.01, %v4291_v21  ;;  %v4292_v0 = vadd.f32 %v5695_v28, %v7740_v16 }
 0x237   : > { %v4326_v17 = vmul.f32 0.01, %v4294_v5  ;;  %v4357_v6 = vmax.f32 %v4293_v54, %v4325_v50 }
 0x238   : > { %v4324_v9 = vmul.f32 0.01, %v4292_v0  ;;  %v5664_v1 = vpop.f32.mrb[4].mxu0  ;;  %v4355_v22 = vmax.f32 %v4291_v21, %v4323_v7 }
 0x239   : > { %v4358_v46 = vmax.f32 %v4294_v5, %v4326_v17  ;;  %v5696_v31 = vadd.f32 %v5664_v1, %v5494_v45  ;;  %v4141_v33 = vpop.f32.mrb[5].mxu0 }
 0x23a   : > { %v4356_v19 = vmax.f32 %v4292_v0, %v4324_v9  ;;  %v5697_v40 = vadd.f32 %v4141_v33, %v2453_v41  ;;  %v5665_v63 = vpop.f32.mrb[6].mxu0 }
 0x23b   : > { %v5144_v18 = vpack.c.bf16 %v4358_v46, %v4357_v6  ;;  %v4297_v34 = vadd.f32 %v5696_v31, %v7740_v16  ;;  %v5698_v14 = vadd.f32 %v5665_v63, %v5495_v15  ;;  %v4144_v62 = vpop.f32.mrb[7].mxu0 }
 0x23c   : > { %v5139_v51 = vpack.c.bf16 %v4356_v19, %v4355_v22  ;;  %v4295_v47 = vadd.f32 %v5697_v40, %v7740_v16  ;;  %v5699_v42 = vadd.f32 %v4144_v62, %v2456_v32 }
 0x23d   : > { %5216 = vst [vmem:[%s7749_s28 + $0x8] sm:$0xff] %v5144_v18   ;;  %v4329_v4 = vmul.f32 0.01, %v4297_v34  ;;  %v4298_v3 = vadd.f32 %v5698_v14, %v7740_v16 }
 0x23e   : > { %5140 = vst [vmem:[%s7749_s28] sm:$0xff] %v5139_v51   ;;  %v4327_v44 = vmul.f32 0.01, %v4295_v47  ;;  %v4296_v25 = vadd.f32 %v5699_v42, %v7740_v16 }
 0x23f   : > { %v4330_v11 = vmul.f32 0.01, %v4298_v3  ;;  %v4361_v13 = vmax.f32 %v4297_v34, %v4329_v4 }
 0x240   : > { %v4328_v48 = vmul.f32 0.01, %v4296_v25  ;;  %v5668_v20 = vpop.f32.mrb[8].mxu0  ;;  %v4359_v57 = vmax.f32 %v4295_v47, %v4327_v44 }
 0x241   : > { %v4362_v24 = vmax.f32 %v4298_v3, %v4330_v11  ;;  %v5700_v38 = vadd.f32 %v5668_v20, %v5498_v49  ;;  %v4157_v52 = vpop.f32.mrb[9].mxu0 }
 0x242   : > { %v4360_v35 = vmax.f32 %v4296_v25, %v4328_v48  ;;  %v5701_v2 = vadd.f32 %v4157_v52, %v2469_v27  ;;  %v5669_v23 = vpop.f32.mrb[10].mxu0 }
 0x243   : > { %v5154_v53 = vpack.c.bf16 %v4362_v24, %v4361_v13  ;;  %v4301_v60 = vadd.f32 %v5700_v38, %v7740_v16  ;;  %v5702_v29 = vadd.f32 %v5669_v23, %v5499_v37  ;;  %v4160_v39 = vpop.f32.mrb[11].mxu0 }
 0x244   : > { %v5149_v45 = vpack.c.bf16 %v4360_v35, %v4359_v57  ;;  %v4299_v41 = vadd.f32 %v5701_v2, %v7740_v16  ;;  %v5703_v15 = vadd.f32 %v4160_v39, %v7727_v10 }
 0x245   : > { %5218 = vst [vmem:[%s7749_s28 + $0x18] sm:$0xff] %v5154_v53   ;;  %v4333_v32 = vmul.f32 0.01, %v4301_v60  ;;  %v4302_v49 = vadd.f32 %v5702_v29, %v7740_v16 }
 0x246   : > { %5217 = vst [vmem:[%s7749_s28 + $0x10] sm:$0xff] %v5149_v45   ;;  %v4331_v8 = vmul.f32 0.01, %v4299_v41  ;;  %v4300_v55 = vadd.f32 %v5703_v15, %v7740_v16 }
 0x247   : > { %v4334_v27 = vmul.f32 0.01, %v4302_v49  ;;  %v4365_v54 = vmax.f32 %v4301_v60, %v4333_v32 }
 0x248   : > { %v4332_v58 = vmul.f32 0.01, %v4300_v55  ;;  %v5672_v61 = vpop.f32.mrb[12].mxu0  ;;  %v4363_v10 = vmax.f32 %v4299_v41, %v4331_v8 }
 0x249   : > { %v4366_v37 = vmax.f32 %v4302_v49, %v4334_v27  ;;  %v5704_v36 = vadd.f32 %v5672_v61, %v7729_v12  ;;  %v4173_v30 = vpop.f32.mrb[13].mxu0 }
 0x24a   : > { %v4364_v28 = vmax.f32 %v4300_v55, %v4332_v58  ;;  %v5705_v50 = vadd.f32 %v4173_v30, %v7731_v56  ;;  %v5673_v5 = vpop.f32.mrb[14].mxu0 }
 0x24b   : > { %v5164_v0 = vpack.c.bf16 %v4366_v37, %v4365_v54  ;;  %v4305_v17 = vadd.f32 %v5704_v36, %v7740_v16  ;;  %v5706_v9 = vadd.f32 %v5673_v5, %v7733_v43  ;;  %v4176_v1 = vpop.f32.mrb[15].mxu0 }
 0x24c   : > { %v5159_v46 = vpack.c.bf16 %v4364_v28, %v4363_v10  ;;  %v4303_v12 = vadd.f32 %v5705_v50, %v7740_v16  ;;  %v5707_v31 = vadd.f32 %v4176_v1, %v7735_v59 }
 0x24d   : > { %5220 = vst [vmem:[%s7749_s28 + $0x28] sm:$0xff] %v5164_v0   ;;  %v4337_v33 = vmul.f32 0.01, %v4305_v17  ;;  %v4306_v22 = vadd.f32 %v5706_v9, %v7740_v16 }
 0x24e   : > { %5219 = vst [vmem:[%s7749_s28 + $0x20] sm:$0xff] %v5159_v46   ;;  %v4335_v56 = vmul.f32 0.01, %v4303_v12  ;;  %v4304_v19 = vadd.f32 %v5707_v31, %v7740_v16 }
 0x24f   : > { %v4338_v40 = vmul.f32 0.01, %v4306_v22  ;;  %v4369_v43 = vmax.f32 %v4305_v17, %v4337_v33 }
 0x250   : > { %v4336_v63 = vmul.f32 0.01, %v4304_v19  ;;  %v5676_v18 = vpop.f32.mrb[16].mxu0  ;;  %v4367_v42 = vmax.f32 %v4303_v12, %v4335_v56 }
 0x251   : > { %v5540_v26 = vpop.f32.mrb[16].mxu1  ;;  %v4370_v14 = vmax.f32 %v4306_v22, %v4338_v40  ;;  %v4189_v51 = vpop.f32.mrb[17].mxu0 }
 0x252   : > { %v2825_v21 = vpop.f32.mrb[17].mxu1  ;;  %v5708_v62 = vadd.f32 %v5676_v18, %v5540_v26  ;;  %v4368_v59 = vmax.f32 %v4304_v19, %v4336_v63  ;;  %v5677_v3 = vpop.f32.mrb[18].mxu0 }
 0x253   : > { %v5541_v7 = vpop.f32.mrb[18].mxu1  ;;  %v5709_v4 = vadd.f32 %v4189_v51, %v2825_v21  ;;  %v5174_v25 = vpack.c.bf16 %v4370_v14, %v4369_v43  ;;  %v4192_v20 = vpop.f32.mrb[19].mxu0 }
 0x254   : > { %v2828_v6 = vpop.f32.mrb[19].mxu1  ;;  %v4309_v11 = vadd.f32 %v5708_v62, %v7740_v16  ;;  %v5710_v48 = vadd.f32 %v5677_v3, %v5541_v7  ;;  %v5169_v24 = vpack.c.bf16 %v4368_v59, %v4367_v42 }
 0x255   : > { %v4307_v38 = vadd.f32 %v5709_v4, %v7740_v16  ;;  %v5711_v52 = vadd.f32 %v4192_v20, %v2828_v6  ;;  %5222 = vst [vmem:[%s7749_s28 + $0x38] sm:$0xff] %v5174_v25  }
 0x256   : > { %v4341_v57 = vmul.f32 0.01, %v4309_v11  ;;  %v4310_v35 = vadd.f32 %v5710_v48, %v7740_v16  ;;  %5221 = vst [vmem:[%s7749_s28 + $0x30] sm:$0xff] %v5169_v24  }
 0x257   : > { %v4339_v2 = vmul.f32 0.01, %v4307_v38  ;;  %v4308_v23 = vadd.f32 %v5711_v52, %v7740_v16 }
 0x258   : > { %v4342_v53 = vmul.f32 0.01, %v4310_v35  ;;  %v5680_v29 = vpop.f32.mrb[20].mxu0  ;;  %v4373_v45 = vmax.f32 %v4309_v11, %v4341_v57 }
 0x259   : > { %v5544_v34 = vpop.f32.mrb[20].mxu1  ;;  %v4340_v60 = vmul.f32 0.01, %v4308_v23  ;;  %v4205_v32 = vpop.f32.mrb[21].mxu0  ;;  %v4371_v8 = vmax.f32 %v4307_v38, %v4339_v2 }
 0x25a   : > { %v2841_v47 = vpop.f32.mrb[21].mxu1  ;;  %v4374_v41 = vmax.f32 %v4310_v35, %v4342_v53  ;;  %v5712_v15 = vadd.f32 %v5680_v29, %v5544_v34  ;;  %v5681_v58 = vpop.f32.mrb[22].mxu0 }
 0x25b   : > { %v5545_v44 = vpop.f32.mrb[22].mxu1  ;;  %v4372_v55 = vmax.f32 %v4308_v23, %v4340_v60  ;;  %v5713_v27 = vadd.f32 %v4205_v32, %v2841_v47  ;;  %v4208_v36 = vpop.f32.mrb[23].mxu0 }
 0x25c   : > { %v2844_v13 = vpop.f32.mrb[23].mxu1  ;;  %v5184_v26 = vpack.c.bf16 %v4374_v41, %v4373_v45  ;;  %v4313_v54 = vadd.f32 %v5712_v15, %v7740_v16  ;;  %v5714_v37 = vadd.f32 %v5681_v58, %v5545_v44 }
 0x25d   : > { %v5179_v21 = vpack.c.bf16 %v4372_v55, %v4371_v8  ;;  %v4311_v10 = vadd.f32 %v5713_v27, %v7740_v16  ;;  %v5715_v28 = vadd.f32 %v4208_v36, %v2844_v13 }
 0x25e   : > { %5224 = vst [vmem:[%s7749_s28 + $0x48] sm:$0xff] %v5184_v26   ;;  %v4345_v50 = vmul.f32 0.01, %v4313_v54  ;;  %v4314_v5 = vadd.f32 %v5714_v37, %v7740_v16 }
 0x25f   : > { %5223 = vst [vmem:[%s7749_s28 + $0x40] sm:$0xff] %v5179_v21   ;;  %v4343_v7 = vmul.f32 0.01, %v4311_v10  ;;  %v4312_v0 = vadd.f32 %v5715_v28, %v7740_v16 }
 0x260   : > { %v4346_v17 = vmul.f32 0.01, %v4314_v5  ;;  %v5684_v1 = vpop.f32.mrb[24].mxu0  ;;  %v4377_v46 = vmax.f32 %v4313_v54, %v4345_v50 }
 0x261   : > { %v5548_v39 = vpop.f32.mrb[24].mxu1  ;;  %v4344_v9 = vmul.f32 0.01, %v4312_v0  ;;  %v4221_v33 = vpop.f32.mrb[25].mxu0  ;;  %v4375_v56 = vmax.f32 %v4311_v10, %v4343_v7 }
 0x262   : > { %v2857_v49 = vpop.f32.mrb[25].mxu1  ;;  %v4378_v12 = vmax.f32 %v4314_v5, %v4346_v17  ;;  %v5716_v31 = vadd.f32 %v5684_v1, %v5548_v39  ;;  %v5685_v63 = vpop.f32.mrb[26].mxu0 }
 0x263   : > { %v5549_v61 = vpop.f32.mrb[26].mxu1  ;;  %v4376_v19 = vmax.f32 %v4312_v0, %v4344_v9  ;;  %v5717_v40 = vadd.f32 %v4221_v33, %v2857_v49  ;;  %v4224_v62 = vpop.f32.mrb[27].mxu0 }
 0x264   : > { %v2860_v30 = vpop.f32.mrb[27].mxu1  ;;  %v5194_v34 = vpack.c.bf16 %v4378_v12, %v4377_v46  ;;  %v4317_v43 = vadd.f32 %v5716_v31, %v7740_v16  ;;  %v5718_v14 = vadd.f32 %v5685_v63, %v5549_v61 }
 0x265   : > { %v5189_v47 = vpack.c.bf16 %v4376_v19, %v4375_v56  ;;  %v4315_v42 = vadd.f32 %v5717_v40, %v7740_v16  ;;  %v5719_v59 = vadd.f32 %v4224_v62, %v2860_v30 }
 0x266   : > { %5226 = vst [vmem:[%s7749_s28 + $0x58] sm:$0xff] %v5194_v34   ;;  %v4349_v4 = vmul.f32 0.01, %v4317_v43  ;;  %v4318_v3 = vadd.f32 %v5718_v14, %v7740_v16 }
 0x267   : > { %5225 = vst [vmem:[%s7749_s28 + $0x50] sm:$0xff] %v5189_v47   ;;  %v4347_v44 = vmul.f32 0.01, %v4315_v42  ;;  %v4316_v25 = vadd.f32 %v5719_v59, %v7740_v16 }
 0x268   : > { %v4350_v11 = vmul.f32 0.01, %v4318_v3  ;;  %v5688_v20 = vpop.f32.mrb[28].mxu0  ;;  %v4381_v13 = vmax.f32 %v4317_v43, %v4349_v4 }
 0x269   : > { %v5552_v6 = vpop.f32.mrb[28].mxu1  ;;  %v4348_v48 = vmul.f32 0.01, %v4316_v25  ;;  %v4237_v52 = vpop.f32.mrb[29].mxu0  ;;  %v4379_v57 = vmax.f32 %v4315_v42, %v4347_v44 }
 0x26a   : > { %v2873_v22 = vpop.f32.mrb[29].mxu1  ;;  %v4382_v24 = vmax.f32 %v4318_v3, %v4350_v11  ;;  %v5720_v38 = vadd.f32 %v5688_v20, %v5552_v6  ;;  %v5689_v23 = vpop.f32.mrb[30].mxu0 }
 0x26b   : > { %v5553_v18 = vpop.f32.mrb[30].mxu1  ;;  %v4380_v35 = vmax.f32 %v4316_v25, %v4348_v48  ;;  %v5721_v2 = vadd.f32 %v4237_v52, %v2873_v22  ;;  %v4240_v39 = vpop.f32.mrb[31].mxu0 }
 0x26c   : > { %v2876_v51 = vpop.f32.mrb[31].mxu1  ;;  %v5204_v53 = vpack.c.bf16 %v4382_v24, %v4381_v13  ;;  %v4321_v60 = vadd.f32 %v5720_v38, %v7740_v16  ;;  %v5722_v29 = vadd.f32 %v5689_v23, %v5553_v18 }
 0x26d   : > { %v5199_v45 = vpack.c.bf16 %v4380_v35, %v4379_v57  ;;  %v4319_v41 = vadd.f32 %v5721_v2, %v7740_v16  ;;  %v5723_v15 = vadd.f32 %v4240_v39, %v2876_v51 }
 0x26e   : > { %5228 = vst [vmem:[%s7749_s28 + $0x68] sm:$0xff] %v5204_v53   ;;  %v4353_v32 = vmul.f32 0.01, %v4321_v60  ;;  %v4322_v49 = vadd.f32 %v5722_v29, %v7740_v16 }
 0x26f   : > { %5227 = vst [vmem:[%s7749_s28 + $0x60] sm:$0xff] %v5199_v45   ;;  %v4351_v8 = vmul.f32 0.01, %v4319_v41  ;;  %v4320_v55 = vadd.f32 %v5723_v15, %v7740_v16 }
 0x270   : > { %v4354_v27 = vmul.f32 0.01, %v4322_v49  ;;  %v4385_v61 = vmax.f32 %v4321_v60, %v4353_v32 }
 0x271   : > { %v4352_v58 = vmul.f32 0.01, %v4320_v55  ;;  %v4383_v54 = vmax.f32 %v4319_v41, %v4351_v8 }
 0x272   : > { %v4386_v26 = vmax.f32 %v4322_v49, %v4354_v27 }
 0x273   : > { %v4384_v37 = vmax.f32 %v4320_v55, %v4352_v58 }
 0x274   : > { %v5214_v36 = vpack.c.bf16 %v4386_v26, %v4385_v61 }
 0x275   : > { %v5209_v30 = vpack.c.bf16 %v4384_v37, %v4383_v54 }
 0x276   : > { %5230 = vst [vmem:[%s7749_s28 + $0x78] sm:$0xff] %v5214_v36  }
 0x277   : > { %5229 = vst [vmem:[%s7749_s28 + $0x70] sm:$0xff] %v5209_v30  }
 0x278   : > { %s5135_s7 = sshll.u32 %s6325_s20, 10  ;;  %s4581_s8 = sshll.u32 %s7749_s28, 4  ;;  %s4582_s8 = int_to_ptr.vmem [resolvable:$true] %s4581_s8 }
 0x279   : > { %s4564_s16 = scalar_lea.hbm %s7851_s4, %s5135_s7  ;;  %s6351_s27 = smov 1024  }
 0x27a   : > { %5963 = sst [smem:[#allocation7]] (%p6465_p10), %s6351_s27  ;;  %s6352_s25 = smov 2048  }
 0x27b   : > { %5964 = sst [smem:[#allocation7 + $0x1]] (%p6465_p10), %s6352_s25  ;;  %s6353_s14 = smov 16  }
 0x27c   : > { %5965 = sst [smem:[#allocation7 + $0x2]] (%p6465_p10), %s6353_s14  ;;  %s6354_s11 = smov 64  }
 0x27d   : > { %5966 = sst [smem:[#allocation7 + $0x3]] (%p6465_p10), %s6354_s11  ;;  %s6355_s20 = smov 4  }
 0x27e   : > { %5967 = sst [smem:[#allocation7 + $0x4]] (%p6465_p10), %s6354_s11  ;;  %s6356_s0 = smov [#allocation6]  }
 0x27f   : > { %5968 = sst [smem:[#allocation7 + $0x5]] (%p6465_p10), %s6355_s20  ;;  %s6357_s23 = smov 0  }
 0x280   : > { %5969 = dma.general (%p6465_p10), %s4582_s8, 2048, %s4564_s16, %s4548_s6, %s6356_s0, [#allocation7], %s6357_s23, 0  }
 0x281 PF: > { %s4609_s29 = sand.u32 1, %s6305_s15   ;;  %p5972_p5 = pnand %p4763_p13, %p6469_p12 }
 0x282   : > { %s4610_s30 = scalar_lea.sflag [#allocation5], %s4609_s29 }
 0x283   : > { %6296 = dma.done.wait (!%p5972_p5), %s4610_s30, 2048  }
 0x284   : > { %6298 = vsyncadd (!%p5972_p5), %s4610_s30, 4294965248  ;;  %s17_s22 = sadd.s32 1, %s6333_s22   ;;  %s7899_s12 = sld [smem:[#allocation9_spill]] }
 0x285   : > { %p14_p6 = scmp.ge.s32.totalorder %s17_s22, 4   ;;  %s7900_s15 = smov %s6317_s18 }
 0x286   : > { %s7901_s16 = smov %s6313_s17  ;;  %s7902_s17 = smov %s6454_s10 }
 0x287   : > { %s7903_s18 = smov %s6321_s19  ;;  %s7904_s19 = smov %s6447_s9 }
 0x288   : > { %s7905_s20 = smov %s6329_s21  ;;  %16 = sbr.rel (!%p14_p6) target bundleno = 7 (0x7), region = 228 }
 0x28a   : > { %s7906_s21 = smov %s7899_s12 }
 0x28f   :  { %4615 = vsyncpa [#allocation5], 1 }
 0x290   :  { %4617 = vsyncpa [#allocation5 + $0x1], 1 }

</bundles_post_ra>
